<compile_context>
chip_gen: v7x
topology: tpu7x:2x2x1
jax: 0.10.0
libtpu: 0.0.40
codegen_flags: <defaults>
</compile_context>

<pallas_src>
import functools

import numpy as np
import jax
import jax.numpy as jnp
from jax.experimental import pallas as pl
from jax.experimental.pallas import tpu as pltpu

_USE_BF16_F = False   # v5e speed mode: bf16 F matrices + DEFAULT precision.


# ------------------------- DFT matrices (host side) ------------------------- #

def _dft_matrix_np(n, inverse):
    k = np.arange(n)
    ang = 2.0 * np.pi * np.outer(k, k) / n
    sign = 1.0 if inverse else -1.0
    m = np.cos(ang) + 1j * sign * np.sin(ang)
    if inverse:
        m = m / n
    return m


def _kron_dft(dims, inverse, dtype=jnp.float32):
    """Real/imag parts of kron(F_d0, F_d1, ...) (symmetric DFT matrices)."""
    m = np.array([[1.0 + 0.0j]])
    for n in dims:
        m = np.kron(m, _dft_matrix_np(n, inverse))
    re = jnp.asarray(np.asarray(m.real, np.float32)).astype(dtype)
    im = jnp.asarray(np.asarray(m.imag, np.float32)).astype(dtype)
    return re, im


# ------------------------- Hardware-derived budgets -------------------------- #

def _vmem_limit_bytes():
    """Scoped-VMEM budget ~= 75% of physical VMEM (96 MiB v5e/v6e, 48 MiB v7x)."""
    try:
        cap = int(pltpu.get_tpu_info().vmem_capacity_bytes)
    except Exception:
        cap = 64 * 1024 * 1024          # conservative (v7x-sized) fallback
    return int(cap * 3 // 4)


def _col_tile_candidates(N):
    """Lane-dense (multiple-of-128) column tiles; prefer >=4 column blocks
    (>=2 grid steps per v7x TensorCore), then >=2, then 1."""
    if N < 128:
        return [N]                      # full-width block (equals array dim)
    cands = []
    for min_blocks in (4, 2, 1):
        for t in (512, 256, 128):
            if t <= N and pl.cdiv(N, t) >= min_blocks and t not in cands:
                cands.append(t)
    return cands or [N]


def _row_tile_candidates(M):
    cands = [M] if M <= 512 else []     # full-M block is always a legal shape
    cands += [t for t in (512, 256, 128, 64, 32, 16, 8) if t < M]
    return cands or [M]


def _choose_merge_tiles(M, N, budget):
    """(tm, tn) for the X @ F kernels so double-buffered blocks + temps fit."""
    for tm in _row_tile_candidates(M):
        for tn in _col_tile_candidates(N):
            blocks = 2 * (2 * tm * N + 2 * N * tn + 2 * tm * tn)   # 2x buffers
            temps = tm * N + 2 * N * tn + 3 * tm * tn              # in-kernel
            if 4 * (blocks + temps) <= budget:
                return tm, tn
    return _row_tile_candidates(M)[-1], _col_tile_candidates(N)[-1]


def _choose_rowdft_tiles(M, N, budget):
    """(tm, tn, tk) for Z = F_rows @ T; tk must divide the contraction M."""
    if M <= 1024:
        tk = M
    else:
        tk = next((t for t in (1024, 512, 256, 128, 64, 32, 16, 8)
                   if M % t == 0), M)
    for tm in _row_tile_candidates(M):
        for tn in _col_tile_candidates(N):
            blocks = 2 * (2 * tm * tk + 2 * tk * tn + 2 * tm * tn)
            temps = 2 * tm * tn + tm * tk + tk * tn + 3 * tm * tn
            if 4 * (blocks + temps) <= budget:
                return tm, tn, tk
    return _row_tile_candidates(M)[-1], _col_tile_candidates(N)[-1], tk


# ------------------------- MXU precision selection --------------------------- #

_PRECISION_CACHE = None


def _matmul_precision():
    """Use Precision.HIGH (3 bf16 MXU passes) when the Mosaic lowering supports
    it and delivers f32-class accuracy; otherwise fall back to HIGHEST."""
    global _PRECISION_CACHE
    if _PRECISION_CACHE is not None:
        return _PRECISION_CACHE
    prec = jax.lax.Precision.HIGHEST
    try:
        a = jax.random.normal(jax.random.PRNGKey(1), (128, 512), jnp.float32)
        b = jax.random.normal(jax.random.PRNGKey(2), (512, 128), jnp.float32)

        def _probe(a_ref, b_ref, o_ref):
            o_ref[...] = jnp.dot(a_ref[...], b_ref[...],
                                 preferred_element_type=jnp.float32,
                                 precision=jax.lax.Precision.HIGH)

        out = pl.pallas_call(
            _probe, out_shape=jax.ShapeDtypeStruct((128, 128), jnp.float32),
        )(a, b)
        out = np.asarray(jax.block_until_ready(out), np.float64)
        ref = np.asarray(a, np.float64) @ np.asarray(b, np.float64)
        err = float(np.max(np.abs(out - ref)))
        if err <= 1e-4 * float(np.max(np.abs(ref))):
            prec = jax.lax.Precision.HIGH
    except Exception:
        prec = jax.lax.Precision.HIGHEST
    _PRECISION_CACHE = prec
    return prec


# ------------------------------ Pallas kernels ------------------------------- #

def _merge_kernel(xr_ref, xi_ref, fr_ref, fi_ref, yr_ref, yi_ref, *, precision):
    """Y = (xr + i*xi) @ (fr + i*fi) via the Gauss 3-matmul trick.

    fd = fi - fr and fs = fr + fi are formed in-kernel with VPU adds on the
    (N, tn) block instead of streaming extra F operands from HBM.
    """
    xr = xr_ref[...]
    xi = xi_ref[...]
    fr = fr_ref[...]
    fi = fi_ref[...]
    k1 = jnp.dot(xr + xi, fr, preferred_element_type=jnp.float32,
                 precision=precision)
    k2 = jnp.dot(xr, fi - fr, preferred_element_type=jnp.float32,
                 precision=precision)
    k3 = jnp.dot(xi, fr + fi, preferred_element_type=jnp.float32,
                 precision=precision)
    yr_ref[...] = k1 - k3
    yi_ref[...] = k1 + k2


def _colfft_kernel(x_ref, cr_ref, ci_ref, tr_ref, ti_ref, *, precision):
    """Column DFT of a REAL tensor: T = X @ F_cols (2 matmuls, no zero plane)."""
    x = x_ref[...]
    tr_ref[...] = jnp.dot(x, cr_ref[...], preferred_element_type=jnp.float32,
                          precision=precision)
    ti_ref[...] = jnp.dot(x, ci_ref[...], preferred_element_type=jnp.float32,
                          precision=precision)


def _rowfft_kernel(rr_ref, ri_ref, tr_ref, ti_ref, zr_ref, zi_ref,
                   acc_r, acc_i, *, precision):
    """Row DFT (left multiply) Z = (rr + i*ri) @ (tr + i*ti).

    The contraction over M is a K-reduction grid axis with VMEM accumulators
    (Gauss 3-matmul complex product).
    """
    k = pl.program_id(2)

    @pl.when(k == 0)
    def _():
        acc_r[...] = jnp.zeros_like(acc_r)
        acc_i[...] = jnp.zeros_like(acc_i)

    rr = rr_ref[...]
    ri = ri_ref[...]
    tr = tr_ref[...]
    ti = ti_ref[...]
    k1 = jnp.dot(rr, tr, preferred_element_type=jnp.float32, precision=precision)
    k2 = jnp.dot(ri, ti, preferred_element_type=jnp.float32, precision=precision)
    k3 = jnp.dot(rr + ri, tr + ti, preferred_element_type=jnp.float32,
                 precision=precision)
    acc_r[...] += k1 - k2
    acc_i[...] += k3 - k1 - k2

    @pl.when(k == pl.num_programs(2) - 1)
    def _():
        zr_ref[...] = acc_r[...]
        zi_ref[...] = acc_i[...]


# -------------------------------- Wrappers ------------------------------------ #

@functools.partial(jax.jit, static_argnames=("precision",))
def _ifft3_fused(xr, xi, precision):
    """ifftn over the last 3 axes as one fused Kronecker-DFT complex matmul."""
    shape = xr.shape
    assert len(shape) >= 3, "merge path needs at least 3 dims"
    col_dims = shape[-3:]
    N = int(np.prod(col_dims))
    M = int(np.prod(shape[:-3])) if len(shape) > 3 else 1
    xr2 = xr.reshape(M, N)        # transform axes already trailing: free reshape
    xi2 = xi.reshape(M, N)

    f_dtype = jnp.bfloat16 if _USE_BF16_F else jnp.float32
    fr, fi = _kron_dft(col_dims, inverse=True, dtype=f_dtype)
    if _USE_BF16_F:
        xr2 = xr2.astype(jnp.bfloat16)
        xi2 = xi2.astype(jnp.bfloat16)
        precision = jax.lax.Precision.DEFAULT

    vmem = _vmem_limit_bytes()
    tm, tn = _choose_merge_tiles(M, N, vmem)
    # Column axis outer / row axis inner: the F blocks are constant across the
    # inner row sweep, so their DMA is skipped after the first inner step.
    grid = (pl.cdiv(N, tn), pl.cdiv(M, tm))

    row_spec = pl.BlockSpec((tm, N), lambda j, i: (i, 0))
    mat_spec = pl.BlockSpec((N, tn), lambda j, i: (0, j))
    out_spec = pl.BlockSpec((tm, tn), lambda j, i: (i, j))

    yr, yi = pl.pallas_call(
        functools.partial(_merge_kernel, precision=precision),
        out_shape=(jax.ShapeDtypeStruct((M, N), jnp.float32),
                   jax.ShapeDtypeStruct((M, N), jnp.float32)),
        grid=grid,
        in_specs=[row_spec, row_spec, mat_spec, mat_spec],
        out_specs=(out_spec, out_spec),
        compiler_params=pltpu.CompilerParams(
            dimension_semantics=("parallel", "parallel"),
            vmem_limit_bytes=vmem),
    )(xr2, xi2, fr, fi)
    return yr.reshape(shape), yi.reshape(shape)


@functools.partial(jax.jit, static_argnames=("precision",))
def _fftn_fused(x, precision):
    """fftn over ALL axes: stage 1 T = X @ F_cols, stage 2 Z = F_rows @ T."""
    shape = x.shape
    nd = x.ndim
    ncol = min(3, nd)
    col_dims = shape[nd - ncol:]
    row_dims = shape[:nd - ncol]
    N = int(np.prod(col_dims))
    M = int(np.prod(row_dims)) if row_dims else 1
    x2 = x.reshape(M, N).astype(jnp.float32)
    # TODO(synk): split path assumes a real input (matches torch usage here);
    # complex inputs would need a 3rd/4th matmul in stage 1.

    f_dtype = jnp.bfloat16 if _USE_BF16_F else jnp.float32
    if _USE_BF16_F:
        x2 = x2.astype(jnp.bfloat16)
        precision = jax.lax.Precision.DEFAULT

    vmem = _vmem_limit_bytes()
    cfr, cfi = _kron_dft(col_dims, inverse=False, dtype=f_dtype)   # (N, N)

    # ---- Stage 1: column DFT of the real input (row + column tiled) -------- #
    tm, tn = _choose_merge_tiles(M, N, vmem)
    grid1 = (pl.cdiv(N, tn), pl.cdiv(M, tm))
    row_spec = pl.BlockSpec((tm, N), lambda j, i: (i, 0))
    cmat_spec = pl.BlockSpec((N, tn), lambda j, i: (0, j))
    t_spec = pl.BlockSpec((tm, tn), lambda j, i: (i, j))

    tr, ti = pl.pallas_call(
        functools.partial(_colfft_kernel, precision=precision),
        out_shape=(jax.ShapeDtypeStruct((M, N), jnp.float32),
                   jax.ShapeDtypeStruct((M, N), jnp.float32)),
        grid=grid1,
        in_specs=[row_spec, cmat_spec, cmat_spec],
        out_specs=(t_spec, t_spec),
        compiler_params=pltpu.CompilerParams(
            dimension_semantics=("parallel", "parallel"),
            vmem_limit_bytes=vmem),
    )(x2, cfr, cfi)

    if M == 1:                      # no leading dims: column DFT is the answer
        return tr.reshape(shape), ti.reshape(shape)

    # ---- Stage 2: row DFT, tiled over output rows/cols + K-reduction over M - #
    rfr, rfi = _kron_dft(row_dims, inverse=False, dtype=jnp.float32)   # (M, M)
    tm2, tn2, tk = _choose_rowdft_tiles(M, N, vmem)
    grid2 = (pl.cdiv(M, tm2), pl.cdiv(N, tn2), pl.cdiv(M, tk))
    r_spec = pl.BlockSpec((tm2, tk), lambda i, j, k: (i, k))
    tt_spec = pl.BlockSpec((tk, tn2), lambda i, j, k: (k, j))
    z_spec = pl.BlockSpec((tm2, tn2), lambda i, j, k: (i, j))

    zr, zi = pl.pallas_call(
        functools.partial(_rowfft_kernel, precision=precision),
        out_shape=(jax.ShapeDtypeStruct((M, N), jnp.float32),
                   jax.ShapeDtypeStruct((M, N), jnp.float32)),
        grid=grid2,
        in_specs=[r_spec, r_spec, tt_spec, tt_spec],
        out_specs=(z_spec, z_spec),
        scratch_shapes=[pltpu.VMEM((tm2, tn2), jnp.float32),
                        pltpu.VMEM((tm2, tn2), jnp.float32)],
        compiler_params=pltpu.CompilerParams(
            dimension_semantics=("parallel", "parallel", "arbitrary"),
            vmem_limit_bytes=vmem),
    )(rfr, rfi, tr, ti)
    return zr.reshape(shape), zi.reshape(shape)


# ---------------------------- Module equivalent ------------------------------- #

def fourier_split(x):
    """torch.fft.fftn(x) over ALL dims; returns (real, imag)."""
    return _fftn_fused(jnp.asarray(x, jnp.float32),
                       precision=_matmul_precision())


def fourier_merge(inputs):
    """torch.fft.ifftn(real + i*imag, dim=(-3,-2,-1)); returns complex64."""
    real, imag = inputs[0], inputs[1]
    yr, yi = _ifft3_fused(jnp.asarray(real, jnp.float32),
                          jnp.asarray(imag, jnp.float32),
                          precision=_matmul_precision())
    return jax.lax.complex(yr, yi)


def fourier3d_custom(inputs, split=False):
    """Forward pass of Fourier3dCustom (split=False by default, as in torch)."""
    return fourier_split(inputs) if split else fourier_merge(inputs)


# ------------------------------------ main ------------------------------------ #

if __name__ == "__main__":
    key = jax.random.PRNGKey(0)
    kr, ki = jax.random.split(key)
    shape = (2, 4, 8, 8, 8)   # (B, C, D, H, W)
    real = jax.random.normal(kr, shape, jnp.float32)
    imag = jax.random.normal(ki, shape, jnp.float32)

    # Default path (split=False): merge -> 3-D inverse FFT over last 3 dims.
    merged = fourier3d_custom((real, imag), split=False)
    merged = jax.block_until_ready(merged)
    ref_m = jnp.fft.ifftn(jax.lax.complex(real, imag), axes=(-3, -2, -1))
    scale_m = float(jnp.max(jnp.abs(ref_m))) + 1.0
    err_m = float(jnp.max(jnp.abs(merged - ref_m)))
    assert err_m < 1e-3 * scale_m, f"merge error too large: {err_m}"

    # split=True path: forward FFT of a real tensor over all dims -> (real, imag).
    sr, si = fourier3d_custom(real, split=True)
    jax.block_until_ready((sr, si))
    ref_s = jnp.fft.fftn(real)
    scale_s = float(jnp.max(jnp.abs(ref_s))) + 1.0
    err_s = max(float(jnp.max(jnp.abs(sr - ref_s.real))),
                float(jnp.max(jnp.abs(si - ref_s.imag))))
    assert err_s < 1e-3 * scale_s, f"split error too large: {err_s}"

    print("KERNEL_OK")
</pallas_src>

<mosaic_0001>
module attributes {stable_mosaic.version = 11 : i64} {
  func.func @_merge_kernel(%arg0: i32, %arg1: i32, %arg2: memref<8x512xf32, #tpu.memory_space<vmem>>, %arg3: memref<8x512xf32, #tpu.memory_space<vmem>>, %arg4: memref<512x128xf32, #tpu.memory_space<vmem>>, %arg5: memref<512x128xf32, #tpu.memory_space<vmem>>, %arg6: memref<8x128xf32, #tpu.memory_space<vmem>>, %arg7: memref<8x128xf32, #tpu.memory_space<vmem>>) attributes {dimension_semantics = [#tpu.dimension_semantics<parallel>, #tpu.dimension_semantics<parallel>], iteration_bounds = array<i64: 4, 1>, scalar_prefetch = 0 : i64, scratch_operands = 0 : i64, tpu.core_type = #tpu.core_type<tc>, window_params = [{transform_indices = @transform_0, window_bounds = array<i64: 8, 512>}, {transform_indices = @transform_1, window_bounds = array<i64: 8, 512>}, {transform_indices = @transform_2, window_bounds = array<i64: 512, 128>}, {transform_indices = @transform_3, window_bounds = array<i64: 512, 128>}, {transform_indices = @transform_4, window_bounds = array<i64: 8, 128>}, {transform_indices = @transform_5, window_bounds = array<i64: 8, 128>}]} {
    %c0 = arith.constant 0 : index
    %c0_0 = arith.constant 0 : index
    %0 = vector.load %arg2[%c0, %c0_0] : memref<8x512xf32, #tpu.memory_space<vmem>>, vector<8x512xf32>
    %c0_1 = arith.constant 0 : index
    %c0_2 = arith.constant 0 : index
    %1 = vector.load %arg3[%c0_1, %c0_2] : memref<8x512xf32, #tpu.memory_space<vmem>>, vector<8x512xf32>
    %c0_3 = arith.constant 0 : index
    %c0_4 = arith.constant 0 : index
    %2 = vector.load %arg4[%c0_3, %c0_4] : memref<512x128xf32, #tpu.memory_space<vmem>>, vector<512x128xf32>
    %c0_5 = arith.constant 0 : index
    %c0_6 = arith.constant 0 : index
    %3 = vector.load %arg5[%c0_5, %c0_6] : memref<512x128xf32, #tpu.memory_space<vmem>>, vector<512x128xf32>
    %4 = arith.addf %0, %1 : vector<8x512xf32>
    %cst = arith.constant dense<0.000000e+00> : vector<8x128xf32>
    %5 = tpu.matmul %4, %2, %cst {dimension_numbers = #tpu.dot_dimension_numbers<[1], [0], [0], [1], [0, 0, 1, 1], [], []>, precision = #tpu.contract_precision<fp32>} : vector<8x512xf32>, vector<512x128xf32>, vector<8x128xf32> -> vector<8x128xf32>
    %6 = arith.subf %3, %2 : vector<512x128xf32>
    %cst_7 = arith.constant dense<0.000000e+00> : vector<8x128xf32>
    %7 = tpu.matmul %0, %6, %cst_7 {dimension_numbers = #tpu.dot_dimension_numbers<[1], [0], [0], [1], [0, 0, 1, 1], [], []>, precision = #tpu.contract_precision<fp32>} : vector<8x512xf32>, vector<512x128xf32>, vector<8x128xf32> -> vector<8x128xf32>
    %8 = arith.addf %2, %3 : vector<512x128xf32>
    %cst_8 = arith.constant dense<0.000000e+00> : vector<8x128xf32>
    %9 = tpu.matmul %1, %8, %cst_8 {dimension_numbers = #tpu.dot_dimension_numbers<[1], [0], [0], [1], [0, 0, 1, 1], [], []>, precision = #tpu.contract_precision<fp32>} : vector<8x512xf32>, vector<512x128xf32>, vector<8x128xf32> -> vector<8x128xf32>
    %10 = arith.subf %5, %9 : vector<8x128xf32>
    %c0_9 = arith.constant 0 : index
    %c0_10 = arith.constant 0 : index
    %11 = vector.load %arg6[%c0_9, %c0_10] : memref<8x128xf32, #tpu.memory_space<vmem>>, vector<8x128xf32>
    tpu.vector_store %arg6[%c0_9, %c0_10], %10 {strides = array<i32>} : memref<8x128xf32, #tpu.memory_space<vmem>>, vector<8x128xf32>,
    %12 = arith.addf %5, %7 : vector<8x128xf32>
    %c0_11 = arith.constant 0 : index
    %c0_12 = arith.constant 0 : index
    %13 = vector.load %arg7[%c0_11, %c0_12] : memref<8x128xf32, #tpu.memory_space<vmem>>, vector<8x128xf32>
    tpu.vector_store %arg7[%c0_11, %c0_12], %12 {strides = array<i32>} : memref<8x128xf32, #tpu.memory_space<vmem>>, vector<8x128xf32>,
    return
  }
  func.func @transform_0(%arg0: i32, %arg1: i32) -> (i32, i32) {
    %c0_i32 = arith.constant 0 : i32
    %c0_i32_0 = arith.constant 0 : i32
    return %arg1, %c0_i32 : i32, i32
  }
  func.func @transform_1(%arg0: i32, %arg1: i32) -> (i32, i32) {
    %c0_i32 = arith.constant 0 : i32
    %c0_i32_0 = arith.constant 0 : i32
    return %arg1, %c0_i32 : i32, i32
  }
  func.func @transform_2(%arg0: i32, %arg1: i32) -> (i32, i32) {
    %c0_i32 = arith.constant 0 : i32
    %c0_i32_0 = arith.constant 0 : i32
    return %c0_i32, %arg0 : i32, i32
  }
  func.func @transform_3(%arg0: i32, %arg1: i32) -> (i32, i32) {
    %c0_i32 = arith.constant 0 : i32
    %c0_i32_0 = arith.constant 0 : i32
    return %c0_i32, %arg0 : i32, i32
  }
  func.func @transform_4(%arg0: i32, %arg1: i32) -> (i32, i32) {
    %c0_i32 = arith.constant 0 : i32
    return %arg1, %arg0 : i32, i32
  }
  func.func @transform_5(%arg0: i32, %arg1: i32) -> (i32, i32) {
    %c0_i32 = arith.constant 0 : i32
    return %arg1, %arg0 : i32, i32
  }
}

</mosaic_0001>

<bundles_post_ra>
// kernel: _ifft3_fused.1
= control target key start
LH: loop header
LB: loop body
LE: loop exit
PB: predicated region body
PF: predicated region fallthrough
CT: control target
= control target key end

     0   :  { %11 = vsyncpa [#allocation3], 0  ;;  %s12729_s0 = inlined_call_operand.vmem [shape: f32[8,512], index: 0, kind: input, shape index: {}]   ;;  %s12730_s1 = inlined_call_operand.vmem [shape: f32[8,512], index: 1, kind: input, shape index: {}]   ;;  %s12731_s2 = inlined_call_operand.hbm [shape: f32[512,512], index: 2, kind: input, shape index: {}]   ;;  %s12732_s3 = inlined_call_operand.hbm [shape: f32[512,512], index: 3, kind: input, shape index: {}]   ;;  %s12733_s4 = inlined_call_operand.vmem [shape: f32[8,512], index: 4, kind: output, shape index: {0}]   ;;  %s12734_s5 = inlined_call_operand.vmem [shape: f32[8,512], index: 5, kind: output, shape index: {1}]  }
   0x1   :  { %13 = vsyncpa [#allocation3 + $0x1], 0 }
   0x2   :  { %14 = vsyncpa [#allocation5], 0 }
   0x3   :  { %16 = vsyncpa [#allocation5 + $0x1], 0  ;;  %s8840_s18 = smov 0   ;;  %s8842_s19 = smov 0  }
   0x4   :  { %s8844_s20 = smov 0   ;;  %s8846_s21 = smov 0  }
   0x5   :  { %s8848_s22 = smov 0   ;;  %s8850_s23 = smov 0  }
   0x6 LB: > { %s5997_s24 = sadd.s32 4294967295, %s8803_s23   ;;  %s34_s25 = sadd.s32 1, %s8799_s22  ;;  %s8803_s23 = sphi %s8850_s23, %s22_s23   ;;  %s8799_s22 = sphi %s8848_s22, %s13654_s22   ;;  %s8795_s21 = sphi %s8846_s21, %s13653_s21   ;;  %s8791_s20 = sphi %s8844_s20, %s13652_s20   ;;  %s8787_s19 = sphi %s8842_s19, %s13651_s19   ;;  %s8783_s18 = sphi %s8840_s18, %s13650_s18  }
   0x7   : > { %p36_p0 = scmp.ge.s32.totalorder %s34_s25, 4  ;;  %s93_s26 = sadd.s32 1, %s8791_s20 }
   0x8   : > { %p100_p1 = scmp.ne.s32.totalorder %s8791_s20, %s8787_s19  ;;  %p101_p2 = scmp.eq.s32.totalorder %s8803_s23, 0 }
   0x9   : > { %s13656_s25 = smov (%p36_p0, %s34_s25), 0  ;;  %p106_p4 = scmp.ne.s32.totalorder %s8787_s19, %s8783_s18 }
   0xa   : > { %p8876_p3 = por %p101_p2, %p100_p1  ;;  %s90_s28 = ssub.s32 %s8799_s22, %s13656_s25 }
   0xb   : > { %p107_p5 = scmp.eq.s32.totalorder %s5997_s24, 0  ;;  %p91_p6 = scmp.eq.s32.totalorder %s90_s28, 0 }
   0xc   : > { %p8437_p8 = scmp.lt.s32.totalorder %s8803_s23, 4  ;;  %s8892_s6 = sand.u32 1, %s8791_s20  }
   0xd   : > { %p8883_p7 = por %p107_p5, %p106_p4  ;;  %s6004_s7 = sshll.u32 %s8799_s22, 7 }
   0xe   : > { %s8889_s30 = scalar_select %p91_p6, %s8791_s20, %s93_s26  }
   0xf   : > { %s13056_s29 = scalar_select %p8883_p7, 1, 0 }
  0x10   : > { %s6003_s8 = sshll.u32 %s8892_s6, 9  ;;  %s8901_s11 = scalar_lea.hbm %s12731_s2, %s6004_s7 }
  0x11   : > { %s232_s12 = scalar_lea.vmem [#allocation2], %s6003_s8  ;;  %p8907_p9 = pnand %p8437_p8, %p8876_p3 }
  0x12   : > { %s238_s13 = sshll.u32 %s232_s12, 4  ;;  %s229_s15 = scalar_lea.sflag [#allocation3], %s8892_s6  ;;  %s8911_s13 = int_to_ptr.vmem [resolvable:$true] %s238_s13 }
  0x13   : > { %s8689_s16 = scalar_lea.hbm %s8901_s11, 8192  ;;  %p8691_p12 = pneg %p8907_p9 }
  0x14   : > { %p8690_p11 = scmp.ne.s32.totalorder %s8901_s11, %s8689_s16  ;;  %s8694_s24 = scalar_lea.hbm %s12731_s2, 32768 }
  0x15   : > { %p8695_p1 = scmp.lt.u32.totalorder %s8901_s11, %s12731_s2  ;;  %p8696_p2 = scmp.lt.u32.totalorder %s8694_s24, %s8689_s16 }
  0x16   : > { %p8692_p13 = pnand %p8691_p12, %p8690_p11  ;;  %p8698_p4 = scmp.lt.u32.totalorder %s8689_s16, %s8901_s11 }
  0x17   : > { %p8697_p3 = por %p8696_p2, %p8695_p1 }
  0x18   : > { %p8693_p0 = pneg %p8692_p13 }
  0x19   : > { %p8699_p5 = por %p8698_p4, %p8697_p3 }
  0x1b   : > { %p8700_p6 = pnand %p8699_p5, %p8693_p0 }
  0x1d   : > { %8703 = shalt.err (!%p8700_p6)
}
  0x1e   : > { %s8704_s28 = scalar_lea.vmem %s8911_s13, 8192  ;;  %s8805_s9 = smov [#allocation2]  }
  0x1f   : > { %p8705_p8 = scmp.ne.s32.totalorder %s8911_s13, %s8704_s28  ;;  %s8709_s10 = sshll.u32 %s8805_s9, 4  ;;  %s8710_s10 = int_to_ptr.vmem [resolvable:$false] %s8709_s10 }
  0x20   : > { %s8711_s12 = scalar_lea.vmem %s8710_s10, 16384  ;;  %p8712_p10 = scmp.lt.s32.totalorder %s8911_s13, %s8710_s10 }
  0x21   : > { %p8707_p11 = pnand %p8705_p8, %p8691_p12  ;;  %p8713_p1 = scmp.lt.s32.totalorder %s8711_s12, %s8704_s28 }
  0x23   : > { %p8708_p13 = pneg %p8707_p11  ;;  %p8714_p2 = por %p8713_p1, %p8712_p10 }
  0x25   : > { %p8715_p3 = pnand %p8714_p2, %p8708_p13 }
  0x27   : > { %8718 = shalt.err (!%p8715_p3)
}
  0x28   : > { %s8806_s16 = smov 512   ;;  %s8807_s17 = smov 128  }
  0x29   : > { %s8808_s18 = smov 8   ;;  %p266_p10 = scmp.lt.s32.totalorder %s8803_s23, 5 }
  0x2a   : > { %8433 = dma.hbm_to_vmem [thread:$0]  (!%p8907_p9), %s8901_s11, 8192, %s8911_s13, %s229_s15, %s8806_s16, %s8807_s17, %s8808_s18  }
  0x2b   : > { %s8951_s27 = scalar_lea.hbm %s12732_s3, %s6004_s7  ;;  %p13058_p0 = scmp.ge.s32.totalorder %s8803_s23, 1 }
  0x2c   : > { %s252_s9 = scalar_lea.vmem [#allocation4], %s6003_s8  ;;  %s249_s11 = scalar_lea.sflag [#allocation5], %s8892_s6 }
  0x2d   : > { %p8955_p4 = pnand %p13058_p0, %p266_p10  ;;  %s258_s10 = sshll.u32 %s252_s9, 4  ;;  %s8961_s10 = int_to_ptr.vmem [resolvable:$true] %s258_s10 }
  0x2e   : > { %s8719_s13 = scalar_lea.hbm %s8951_s27, 8192  ;;  %s8724_s12 = scalar_lea.hbm %s12732_s3, 32768 }
  0x2f   : > { %p8720_p5 = scmp.ne.s32.totalorder %s8951_s27, %s8719_s13  ;;  %p8725_p11 = scmp.lt.u32.totalorder %s8951_s27, %s12732_s3 }
  0x30   : > { %p8726_p13 = scmp.lt.u32.totalorder %s8724_s12, %s8719_s13  ;;  %p8728_p2 = scmp.lt.u32.totalorder %s8719_s13, %s8951_s27 }
  0x31   : > { %p8722_p6 = pnand %p8720_p5, %p8691_p12 }
  0x32   : > { %p8727_p1 = por %p8726_p13, %p8725_p11 }
  0x33   : > { %p8723_p8 = pneg %p8722_p6 }
  0x34   : > { %p8729_p3 = por %p8728_p2, %p8727_p1 }
  0x36   : > { %p8730_p10 = pnand %p8729_p3, %p8723_p8 }
  0x38   : > { %8733 = shalt.err (!%p8730_p10)
}
  0x39   : > { %s8734_s8 = scalar_lea.vmem %s8961_s10, 8192  ;;  %s8809_s9 = smov [#allocation4]  }
  0x3a   : > { %p8735_p0 = scmp.ne.s32.totalorder %s8961_s10, %s8734_s8  ;;  %s8739_s7 = sshll.u32 %s8809_s9, 4  ;;  %s8740_s7 = int_to_ptr.vmem [resolvable:$false] %s8739_s7 }
  0x3b   : > { %s8741_s15 = scalar_lea.vmem %s8740_s7, 16384  ;;  %p8742_p7 = scmp.lt.s32.totalorder %s8961_s10, %s8740_s7 }
  0x3c   : > { %p8737_p5 = pnand %p8735_p0, %p8691_p12  ;;  %p8743_p11 = scmp.lt.s32.totalorder %s8741_s15, %s8734_s8 }
  0x3e   : > { %p8738_p6 = pneg %p8737_p5  ;;  %p8744_p13 = por %p8743_p11, %p8742_p7 }
  0x40   : > { %p8745_p1 = pnand %p8744_p13, %p8738_p6 }
  0x42   : > { %8748 = shalt.err (!%p8745_p1)
}
  0x43   : > { %8436 = dma.hbm_to_vmem [thread:$0]  (!%p8907_p9), %s8951_s27, 8192, %s8961_s10, %s249_s11, %s8806_s16, %s8807_s17, %s8808_s18  }
  0x44   : > { %270 = sbr.rel (%p8955_p4) target bundleno = 927 (0x39f), region = 36 }
  0x4b   : > { %s272_s13 = sand.u32 1, %s8787_s19   ;;  %p13060_p7 = scmp.ne.s32.totalorder %s13056_s29, 0 }
  0x4c   : > { %s6008_s12 = sshll.u32 %s272_s13, 9  ;;  %s273_s24 = scalar_lea.sflag [#allocation3], %s272_s13 }
  0x4d   : > { %s8995_s26 = scalar_lea.vmem [#allocation2], %s6008_s12 }
  0x4e   : > { %8774 = dma.done.wait (%p13060_p7), %s273_s24, 8192  }
  0x4f   : > { %8776 = vsyncadd (%p13060_p7), %s273_s24, 4294959104  ;;  %s282_s6 = scalar_lea.sflag [#allocation5], %s272_s13  ;;  %s9001_s14 = scalar_lea.vmem [#allocation4], %s6008_s12 }
  0x50   : > { %8778 = dma.done.wait (%p13060_p7), %s282_s6, 8192  }
  0x51   : > { %8780 = vsyncadd (%p13060_p7), %s282_s6, 4294959104  ;;  %v388_v0 = vld [vmem:[%s8995_s26 + $0x80] sm:$0xff]  ;;  %v389_v1 = vld [vmem:[%s8995_s26 + $0x88] sm:$0xff]  ;;  %p350_p9 = scmp.lt.s32.totalorder %s8795_s21, 3 }
  0x52   : > { %v372_v2 = vld [vmem:[%s8995_s26] sm:$0xff]  ;;  %v553_v3 = vand.u32 4294901760, %v388_v0  ;;  %v556_v4 = vand.u32 4294901760, %v389_v1  ;;  %v373_v5 = vld [vmem:[%s8995_s26 + $0x8] sm:$0xff]  ;;  %v390_v7 = vld [vmem:[%s8995_s26 + $0x90] sm:$0xff] }
  0x53   : > { %v505_v6 = vand.u32 4294901760, %v372_v2  ;;  %v391_v8 = vld [vmem:[%s8995_s26 + $0x98] sm:$0xff]  ;;  %v508_v9 = vand.u32 4294901760, %v373_v5  ;;  %v559_v10 = vand.u32 4294901760, %v390_v7  ;;  %v374_v12 = vld [vmem:[%s8995_s26 + $0x10] sm:$0xff]  ;;  %v392_v18 = vld [vmem:[%s8995_s26 + $0xa0] sm:$0xff] }
  0x54   : > { %v562_v11 = vand.u32 4294901760, %v391_v8  ;;  %v375_v13 = vld [vmem:[%s8995_s26 + $0x18] sm:$0xff]  ;;  %v9015_v14 = vpack.c.bf16 %v556_v4, %v553_v3  ;;  %v511_v16 = vand.u32 4294901760, %v374_v12  ;;  %v393_v19 = vld [vmem:[%s8995_s26 + $0xa8] sm:$0xff]  ;;  %v376_v23 = vld [vmem:[%s8995_s26 + $0x20] sm:$0xff]  ;;  %v565_v28 = vand.u32 4294901760, %v392_v18 }
  0x55   : > { %v9017_v15 = vsub.f32 %v372_v2, %v505_v6  ;;  %v514_v17 = vand.u32 4294901760, %v375_v13  ;;  %v9021_v20 = vpack.c.bf16 %v508_v9, %v505_v6  ;;  %v9023_v21 = vsub.f32 %v373_v5, %v508_v9  ;;  %v377_v24 = vld [vmem:[%s8995_s26 + $0x28] sm:$0xff]  ;;  %v394_v36 = vld [vmem:[%s8995_s26 + $0xb0] sm:$0xff]  ;;  %v395_v39 = vld [vmem:[%s8995_s26 + $0xb8] sm:$0xff]  ;;  %s13658_s21 = smov (!%p350_p9, %s8795_s21), 3 }
  0x56   : > { %v9025_v22 = vpack.c.bf16 %v562_v11, %v559_v10  ;;  %7275 = vmatprep.subr.bf16.mxu0 %v9015_v14  ;;  %v9030_v25 = vsub.f32 %v390_v7, %v559_v10  ;;  %v9032_v26 = vsub.f32 %v391_v8, %v562_v11  ;;  %v568_v29 = vand.u32 4294901760, %v393_v19  ;;  %v378_v52 = vld [vmem:[%s8995_s26 + $0x30] sm:$0xff]  ;;  %v379_v53 = vld [vmem:[%s8995_s26 + $0x38] sm:$0xff]  ;;  %v396_v2 = vld [vmem:[%s8995_s26 + $0xc0] sm:$0xff] }
  0x57   : > { %v9034_v27 = vpack.c.bf16 %v514_v17, %v511_v16  ;;  %7277 = vmatpush3.bf16.msra.mxu0 %v9021_v20  ;;  %v9037_v30 = vsub.f32 %v388_v0, %v553_v3  ;;  %v9039_v31 = vsub.f32 %v389_v1, %v556_v4  ;;  %v517_v32 = vand.u32 4294901760, %v376_v23  ;;  %v397_v3 = vld [vmem:[%s8995_s26 + $0xc8] sm:$0xff]  ;;  %v380_v8 = vld [vmem:[%s8995_s26 + $0x40] sm:$0xff] }
  0x58   : > { %7279 = vmatprep.subr.bf16.mxu0 %v9025_v22  ;;  %v520_v33 = vand.u32 4294901760, %v377_v24  ;;  %v12750_v34 = vand.u32 4294901760, %v9017_v15  ;;  %v12748_v35 = vand.u32 4294901760, %v9023_v21  ;;  %v9045_v37 = vpack.c.bf16 %v568_v29, %v565_v28 }
  0x59   : > { %v12753_v38 = vand.u32 4294901760, %v9037_v30  ;;  %v9049_v40 = vsub.f32 %v374_v12, %v511_v16  ;;  %v9051_v41 = vsub.f32 %v375_v13, %v514_v17  ;;  %v12751_v42 = vand.u32 4294901760, %v9039_v31 }
  0x5a   : > { %v9054_v43 = vpack.c.bf16 %v520_v33, %v517_v32  ;;  %v620_v45 = vsub.f32 %v9017_v15, %v12750_v34  ;;  %v627_v46 = vsub.f32 %v9023_v21, %v12748_v35  ;;  %v571_v47 = vand.u32 4294901760, %v394_v36  ;;  %v402_v35 = vld [vmem:[%s8995_s26 + $0xf0] sm:$0xff] }
  0x5b   : > { %7281 = vmatpush3.bf16.msra.mxu0 %v9034_v27  ;;  %v732_v44 = vsub.f32 %v9037_v30, %v12753_v38  ;;  %v739_v48 = vsub.f32 %v9039_v31, %v12751_v42  ;;  %v574_v49 = vand.u32 4294901760, %v395_v39  ;;  %v12747_v50 = vand.u32 4294901760, %v9030_v25 }
  0x5c   : > { %7283 = vmatprep.subr.bf16.mxu0 %v9045_v37  ;;  %v12746_v51 = vand.u32 4294901760, %v9032_v26  ;;  %v9074_v54 = vsub.f32 %v392_v18, %v565_v28  ;;  %v621_v56 = vand.u32 4294901760, %v620_v45  ;;  %v628_v57 = vand.u32 4294901760, %v627_v46 }
  0x5d   : > { %v733_v55 = vand.u32 4294901760, %v732_v44  ;;  %v9076_v58 = vsub.f32 %v393_v19, %v568_v29  ;;  %v740_v59 = vand.u32 4294901760, %v739_v48  ;;  %v9078_v60 = vpack.c.bf16 %v574_v49, %v571_v47  ;;  %v381_v19 = vld [vmem:[%s8995_s26 + $0x48] sm:$0xff] }
  0x5e   : > { %v746_v61 = vsub.f32 %v9030_v25, %v12747_v50  ;;  %v7308_v62 = vpack.c.bf16 %v628_v57, %v621_v56  ;;  %v753_v63 = vsub.f32 %v9032_v26, %v12746_v51  ;;  %v523_v0 = vand.u32 4294901760, %v378_v52  ;;  %v398_v57 = vld [vmem:[%s8995_s26 + $0xd0] sm:$0xff] }
  0x5f   : > { %7285 = vmatpush3.bf16.msra.mxu0 %v9054_v43  ;;  %v526_v1 = vand.u32 4294901760, %v379_v53  ;;  %v7306_v4 = vpack.c.bf16 %v740_v59, %v733_v55  ;;  %v12744_v6 = vand.u32 4294901760, %v9049_v40  ;;  %v12742_v7 = vand.u32 4294901760, %v9051_v41 }
  0x60   : > { %7287 = vmatprep.subr.bf16.mxu0 %v9078_v60  ;;  %v747_v5 = vand.u32 4294901760, %v746_v61  ;;  %v9093_v9 = vsub.f32 %v376_v23, %v517_v32  ;;  %v9095_v10 = vsub.f32 %v377_v24, %v520_v33  ;;  %v754_v11 = vand.u32 4294901760, %v753_v63  ;;  %v382_v61 = vld [vmem:[%s8995_s26 + $0x50] sm:$0xff] }
  0x61   : > { %v9097_v12 = vpack.c.bf16 %v526_v1, %v523_v0  ;;  %7307 = vmatprep.subr.bf16.mxu1 %v7306_v4  ;;  %v634_v13 = vsub.f32 %v9049_v40, %v12744_v6  ;;  %v641_v16 = vsub.f32 %v9051_v41, %v12742_v7  ;;  %v577_v17 = vand.u32 4294901760, %v396_v2  ;;  %v385_v7 = vld [vmem:[%s8995_s26 + $0x68] sm:$0xff] }
  0x62   : > { %v580_v18 = vand.u32 4294901760, %v397_v3  ;;  %7309 = vmatpush3.bf16.msra.mxu1 %v7308_v62  ;;  %v7310_v23 = vpack.c.bf16 %v754_v11, %v747_v5  ;;  %v12740_v24 = vand.u32 4294901760, %v9074_v54  ;;  %v12738_v28 = vand.u32 4294901760, %v9076_v58 }
  0x63   : > { %7289 = vmatpush3.bf16.msra.mxu0 %v9097_v12  ;;  %v529_v29 = vand.u32 4294901760, %v380_v8  ;;  %v9109_v32 = vsub.f32 %v394_v36, %v571_v47  ;;  %v635_v33 = vand.u32 4294901760, %v634_v13  ;;  %v642_v44 = vand.u32 4294901760, %v641_v16  ;;  %v399_v36 = vld [vmem:[%s8995_s26 + $0xd8] sm:$0xff] }
  0x64   : > { %v9111_v45 = vpack.c.bf16 %v580_v18, %v577_v17  ;;  %v9113_v46 = vsub.f32 %v395_v39, %v574_v49  ;;  %7311 = vmatprep.subr.bf16.mxu1 %v7310_v23  ;;  %v760_v48 = vsub.f32 %v9074_v54, %v12740_v24  ;;  %v767_v55 = vsub.f32 %v9076_v58, %v12738_v28  ;;  %v383_v16 = vld [vmem:[%s8995_s26 + $0x58] sm:$0xff]  ;;  %v400_v28 = vld [vmem:[%s8995_s26 + $0xe0] sm:$0xff] }
  0x65   : > { %v532_v56 = vand.u32 4294901760, %v381_v19  ;;  %v9123_v47 = vsub.f32 %v378_v52, %v523_v0  ;;  %v7312_v59 = vpack.c.bf16 %v642_v44, %v635_v33  ;;  %v12737_v39 = vand.u32 4294901760, %v9093_v9 }
  0x66   : > { %7291 = vmatprep.subr.bf16.mxu0 %v9111_v45  ;;  %v12736_v49 = vand.u32 4294901760, %v9095_v10  ;;  %v9129_v62 = vsub.f32 %v379_v53, %v526_v1  ;;  %v761_v63 = vand.u32 4294901760, %v760_v48  ;;  %v768_v4 = vand.u32 4294901760, %v767_v55 }
  0x67   : > { %v9131_v5 = vpack.c.bf16 %v532_v56, %v529_v29  ;;  %7313 = vmatpush3.bf16.msra.mxu1 %v7312_v59  ;;  %v648_v52 = vsub.f32 %v9093_v9, %v12737_v39  ;;  %v583_v11 = vand.u32 4294901760, %v398_v57  ;;  %v586_v13 = vand.u32 4294901760, %v399_v36 }
  0x68   : > { %v655_v0 = vsub.f32 %v9095_v10, %v12736_v49  ;;  %v7314_v53 = vpack.c.bf16 %v768_v4, %v761_v63  ;;  %v12739_v1 = vand.u32 4294901760, %v9109_v32  ;;  %v12741_v23 = vand.u32 4294901760, %v9113_v46 }
  0x69   : > { %7293 = vmatpush3.bf16.msra.mxu0 %v9131_v5  ;;  %v535_v33 = vand.u32 4294901760, %v382_v61  ;;  %v9143_v44 = vsub.f32 %v396_v2, %v577_v17  ;;  %v649_v48 = vand.u32 4294901760, %v648_v52  ;;  %v9145_v59 = vpack.c.bf16 %v586_v13, %v583_v11  ;;  %v401_v2 = vld [vmem:[%s8995_s26 + $0xe8] sm:$0xff] }
  0x6a   : > { %v656_v55 = vand.u32 4294901760, %v655_v0  ;;  %v9147_v49 = vsub.f32 %v397_v3, %v580_v18  ;;  %7315 = vmatprep.subr.bf16.mxu1 %v7314_v53  ;;  %v774_v63 = vsub.f32 %v9109_v32, %v12739_v1  ;;  %v781_v4 = vsub.f32 %v9113_v46, %v12741_v23  ;;  %v9163_v0 = vld [vmem:[%s8995_s26 + $0x60] sm:$0xff] }
  0x6b   : > { %13061 = vst [vmem:[#allocation8_spill] sm:$0xff] %v9145_v59  ;;  %v538_v39 = vand.u32 4294901760, %v383_v16  ;;  %v9157_v17 = vsub.f32 %v380_v8, %v529_v29  ;;  %7295 = vmatprep.subr.bf16.mxu0 %v9145_v59  ;;  %v12743_v3 = vand.u32 4294901760, %v9123_v47  ;;  %v12745_v18 = vand.u32 4294901760, %v9129_v62 }
  0x6c   : > { %v7316_v52 = vpack.c.bf16 %v656_v55, %v649_v48  ;;  %v9165_v53 = vsub.f32 %v381_v19, %v532_v56  ;;  %v775_v1 = vand.u32 4294901760, %v774_v63  ;;  %v782_v24 = vand.u32 4294901760, %v781_v4 }
  0x6d   : > { %v9167_v23 = vpack.c.bf16 %v538_v39, %v535_v33  ;;  %v662_v8 = vsub.f32 %v9123_v47, %v12743_v3  ;;  %v669_v29 = vsub.f32 %v9129_v62, %v12745_v18  ;;  %v589_v48 = vand.u32 4294901760, %v400_v28 }
  0x6e   : > { %7317 = vmatpush3.bf16.msra.mxu1 %v7316_v52  ;;  %v592_v55 = vand.u32 4294901760, %v401_v2  ;;  %v7318_v19 = vpack.c.bf16 %v782_v24, %v775_v1  ;;  %v12749_v56 = vand.u32 4294901760, %v9143_v44  ;;  %v12752_v63 = vand.u32 4294901760, %v9147_v49 }
  0x6f   : > { %13062 = vst [vmem:[#allocation9_spill] sm:$0xff] %v9167_v23  ;;  %7297 = vmatpush3.bf16.msra.mxu0 %v9167_v23  ;;  %v541_v4 = vand.u32 4294901760, %v9163_v0  ;;  %v9180_v52 = vsub.f32 %v398_v57, %v583_v11  ;;  %v663_v3 = vand.u32 4294901760, %v662_v8  ;;  %v670_v6 = vand.u32 4294901760, %v669_v29  ;;  %v403_v57 = vld [vmem:[%s8995_s26 + $0xf8] sm:$0xff]  ;;  %v386_v29 = vld [vmem:[%s8995_s26 + $0x70] sm:$0xff] }
  0x70   : > { %v9182_v18 = vpack.c.bf16 %v592_v55, %v589_v48  ;;  %v9184_v51 = vsub.f32 %v399_v36, %v586_v13  ;;  %7319 = vmatprep.subr.bf16.mxu1 %v7318_v19  ;;  %v788_v24 = vsub.f32 %v9143_v44, %v12749_v56  ;;  %v795_v1 = vsub.f32 %v9147_v49, %v12752_v63  ;;  %v387_v63 = vld [vmem:[%s8995_s26 + $0x78] sm:$0xff] }
  0x71   : > { %v544_v50 = vand.u32 4294901760, %v385_v7  ;;  %v9194_v11 = vsub.f32 %v382_v61, %v535_v33  ;;  %v7320_v8 = vpack.c.bf16 %v670_v6, %v663_v3  ;;  %v12756_v36 = vand.u32 4294901760, %v9157_v17 }
  0x72   : > { %13063 = vst [vmem:[#allocation10_spill] sm:$0xff] %v9182_v18  ;;  %7299 = vmatprep.subr.bf16.mxu0 %v9182_v18  ;;  %v12759_v13 = vand.u32 4294901760, %v9165_v53  ;;  %v9200_v19 = vsub.f32 %v383_v16, %v538_v39  ;;  %v789_v56 = vand.u32 4294901760, %v788_v24  ;;  %v796_v34 = vand.u32 4294901760, %v795_v1 }
  0x73   : > { %v9202_v42 = vpack.c.bf16 %v544_v50, %v541_v4  ;;  %7321 = vmatpush3.bf16.msra.mxu1 %v7320_v8  ;;  %v676_v61 = vsub.f32 %v9157_v17, %v12756_v36  ;;  %v595_v33 = vand.u32 4294901760, %v402_v35  ;;  %v598_v3 = vand.u32 4294901760, %v403_v57 }
  0x74   : > { %v683_v6 = vsub.f32 %v9165_v53, %v12759_v13  ;;  %v7322_v38 = vpack.c.bf16 %v796_v34, %v789_v56  ;;  %v12761_v39 = vand.u32 4294901760, %v9180_v52  ;;  %v12760_v16 = vand.u32 4294901760, %v9184_v51 }
  0x75   : > { %13064 = vst [vmem:[#allocation11_spill] sm:$0xff] %v9202_v42  ;;  %7301 = vmatpush3.bf16.msra.mxu0 %v9202_v42  ;;  %v547_v24 = vand.u32 4294901760, %v386_v29  ;;  %v9214_v1 = vsub.f32 %v400_v28, %v589_v48  ;;  %v677_v8 = vand.u32 4294901760, %v676_v61  ;;  %v9216_v36 = vpack.c.bf16 %v598_v3, %v595_v33  ;;  %v365_v28 = vld [vmem:[%s12729_s0 + $0x8] sm:$0xff] }
  0x76   : > { %v684_v18 = vand.u32 4294901760, %v683_v6  ;;  %v9218_v23 = vsub.f32 %v401_v2, %v592_v55  ;;  %7323 = vmatprep.subr.bf16.mxu1 %v7322_v38  ;;  %v802_v34 = vsub.f32 %v9180_v52, %v12761_v39  ;;  %v809_v56 = vsub.f32 %v9184_v51, %v12760_v16  ;;  %v369_v48 = vld [vmem:[%s12730_s1 + $0x8] sm:$0xff] }
  0x77   : > { %13065 = vst [vmem:[#allocation12_spill] sm:$0xff] %v9216_v36  ;;  %v550_v13 = vand.u32 4294901760, %v387_v63  ;;  %7303 = vmatprep.subr.bf16.mxu0 %v9216_v36  ;;  %v12767_v38 = vand.u32 4294901760, %v9194_v11  ;;  %v12766_v55 = vand.u32 4294901760, %v9200_v19  ;;  %v9236_v61 = vsub.f32 %v9163_v0, %v541_v4  ;;  %v364_v0 = vld [vmem:[%s12729_s0] sm:$0xff] }
  0x78   : > { %v7324_v2 = vpack.c.bf16 %v684_v18, %v677_v8  ;;  %v803_v6 = vand.u32 4294901760, %v802_v34  ;;  %v810_v16 = vand.u32 4294901760, %v809_v56  ;;  %v9240_v42 = vsub.f32 %v385_v7, %v544_v50  ;;  %v368_v4 = vld [vmem:[%s12730_s1] sm:$0xff] }
  0x79   : > { %v9238_v39 = vpack.c.bf16 %v550_v13, %v547_v24  ;;  %v690_v18 = vsub.f32 %v9194_v11, %v12767_v38  ;;  %v697_v8 = vsub.f32 %v9200_v19, %v12766_v55  ;;  %v501_v36 = vadd.f32 %v369_v48, %v365_v28 }
  0x7a   : > { %7325 = vmatpush3.bf16.msra.mxu1 %v7324_v2  ;;  %v9254_v50 = vsub.f32 %v402_v35, %v595_v33  ;;  %v7326_v7 = vpack.c.bf16 %v810_v16, %v803_v6  ;;  %v12770_v34 = vand.u32 4294901760, %v9214_v1  ;;  %v12774_v56 = vand.u32 4294901760, %v9218_v23 }
  0x7b   : > { %13066 = vst [vmem:[#allocation13_spill] sm:$0xff] %v9238_v39  ;;  %7305 = vmatpush3.bf16.msra.mxu0 %v9238_v39  ;;  %v691_v2 = vand.u32 4294901760, %v690_v18  ;;  %v698_v55 = vand.u32 4294901760, %v697_v8  ;;  %v9259_v28 = vand.u32 4294901760, %v501_v36  ;;  %v7338_v48 = vpack.c.bf16 %v9039_v31, %v9037_v30 }
  0x7c   : > { %v9263_v38 = vsub.f32 %v403_v57, %v598_v3  ;;  %7327 = vmatprep.subr.bf16.mxu1 %v7326_v7  ;;  %v816_v35 = vsub.f32 %v9214_v1, %v12770_v34  ;;  %v823_v33 = vsub.f32 %v9218_v23, %v12774_v56  ;;  %v500_v16 = vadd.f32 %v368_v4, %v364_v0 }
  0x7d   : > { %v9271_v6 = vsub.f32 %v386_v29, %v547_v24  ;;  %v7328_v18 = vpack.c.bf16 %v698_v55, %v691_v2  ;;  %v9274_v8 = vsub.f32 %v501_v36, %v9259_v28  ;;  %7339 = vmatprep.subr.bf16.mxu0 %v7338_v48  ;;  %v12773_v57 = vand.u32 4294901760, %v9236_v61  ;;  %841 = vmatprep.mubr.f32.mxu1 %v9259_v28 }
  0x7e   : > { %v817_v3 = vand.u32 4294901760, %v816_v35  ;;  %v824_v7 = vand.u32 4294901760, %v823_v33  ;;  %v9278_v39 = vand.u32 4294901760, %v500_v16  ;;  %v710_v34 = vand.u32 4294901760, %v9240_v42 }
  0x7f   : > { %v9281_v59 = vsub.f32 %v387_v63, %v550_v13  ;;  %7329 = vmatpush3.bf16.msra.mxu1 %v7328_v18  ;;  %v602_v29 = vand.u32 4294901760, %v9274_v8  ;;  %v704_v36 = vsub.f32 %v9236_v61, %v12773_v57  ;;  %v12775_v24 = vand.u32 4294901760, %v9254_v50 }
  0x80   : > { %v7330_v55 = vpack.c.bf16 %v824_v7, %v817_v3  ;;  %v9289_v0 = vsub.f32 %v500_v16, %v9278_v39  ;;  %v711_v4 = vsub.f32 %v9240_v42, %v710_v34  ;;  %v12776_v2 = vand.u32 4294901760, %v9263_v38 }
  0x81   : > { %v603_v63 = vsub.f32 %v9274_v8, %v602_v29  ;;  %v705_v13 = vand.u32 4294901760, %v704_v36  ;;  %v830_v48 = vsub.f32 %v9254_v50, %v12775_v24  ;;  %v12778_v18 = vand.u32 4294901760, %v9271_v6 }
  0x82   : > { %7331 = vmatprep.subr.bf16.mxu1 %v7330_v55  ;;  %v12777_v35 = vand.u32 4294901760, %v9289_v0  ;;  %v712_v33 = vand.u32 4294901760, %v711_v4  ;;  %v837_v16 = vsub.f32 %v9263_v38, %v12776_v2  ;;  %v724_v57 = vand.u32 4294901760, %v9281_v59 }
  0x83   : > { %v604_v3 = vand.u32 4294901760, %v603_v63  ;;  %v831_v7 = vand.u32 4294901760, %v830_v48  ;;  %v718_v55 = vsub.f32 %v9271_v6, %v12778_v18  ;;  %v7340_v4 = vpack.c.bf16 %v9023_v21, %v9017_v15 }
  0x84   : > { %v609_v36 = vsub.f32 %v9289_v0, %v12777_v35  ;;  %v7332_v56 = vpack.c.bf16 %v712_v33, %v705_v13  ;;  %v838_v24 = vand.u32 4294901760, %v837_v16  ;;  %v725_v63 = vsub.f32 %v9281_v59, %v724_v57 }
  0x85   : > { %605 = vmatprep.mubr.f32.mxu0 %v604_v3  ;;  %v7342_v35 = vpack.c.bf16 %v9032_v26, %v9030_v25  ;;  %v719_v13 = vand.u32 4294901760, %v718_v55  ;;  %v7344_v3 = vpack.c.bf16 %v9051_v41, %v9049_v40  ;;  %v7346_v18 = vpack.c.bf16 %v9076_v58, %v9074_v54 }
  0x86   : > { %v610_v48 = vand.u32 4294901760, %v609_v36  ;;  %7333 = vmatpush3.bf16.msra.mxu1 %v7332_v56  ;;  %v7334_v2 = vpack.c.bf16 %v838_v24, %v831_v7  ;;  %v726_v33 = vand.u32 4294901760, %v725_v63  ;;  %v13067_v56 = vand.u32 4294901760, %v9037_v30 }
  0x87   : > { %v13068_v24 = vand.u32 4294901760, %v9039_v31  ;;  %v13069_v36 = vand.u32 4294901760, %v9017_v15  ;;  %v13072_v63 = vand.u32 4294901760, %v9032_v26  ;;  %v13075_v30 = vand.u32 4294901760, %v9074_v54 }
  0x88   : > { %611 = vmatmul.mubr.f32.vlgmr.msra.gmra.mrb[0].mxu0 %v610_v48  ;;  %7335 = vmatprep.subr.bf16.mxu1 %v7334_v2  ;;  %v7336_v16 = vpack.c.bf16 %v726_v33, %v719_v13  ;;  %v13070_v2 = vand.u32 4294901760, %v9023_v21  ;;  %v13073_v13 = vand.u32 4294901760, %v9049_v40  ;;  %v13076_v15 = vand.u32 4294901760, %v9076_v58 }
  0x89   : > { %7341 = vmatpush3.bf16.msra.mxu0 %v7340_v4  ;;  %978 = vmatprep.mubr.f32.mxu0 %v9274_v8  ;;  %v7402_v7 = vpack.c.bf16 %v13068_v24, %v13067_v56  ;;  %v13071_v4 = vand.u32 4294901760, %v9030_v25  ;;  %v13074_v8 = vand.u32 4294901760, %v9051_v41  ;;  %v13077_v21 = vand.u32 4294901760, %v9093_v9 }
  0x8a   : > { %7343 = vmatprep.subr.bf16.mxu0 %v7342_v35  ;;  %v7404_v55 = vpack.c.bf16 %v13070_v2, %v13069_v36  ;;  %7337 = vmatpush3.bf16.msra.mxu1 %v7336_v16  ;;  %v9345_v31 = vpack.c.bf16 %v13076_v15, %v13075_v30  ;;  %v13078_v25 = vand.u32 4294901760, %v9095_v10  ;;  %v13079_v33 = vand.u32 4294901760, %v9109_v32 }
  0x8b   : > { %v9333_v48 = vpack.c.bf16 %v13072_v63, %v13071_v4  ;;  %v9339_v35 = vpack.c.bf16 %v13074_v8, %v13073_v13  ;;  %v13080_v40 = vand.u32 4294901760, %v9113_v46  ;;  %v13081_v16 = vand.u32 4294901760, %v9123_v47  ;;  %7371 = vmatprep.subr.bf16.mxu1 %v9015_v14 }
  0x8c   : > { %v9351_v26 = vpack.c.bf16 %v13078_v25, %v13077_v21  ;;  %v13082_v54 = vand.u32 4294901760, %v9129_v62  ;;  %v13083_v58 = vand.u32 4294901760, %v9143_v44  ;;  %v13084_v24 = vand.u32 4294901760, %v9147_v49 }
  0x8d   : > { %v9357_v41 = vpack.c.bf16 %v13080_v40, %v13079_v33  ;;  %v13085_v2 = vand.u32 4294901760, %v9157_v17  ;;  %v13086_v4 = vand.u32 4294901760, %v9165_v53  ;;  %v13087_v13 = vand.u32 4294901760, %v9180_v52  ;;  %7345 = vmatpush3.bf16.msra.mxu0 %v7344_v3  ;;  %843 = vmatmul.mubr.f32.vlgmr.msra.gmra.mrb[0].mxu1 %v9278_v39 }
  0x8e   : > { %v9363_v56 = vpack.c.bf16 %v13082_v54, %v13081_v16  ;;  %v9370_v36 = vpack.c.bf16 %v13084_v24, %v13083_v58  ;;  %v13088_v8 = vand.u32 4294901760, %v9184_v51  ;;  %v13089_v15 = vand.u32 4294901760, %v9194_v11  ;;  %7347 = vmatprep.subr.bf16.mxu0 %v7346_v18  ;;  %7373 = vmatpush3.bf16.msra.mxu1 %v9021_v20 }
  0x8f   : > { %v9376_v63 = vpack.c.bf16 %v13086_v4, %v13085_v2  ;;  %v13090_v21 = vand.u32 4294901760, %v9200_v19  ;;  %v7348_v33 = vpack.c.bf16 %v9095_v10, %v9093_v9  ;;  %v13091_v40 = vand.u32 4294901760, %v9214_v1  ;;  %1085 = vmatprep.mubr.f32.mxu1 %v602_v29  ;;  %7375 = vmatprep.subr.bf16.mxu1 %v9025_v22  ;;  %v422_v4 = vld [vmem:[%s8995_s26 + $0x190] sm:$0xff] }
  0x90   : > { %v9382_v30 = vpack.c.bf16 %v13088_v8, %v13087_v13  ;;  %v13092_v16 = vand.u32 4294901760, %v9218_v23  ;;  %v13093_v58 = vand.u32 4294901760, %v9236_v61  ;;  %v7350_v2 = vpack.c.bf16 %v9113_v46, %v9109_v32  ;;  %v423_v13 = vld [vmem:[%s8995_s26 + $0x198] sm:$0xff] }
  0x91   : > { %v9388_v25 = vpack.c.bf16 %v13090_v21, %v13089_v15  ;;  %7349 = vmatpush3.bf16.msra.mxu0 %v7348_v33  ;;  %v7352_v9 = vpack.c.bf16 %v9129_v62, %v9123_v47  ;;  %v7354_v10 = vpack.c.bf16 %v9147_v49, %v9143_v44  ;;  %v7356_v32 = vpack.c.bf16 %v9165_v53, %v9157_v17  ;;  %v13094_v44 = vld [vmem:[#allocation8_spill] sm:$0xff]  ;;  %v13095_v17 = vld [vmem:[#allocation9_spill] sm:$0xff]  ;;  %v13096_v53 = vld [vmem:[#allocation10_spill] sm:$0xff] }
  0x92   : > { %v9396_v54 = vpack.c.bf16 %v13092_v16, %v13091_v40  ;;  %v9400_v24 = vpack.c.bf16 %v710_v34, %v13093_v58  ;;  %7351 = vmatprep.subr.bf16.mxu0 %v7350_v2  ;;  %7377 = vmatpush3.bf16.msra.mxu1 %v9034_v27  ;;  %v7358_v46 = vpack.c.bf16 %v9184_v51, %v9180_v52  ;;  %v421_v52 = vld [vmem:[%s8995_s26 + $0x188] sm:$0xff]  ;;  %v406_v21 = vld [vmem:[%s8995_s26 + $0x110] sm:$0xff]  ;;  %v407_v33 = vld [vmem:[%s8995_s26 + $0x118] sm:$0xff]  ;;  %v13101_v16 = vand.u32 4294901760, %v9254_v50 }
  0x93   : > { %7379 = vmatprep.subr.bf16.mxu1 %v9045_v37  ;;  %v7360_v47 = vpack.c.bf16 %v9200_v19, %v9194_v11  ;;  %v7362_v49 = vpack.c.bf16 %v9218_v23, %v9214_v1  ;;  %v7364_v51 = vpack.c.bf16 %v9240_v42, %v9236_v61  ;;  %v7366_v62 = vpack.c.bf16 %v9263_v38, %v9254_v50  ;;  %v420_v42 = vld [vmem:[%s8995_s26 + $0x180] sm:$0xff]  ;;  %v13097_v19 = vld [vmem:[#allocation11_spill] sm:$0xff]  ;;  %v405_v1 = vld [vmem:[%s8995_s26 + $0x108] sm:$0xff] }
  0x94   : > { %v7368_v23 = vpack.c.bf16 %v9281_v59, %v9271_v6  ;;  %v404_v11 = vld [vmem:[%s8995_s26 + $0x100] sm:$0xff]  ;;  %v1415_v34 = vand.u32 4294901760, %v420_v42  ;;  %v1418_v29 = vand.u32 4294901760, %v421_v52  ;;  %v1370_v3 = vand.u32 4294901760, %v405_v1 }
  0x95   : > { %7353 = vmatpush3.bf16.msra.mxu0 %v7352_v9  ;;  %v13098_v61 = vld [vmem:[#allocation12_spill] sm:$0xff]  ;;  %v1367_v18 = vand.u32 4294901760, %v404_v11  ;;  %v13102_v58 = vand.u32 4294901760, %v9263_v38  ;;  %v1373_v2 = vand.u32 4294901760, %v406_v21  ;;  %v409_v38 = vld [vmem:[%s8995_s26 + $0x128] sm:$0xff] }
  0x96   : > { %7355 = vmatprep.subr.bf16.mxu0 %v7354_v10  ;;  %7381 = vmatpush3.bf16.msra.mxu1 %v9054_v43  ;;  %v9449_v8 = vsub.f32 %v420_v42, %v1415_v34  ;;  %v9460_v40 = vsub.f32 %v405_v1, %v1370_v3  ;;  %v424_v9 = vld [vmem:[%s8995_s26 + $0x1a0] sm:$0xff]  ;;  %v425_v10 = vld [vmem:[%s8995_s26 + $0x1a8] sm:$0xff]  ;;  %v1382_v1 = vand.u32 4294901760, %v409_v38 }
  0x97   : > { %7383 = vmatprep.subr.bf16.mxu1 %v9078_v60  ;;  %v9453_v15 = vsub.f32 %v404_v11, %v1367_v18 }
  0x98   : > { %v12779_v59 = vand.u32 4294901760, %v9460_v40 }
  0x99   : > { %7357 = vmatpush3.bf16.msra.mxu0 %v7356_v32  ;;  %v13103_v32 = vand.u32 4294901760, %v9271_v6 }
  0x9a   : > { %7359 = vmatprep.subr.bf16.mxu0 %v7358_v46  ;;  %7385 = vmatpush3.bf16.msra.mxu1 %v9097_v12  ;;  %v12786_v46 = vand.u32 4294901760, %v9453_v15 }
  0x9b   : > { %7387 = vmatprep.subr.bf16.mxu1 %v9111_v45 }
  0x9d   : > { %7361 = vmatpush3.bf16.msra.mxu0 %v7360_v47  ;;  %v9486_v47 = vpack.c.bf16 %v1418_v29, %v1415_v34  ;;  %v426_v34 = vld [vmem:[%s8995_s26 + $0x1b0] sm:$0xff] }
  0x9e   : > { %7363 = vmatprep.subr.bf16.mxu0 %v7362_v49  ;;  %7389 = vmatpush3.bf16.msra.mxu1 %v9131_v5  ;;  %v371_v49 = vld [vmem:[%s12730_s1 + $0x18] sm:$0xff] }
  0x9f   : > { %7391 = vmatprep.subr.bf16.mxu1 %v13094_v44 }
  0xa1   : > { %7365 = vmatpush3.bf16.msra.mxu0 %v7364_v51 }
  0xa2   : > { %7367 = vmatprep.subr.bf16.mxu0 %v7366_v62  ;;  %7393 = vmatpush3.bf16.msra.mxu1 %v13095_v17  ;;  %v1427_v62 = vand.u32 4294901760, %v424_v9 }
  0xa3   : > { %7395 = vmatprep.subr.bf16.mxu1 %v13096_v53 }
  0xa5   : > { %7369 = vmatpush3.bf16.msra.mxu0 %v7368_v23  ;;  %v1430_v23 = vand.u32 4294901760, %v425_v10 }
  0xa6   : > { %7403 = vmatprep.subr.bf16.mxu0 %v7402_v7  ;;  %7397 = vmatpush3.bf16.msra.mxu1 %v13097_v19  ;;  %v13099_v7 = vld [vmem:[#allocation13_spill] sm:$0xff] }
  0xa7   : > { %7399 = vmatprep.subr.bf16.mxu1 %v13098_v61 }
  0xa8   : > { %981 = vmatmul.mubr.f32.vlgmr.msra.gmra.mrb[2].mxu0 %v9289_v0 }
  0xa9   : > { %7405 = vmatpush3.bf16.msra.mxu0 %v7404_v55  ;;  %1255 = vmatprep.mubr.f32.mxu0 %v9259_v28  ;;  %v9451_v55 = vsub.f32 %v421_v52, %v1418_v29  ;;  %v9507_v52 = vsub.f32 %v406_v21, %v1373_v2  ;;  %v427_v29 = vld [vmem:[%s8995_s26 + $0x1b8] sm:$0xff] }
  0xaa   : > { %7407 = vmatprep.subr.bf16.mxu0 %v9333_v48  ;;  %7401 = vmatpush3.bf16.msra.mxu1 %v13099_v7  ;;  %v13100_v48 = vand.u32 4294901760, %v9289_v0  ;;  %v9469_v0 = vpack.c.bf16 %v13102_v58, %v13101_v16 }
  0xab   : > { %7435 = vmatprep.subr.bf16.mxu1 %v9015_v14  ;;  %v1421_v14 = vand.u32 4294901760, %v422_v4  ;;  %v12787_v50 = vand.u32 4294901760, %v9451_v55 }
  0xad   : > { %7409 = vmatpush3.bf16.msra.mxu0 %v9339_v35  ;;  %1089 = vmatmul.mubr.f32.vlgmr.msra.gmra.mrb[2].mxu1 %v13100_v48  ;;  %v1424_v35 = vand.u32 4294901760, %v423_v13  ;;  %v9530_v48 = vpack.c.bf16 %v1430_v23, %v1427_v62 }
  0xae   : > { %7411 = vmatprep.subr.bf16.mxu0 %v9345_v31  ;;  %7437 = vmatpush3.bf16.msra.mxu1 %v9021_v20  ;;  %v1376_v31 = vand.u32 4294901760, %v407_v33  ;;  %v9478_v20 = vpack.c.bf16 %v724_v57, %v13103_v32  ;;  %v367_v57 = vld [vmem:[%s12729_s0 + $0x18] sm:$0xff] }
  0xaf   : > { %1359 = vmatprep.mubr.f32.mxu1 %v9259_v28  ;;  %7439 = vmatprep.subr.bf16.mxu1 %v9025_v22  ;;  %v12789_v22 = vand.u32 4294901760, %v9449_v8  ;;  %v408_v28 = vld [vmem:[%s8995_s26 + $0x120] sm:$0xff]  ;;  %v9490_v6 = vsub.f32 %v423_v13, %v1424_v35  ;;  %v9502_v51 = vpack.c.bf16 %v1424_v35, %v1421_v14  ;;  %13105 = vst [vmem:[#allocation9_spill] sm:$0xff] %v9530_v48  ;;  %v1436_v35 = vand.u32 4294901760, %v427_v29 }
  0xb0   : > { %v9505_v42 = vpack.c.bf16 %v1376_v31, %v1373_v2  ;;  %v1379_v11 = vand.u32 4294901760, %v408_v28  ;;  %v12780_v2 = vand.u32 4294901760, %v9507_v52 }
  0xb1   : > { %7413 = vmatpush3.bf16.msra.mxu0 %v9351_v26  ;;  %v9488_v26 = vsub.f32 %v422_v4, %v1421_v14  ;;  %v9522_v4 = vsub.f32 %v407_v33, %v1376_v31  ;;  %v12781_v21 = vand.u32 4294901760, %v9490_v6  ;;  %v1433_v14 = vand.u32 4294901760, %v426_v34 }
  0xb2   : > { %7415 = vmatprep.subr.bf16.mxu0 %v9357_v41  ;;  %7441 = vmatpush3.bf16.msra.mxu1 %v9034_v27  ;;  %v9500_v41 = vpack.c.bf16 %v1370_v3, %v1367_v18  ;;  %13104 = vst [vmem:[#allocation8_spill] sm:$0xff] %v9505_v42  ;;  %v1594_v27 = vsub.f32 %v9449_v8, %v12789_v22 }
  0xb3   : > { %7443 = vmatprep.subr.bf16.mxu1 %v9045_v37  ;;  %v1601_v18 = vsub.f32 %v9451_v55, %v12787_v50  ;;  %v1482_v37 = vsub.f32 %v9453_v15, %v12786_v46  ;;  %v503_v3 = vadd.f32 %v371_v49, %v367_v57  ;;  %v12785_v13 = vand.u32 4294901760, %v9488_v26  ;;  %v410_v57 = vld [vmem:[%s8995_s26 + $0x130] sm:$0xff]  ;;  %v411_v49 = vld [vmem:[%s8995_s26 + $0x138] sm:$0xff] }
  0xb4   : > { %v9537_v33 = vsub.f32 %v425_v10, %v1430_v23  ;;  %v9539_v58 = vpack.c.bf16 %v1382_v1, %v1379_v11  ;;  %v1595_v31 = vand.u32 4294901760, %v1594_v27  ;;  %v12782_v10 = vand.u32 4294901760, %v9522_v4 }
  0xb5   : > { %7417 = vmatpush3.bf16.msra.mxu0 %v9363_v56  ;;  %v1489_v56 = vsub.f32 %v9460_v40, %v12779_v59  ;;  %v9532_v16 = vand.u32 4294901760, %v503_v3  ;;  %v1483_v32 = vand.u32 4294901760, %v1482_v37  ;;  %v9559_v23 = vsub.f32 %v409_v38, %v1382_v1 }
  0xb6   : > { %7419 = vmatprep.subr.bf16.mxu0 %v9370_v36  ;;  %7445 = vmatpush3.bf16.msra.mxu1 %v9054_v43  ;;  %v9535_v36 = vsub.f32 %v424_v9, %v1427_v62  ;;  %13107 = vst [vmem:[#allocation11_spill] sm:$0xff] %v9539_v58  ;;  %v1602_v43 = vand.u32 4294901760, %v1601_v18  ;;  %v1608_v9 = vsub.f32 %v9488_v26, %v12785_v13  ;;  %v1385_v37 = vand.u32 4294901760, %v410_v57 }
  0xb7   : > { %13106 = vst [vmem:[#allocation10_spill] sm:$0xff] %v9532_v16  ;;  %7447 = vmatprep.subr.bf16.mxu1 %v9078_v60  ;;  %v9546_v59 = vsub.f32 %v503_v3, %v9532_v16  ;;  %v1490_v60 = vand.u32 4294901760, %v1489_v56  ;;  %v9557_v62 = vsub.f32 %v408_v28, %v1379_v11  ;;  %v9561_v27 = vpack.c.bf16 %v1436_v35, %v1433_v14  ;;  %v429_v28 = vld [vmem:[%s8995_s26 + $0x1c8] sm:$0xff] }
  0xb8   : > { %v9566_v18 = vsub.f32 %v427_v29, %v1436_v35  ;;  %v1388_v3 = vand.u32 4294901760, %v411_v49  ;;  %v1496_v56 = vsub.f32 %v9507_v52, %v12780_v2  ;;  %v9574_v38 = vpack.c.bf16 %v1602_v43, %v1595_v31 }
  0xb9   : > { %7421 = vmatpush3.bf16.msra.mxu0 %v9376_v63  ;;  %v1615_v63 = vsub.f32 %v9490_v6, %v12781_v21  ;;  %13108 = vst [vmem:[#allocation12_spill] sm:$0xff] %v9561_v27  ;;  %v12783_v11 = vand.u32 4294901760, %v9535_v36  ;;  %v12784_v1 = vand.u32 4294901760, %v9537_v33  ;;  %v1609_v29 = vand.u32 4294901760, %v1608_v9 }
  0xba   : > { %7423 = vmatprep.subr.bf16.mxu0 %v9382_v30  ;;  %7449 = vmatpush3.bf16.msra.mxu1 %v9097_v12  ;;  %v9563_v30 = vsub.f32 %v426_v34, %v1433_v14  ;;  %v428_v12 = vld [vmem:[%s8995_s26 + $0x1c0] sm:$0xff]  ;;  %v9580_v34 = vpack.c.bf16 %v1490_v60, %v1483_v32  ;;  %v1503_v35 = vsub.f32 %v9522_v4, %v12782_v10  ;;  %v1442_v43 = vand.u32 4294901760, %v429_v28 }
  0xbb   : > { %7451 = vmatprep.subr.bf16.mxu1 %v9111_v45  ;;  %v12790_v45 = vand.u32 4294901760, %v9546_v59  ;;  %v1616_v14 = vand.u32 4294901760, %v1615_v63  ;;  %v1439_v31 = vand.u32 4294901760, %v428_v12  ;;  %v12788_v2 = vand.u32 4294901760, %v9557_v62  ;;  %v413_v63 = vld [vmem:[%s8995_s26 + $0x148] sm:$0xff] }
  0xbc   : > { %v12791_v21 = vand.u32 4294901760, %v9559_v23  ;;  %v9592_v32 = vsub.f32 %v410_v57, %v1385_v37  ;;  %v9594_v60 = vsub.f32 %v411_v49, %v1388_v3  ;;  %v1497_v9 = vand.u32 4294901760, %v1496_v56 }
  0xbd   : > { %7425 = vmatpush3.bf16.msra.mxu0 %v9388_v25  ;;  %v412_v25 = vld [vmem:[%s8995_s26 + $0x140] sm:$0xff]  ;;  %v1629_v10 = vsub.f32 %v9537_v33, %v12784_v1  ;;  %v1465_v57 = vsub.f32 %v9546_v59, %v12790_v45  ;;  %v9608_v49 = vpack.c.bf16 %v1616_v14, %v1609_v29  ;;  %v12792_v56 = vand.u32 4294901760, %v9566_v18  ;;  %v431_v29 = vld [vmem:[%s8995_s26 + $0x1d8] sm:$0xff]  ;;  %v9632_v45 = vld [vmem:[%s8995_s26 + $0x150] sm:$0xff] }
  0xbe   : > { %7427 = vmatprep.subr.bf16.mxu0 %v9396_v54  ;;  %7453 = vmatpush3.bf16.msra.mxu1 %v9131_v5  ;;  %v9590_v54 = vpack.c.bf16 %v1388_v3, %v1385_v37  ;;  %13109 = vst [vmem:[#allocation13_spill] sm:$0xff] %v9594_v60  ;;  %v1622_v5 = vsub.f32 %v9535_v36, %v12783_v11  ;;  %v1504_v37 = vand.u32 4294901760, %v1503_v35  ;;  %v12795_v3 = vand.u32 4294901760, %v9563_v30 }
  0xbf   : > { %7455 = vmatprep.subr.bf16.mxu1 %v13094_v44  ;;  %v1391_v44 = vand.u32 4294901760, %v412_v25  ;;  %v9614_v11 = vpack.c.bf16 %v1442_v43, %v1439_v31  ;;  %v1394_v1 = vand.u32 4294901760, %v413_v63  ;;  %v1510_v13 = vsub.f32 %v9557_v62, %v12788_v2 }
  0xc0   : > { %v9624_v14 = vsub.f32 %v428_v12, %v1439_v31  ;;  %v9626_v35 = vsub.f32 %v429_v28, %v1442_v43  ;;  %v12794_v46 = vand.u32 4294901760, %v9594_v60  ;;  %v1623_v50 = vand.u32 4294901760, %v1622_v5 }
  0xc1   : > { %7429 = vmatpush3.bf16.msra.mxu0 %v9400_v24  ;;  %v430_v24 = vld [vmem:[%s8995_s26 + $0x1d0] sm:$0xff]  ;;  %13110 = vst [vmem:[#allocation14_spill] sm:$0xff] %v9614_v11  ;;  %v1630_v2 = vand.u32 4294901760, %v1629_v10  ;;  %v1448_v12 = vand.u32 4294901760, %v431_v29  ;;  %v1636_v28 = vsub.f32 %v9563_v30, %v12795_v3  ;;  %v9644_v10 = vpack.c.bf16 %v1394_v1, %v1391_v44 }
  0xc2   : > { %7431 = vmatprep.subr.bf16.mxu0 %v9469_v0  ;;  %7457 = vmatpush3.bf16.msra.mxu1 %v13095_v17  ;;  %v1517_v0 = vsub.f32 %v9559_v23, %v12791_v21  ;;  %13111 = vst [vmem:[#allocation15_spill] sm:$0xff] %v9624_v14  ;;  %13112 = vst [vmem:[#allocation16_spill] sm:$0xff] %v9626_v35  ;;  %v12793_v17 = vand.u32 4294901760, %v9592_v32  ;;  %v1445_v22 = vand.u32 4294901760, %v430_v24  ;;  %v1466_v21 = vand.u32 4294901760, %v1465_v57 }
  0xc3   : > { %7459 = vmatprep.subr.bf16.mxu1 %v13096_v53  ;;  %v9635_v53 = vpack.c.bf16 %v1504_v37, %v1497_v9  ;;  %13113 = vst [vmem:[#allocation17_spill] sm:$0xff] %v9644_v10  ;;  %v9646_v31 = vsub.f32 %v412_v25, %v1391_v44  ;;  %v1511_v43 = vand.u32 4294901760, %v1510_v13  ;;  %v9649_v9 = vld [vmem:[%s8995_s26 + $0x158] sm:$0xff]  ;;  %v9661_v25 = vld [vmem:[%s8995_s26 + $0x1e0] sm:$0xff]  ;;  %v9664_v13 = vld [vmem:[%s8995_s26 + $0x1e8] sm:$0xff]  ;;  %v1637_v3 = vand.u32 4294901760, %v1636_v28 }
  0xc4   : > { %v1518_v5 = vand.u32 4294901760, %v1517_v0  ;;  %v1524_v37 = vsub.f32 %v9592_v32, %v12793_v17  ;;  %v9670_v0 = vsub.f32 %v413_v63, %v1394_v1  ;;  %v12796_v17 = vand.u32 4294901760, %v9626_v35  ;;  %v9687_v63 = vld [vmem:[%s8995_s26 + $0x160] sm:$0xff] }
  0xc5   : > { %7433 = vmatpush3.bf16.msra.mxu0 %v9478_v20  ;;  %v1643_v20 = vsub.f32 %v9566_v18, %v12792_v56  ;;  %13114 = vst [vmem:[#allocation18_spill] sm:$0xff] %v9646_v31  ;;  %v9672_v56 = vsub.f32 %v430_v24, %v1445_v22  ;;  %v12799_v44 = vand.u32 4294901760, %v9649_v9  ;;  %v13118_v24 = vand.u32 4294901760, %v9632_v45 }
  0xc6   : > { %7467 = vmatprep.subr.bf16.mxu0 %v9486_v47  ;;  %7461 = vmatpush3.bf16.msra.mxu1 %v13097_v19  ;;  %v1531_v19 = vsub.f32 %v9594_v60, %v12794_v46  ;;  %13115 = vst [vmem:[#allocation19_spill] sm:$0xff] %v9670_v0  ;;  %v9676_v46 = vsub.f32 %v431_v29, %v1448_v12 }
  0xc7   : > { %7463 = vmatprep.subr.bf16.mxu1 %v13098_v61  ;;  %v9668_v61 = vpack.c.bf16 %v1630_v2, %v1623_v50  ;;  %13116 = vst [vmem:[#allocation20_spill] sm:$0xff] %v9672_v56  ;;  %v1644_v57 = vand.u32 4294901760, %v1643_v20  ;;  %v9680_v50 = vpack.c.bf16 %v1518_v5, %v1511_v43  ;;  %v9682_v2 = vpack.c.bf16 %v1448_v12, %v1445_v22  ;;  %v9699_v20 = vld [vmem:[%s8995_s26 + $0x168] sm:$0xff]  ;;  %v366_v43 = vld [vmem:[%s12729_s0 + $0x10] sm:$0xff] }
  0xc8   : > { %1257 = vmatmul.mubr.f32.vlgmr.msra.gmra.mrb[4].mxu0 %v9278_v39  ;;  %13117 = vst [vmem:[#allocation21_spill] sm:$0xff] %v9676_v46  ;;  %v9693_v29 = vsub.f32 %v9632_v45, %v13118_v24  ;;  %v1532_v28 = vand.u32 4294901760, %v1531_v19  ;;  %v13119_v22 = vand.u32 4294901760, %v9624_v14  ;;  %v1657_v5 = vsub.f32 %v9626_v35, %v12796_v17  ;;  %v9714_v24 = vld [vmem:[%s8995_s26 + $0x1f0] sm:$0xff]  ;;  %v9749_v35 = vld [vmem:[%s8995_s26 + $0x178] sm:$0xff] }
  0xc9   : > { %7469 = vmatpush3.bf16.msra.mxu0 %v9500_v41  ;;  %1467 = vmatprep.mubr.f32.mxu0 %v1466_v21  ;;  %v7510_v1 = vpack.c.bf16 %v1644_v57, %v1637_v3  ;;  %v9725_v17 = vsub.f32 %v9649_v9, %v12799_v44  ;;  %v13120_v21 = vand.u32 4294901760, %v9661_v25  ;;  %v13122_v57 = vand.u32 4294901760, %v9646_v31 }
  0xca   : > { %7471 = vmatprep.subr.bf16.mxu0 %v9502_v51  ;;  %7465 = vmatpush3.bf16.msra.mxu1 %v13099_v7  ;;  %v1525_v7 = vand.u32 4294901760, %v1524_v37  ;;  %v1650_v12 = vsub.f32 %v9624_v14, %v13119_v22  ;;  %v9717_v22 = vld [vmem:[%s8995_s26 + $0x1f8] sm:$0xff] }
  0xcb   : > { %7499 = vmatprep.subr.bf16.mxu1 %v9574_v38  ;;  %v370_v38 = vld [vmem:[%s12730_s1 + $0x10] sm:$0xff] }
  0xcc   : > { %v502_v44 = vadd.f32 %v370_v38, %v366_v43  ;;  %v7512_v37 = vpack.c.bf16 %v1532_v28, %v1525_v7  ;;  %v1651_v19 = vand.u32 4294901760, %v1650_v12  ;;  %v1538_v43 = vsub.f32 %v9646_v31, %v13122_v57 }
  0xcd   : > { %7473 = vmatpush3.bf16.msra.mxu0 %v9505_v42  ;;  %1361 = vmatmul.mubr.f32.vlgmr.msra.gmra.mrb[4].mxu1 %v9278_v39  ;;  %v9733_v39 = vsub.f32 %v9661_v25, %v13120_v21  ;;  %v9746_v21 = vld [vmem:[%s8995_s26 + $0x170] sm:$0xff]  ;;  %v13123_v38 = vand.u32 4294901760, %v9670_v0  ;;  %v13124_v7 = vand.u32 4294901760, %v9672_v56  ;;  %v13125_v12 = vand.u32 4294901760, %v9687_v63 }
  0xce   : > { %7475 = vmatprep.subr.bf16.mxu0 %v9530_v48  ;;  %7501 = vmatpush3.bf16.msra.mxu1 %v9580_v34  ;;  %v13121_v48 = vand.u32 4294901760, %v9664_v13 }
  0xcf   : > { %1703 = vmatprep.mubr.f32.mxu1 %v9532_v16  ;;  %7503 = vmatprep.subr.bf16.mxu1 %v9608_v49  ;;  %v1545_v49 = vsub.f32 %v9670_v0, %v13123_v38  ;;  %v1664_v28 = vsub.f32 %v9672_v56, %v13124_v7  ;;  %v9765_v42 = vsub.f32 %v9687_v63, %v13125_v12  ;;  %v13127_v38 = vand.u32 4294901760, %v9699_v20 }
  0xd0   : > { %v9738_v3 = vsub.f32 %v9664_v13, %v13121_v48  ;;  %v1658_v48 = vand.u32 4294901760, %v1657_v5  ;;  %v13126_v5 = vand.u32 4294901760, %v9676_v46  ;;  %v1412_v12 = vand.u32 4294901760, %v9749_v35 }
  0xd1   : > { %7477 = vmatpush3.bf16.msra.mxu0 %v9539_v58  ;;  %v9776_v7 = vsub.f32 %v9699_v20, %v13127_v38  ;;  %v9780_v58 = vand.u32 4294901760, %v502_v44  ;;  %v1539_v56 = vand.u32 4294901760, %v1538_v43  ;;  %v1546_v0 = vand.u32 4294901760, %v1545_v49 }
  0xd2   : > { %7479 = vmatprep.subr.bf16.mxu0 %v9561_v27  ;;  %v1671_v34 = vsub.f32 %v9676_v46, %v13126_v5  ;;  %7505 = vmatpush3.bf16.msra.mxu1 %v9635_v53  ;;  %v13129_v5 = vand.u32 4294901760, %v9714_v24  ;;  %v13130_v53 = vand.u32 4294901760, %v9717_v22  ;;  %v12824_v27 = vand.u32 4294901760, %v9738_v3 }
  0xd3   : > { %13128 = vst [vmem:[#allocation22_spill] sm:$0xff] %v9780_v58  ;;  %7507 = vmatprep.subr.bf16.mxu1 %v9668_v61  ;;  %v7514_v46 = vpack.c.bf16 %v1658_v48, %v1651_v19  ;;  %v1665_v61 = vand.u32 4294901760, %v1664_v28  ;;  %v13133_v19 = vand.u32 4294901760, %v9746_v21  ;;  %v9811_v43 = vsub.f32 %v9749_v35, %v1412_v12 }
  0xd4   : > { %v9786_v57 = vsub.f32 %v9714_v24, %v13129_v5  ;;  %v9791_v16 = vsub.f32 %v9717_v22, %v13130_v53  ;;  %v1672_v31 = vand.u32 4294901760, %v1671_v34  ;;  %v13131_v5 = vand.u32 4294901760, %v9693_v29 }
  0xd5   : > { %7481 = vmatpush3.bf16.msra.mxu0 %v9590_v54  ;;  %v13132_v53 = vand.u32 4294901760, %v9725_v17  ;;  %v9808_v48 = vsub.f32 %v9746_v21, %v13133_v19  ;;  %v9814_v34 = vsub.f32 %v502_v44, %v9780_v58  ;;  %v13134_v28 = vand.u32 4294901760, %v9733_v39 }
  0xd6   : > { %7483 = vmatprep.subr.bf16.mxu0 %v9614_v11  ;;  %v1552_v14 = vsub.f32 %v9693_v29, %v13131_v5  ;;  %7509 = vmatpush3.bf16.msra.mxu1 %v9680_v50  ;;  %v1685_v50 = vsub.f32 %v9738_v3, %v12824_v27  ;;  %v13135_v35 = vand.u32 4294901760, %v9632_v45  ;;  %v13136_v44 = vand.u32 4294901760, %v9649_v9 }
  0xd7   : > { %v1559_v60 = vsub.f32 %v9725_v17, %v13132_v53  ;;  %7511 = vmatprep.subr.bf16.mxu1 %v7510_v1  ;;  %v1678_v5 = vsub.f32 %v9733_v39, %v13134_v28  ;;  %v13137_v1 = vand.u32 4294901760, %v9661_v25  ;;  %v13138_v28 = vand.u32 4294901760, %v9664_v13 }
  0xd8   : > { %v9830_v49 = vpack.c.bf16 %v13136_v44, %v13135_v35  ;;  %v7516_v11 = vpack.c.bf16 %v1546_v0, %v1539_v56  ;;  %v7518_v27 = vpack.c.bf16 %v1672_v31, %v1665_v61  ;;  %v1553_v53 = vand.u32 4294901760, %v1552_v14 }
  0xd9   : > { %7485 = vmatpush3.bf16.msra.mxu0 %v9644_v10  ;;  %v9836_v38 = vpack.c.bf16 %v13138_v28, %v13137_v1  ;;  %v1560_v19 = vand.u32 4294901760, %v1559_v60  ;;  %v13140_v10 = vand.u32 4294901760, %v9765_v42  ;;  %v12827_v9 = vand.u32 4294901760, %v9814_v34 }
  0xda   : > { %7487 = vmatprep.subr.bf16.mxu0 %v9682_v2  ;;  %7513 = vmatpush3.bf16.msra.mxu1 %v7512_v37  ;;  %v13141_v35 = vand.u32 4294901760, %v9776_v7  ;;  %v12829_v13 = vand.u32 4294901760, %v9808_v48  ;;  %v12828_v56 = vand.u32 4294901760, %v9811_v43  ;;  %v1679_v0 = vand.u32 4294901760, %v1678_v5 }
  0xdb   : > { %13139 = vst [vmem:[#allocation23_spill] sm:$0xff] %v9836_v38  ;;  %v1566_v45 = vsub.f32 %v9765_v42, %v13140_v10  ;;  %7515 = vmatprep.subr.bf16.mxu1 %v7514_v46  ;;  %v1686_v31 = vand.u32 4294901760, %v1685_v50  ;;  %v13142_v60 = vand.u32 4294901760, %v9786_v57  ;;  %v13143_v10 = vand.u32 4294901760, %v9791_v16 }
  0xdc   : > { %v1573_v25 = vsub.f32 %v9776_v7, %v13141_v35  ;;  %v13144_v61 = vand.u32 4294901760, %v9687_v63  ;;  %v13145_v44 = vand.u32 4294901760, %v9699_v20  ;;  %v13146_v46 = vand.u32 4294901760, %v9714_v24 }
  0xdd   : > { %v1692_v14 = vsub.f32 %v9786_v57, %v13142_v60  ;;  %v1699_v37 = vsub.f32 %v9791_v16, %v13143_v10  ;;  %7489 = vmatpush3.bf16.msra.mxu0 %v9830_v49  ;;  %v13147_v5 = vand.u32 4294901760, %v9717_v22  ;;  %v7520_v28 = vpack.c.bf16 %v1560_v19, %v1553_v53 }
  0xde   : > { %v9859_v1 = vpack.c.bf16 %v13145_v44, %v13144_v61  ;;  %7491 = vmatprep.subr.bf16.mxu0 %v9836_v38  ;;  %7517 = vmatpush3.bf16.msra.mxu1 %v7516_v11  ;;  %v1567_v35 = vand.u32 4294901760, %v1566_v45  ;;  %v1574_v60 = vand.u32 4294901760, %v1573_v25  ;;  %v1580_v63 = vsub.f32 %v9808_v48, %v12829_v13  ;;  %v8492_v13 = vld [vmem:[%s8995_s26 + $0x8] sm:$0xff] }
  0xdf   : > { %v9866_v50 = vpack.c.bf16 %v13147_v5, %v13146_v46  ;;  %v1587_v20 = vsub.f32 %v9811_v43, %v12828_v56  ;;  %7519 = vmatprep.subr.bf16.mxu1 %v7518_v27  ;;  %v1471_v24 = vsub.f32 %v9814_v34, %v12827_v9  ;;  %v7522_v22 = vpack.c.bf16 %v1686_v31, %v1679_v0  ;;  %v8491_v9 = vld [vmem:[%s8995_s26] sm:$0xff] }
  0xe0   : > { %v1693_v10 = vand.u32 4294901760, %v1692_v14  ;;  %v1700_v61 = vand.u32 4294901760, %v1699_v37  ;;  %v13148_v11 = vand.u32 4294901760, %v9746_v21  ;;  %v7530_v19 = vpack.c.bf16 %v9451_v55, %v9449_v8 }
  0xe1   : > { %7493 = vmatpush3.bf16.msra.mxu0 %v9859_v1  ;;  %v7524_v27 = vpack.c.bf16 %v1574_v60, %v1567_v35  ;;  %v1581_v45 = vand.u32 4294901760, %v1580_v63  ;;  %v1588_v25 = vand.u32 4294901760, %v1587_v20  ;;  %v1472_v44 = vand.u32 4294901760, %v1471_v24  ;;  %v13150_v35 = vld [vmem:[#allocation13_spill] sm:$0xff]  ;;  %v13151_v63 = vld [vmem:[#allocation15_spill] sm:$0xff]  ;;  %v13152_v20 = vld [vmem:[#allocation16_spill] sm:$0xff] }
  0xe2   : > { %v9880_v53 = vpack.c.bf16 %v1412_v12, %v13148_v11  ;;  %7495 = vmatprep.subr.bf16.mxu0 %v9866_v50  ;;  %7521 = vmatpush3.bf16.msra.mxu1 %v7520_v28  ;;  %v7526_v0 = vpack.c.bf16 %v1700_v61, %v1693_v10  ;;  %v7532_v31 = vpack.c.bf16 %v9460_v40, %v9453_v15  ;;  %v13149_v28 = vand.u32 4294901760, %v9546_v59  ;;  %v13154_v10 = vld [vmem:[#allocation9_spill] sm:$0xff]  ;;  %v13155_v61 = vld [vmem:[#allocation18_spill] sm:$0xff] }
  0xe3   : > { %7523 = vmatprep.subr.bf16.mxu1 %v7522_v22  ;;  %v7534_v21 = vpack.c.bf16 %v9490_v6, %v9488_v26  ;;  %v7528_v12 = vpack.c.bf16 %v1588_v25, %v1581_v45  ;;  %v7536_v14 = vpack.c.bf16 %v9522_v4, %v9507_v52  ;;  %v7538_v37 = vpack.c.bf16 %v9537_v33, %v9535_v36  ;;  %v13153_v22 = vld [vmem:[#allocation8_spill] sm:$0xff]  ;;  %v13159_v25 = vld [vmem:[#allocation11_spill] sm:$0xff] }
  0xe4   : > { %v7540_v46 = vpack.c.bf16 %v9559_v23, %v9557_v62  ;;  %v7542_v5 = vpack.c.bf16 %v9566_v18, %v9563_v30  ;;  %v7544_v60 = vpack.c.bf16 %v13150_v35, %v9592_v32  ;;  %v7546_v24 = vpack.c.bf16 %v13152_v20, %v13151_v63 }
  0xe5   : > { %7497 = vmatpush3.bf16.msra.mxu0 %v9880_v53 }
  0xe6   : > { %7531 = vmatprep.subr.bf16.mxu0 %v7530_v19  ;;  %7525 = vmatpush3.bf16.msra.mxu1 %v7524_v27  ;;  %v13157_v19 = vld [vmem:[#allocation20_spill] sm:$0xff]  ;;  %v13158_v27 = vld [vmem:[#allocation21_spill] sm:$0xff] }
  0xe7   : > { %7527 = vmatprep.subr.bf16.mxu1 %v7526_v0  ;;  %v7550_v45 = vpack.c.bf16 %v13158_v27, %v13157_v19  ;;  %v7552_v0 = vpack.c.bf16 %v9725_v17, %v9693_v29 }
  0xe8   : > { %1473 = vmatmul.mubr.f32.vlgmr.msra.gmra.mrb[6].mxu0 %v1472_v44  ;;  %v13160_v44 = vld [vmem:[#allocation12_spill] sm:$0xff] }
  0xe9   : > { %7533 = vmatpush3.bf16.msra.mxu0 %v7532_v31  ;;  %1840 = vmatprep.mubr.f32.mxu0 %v9546_v59  ;;  %v13156_v59 = vld [vmem:[#allocation19_spill] sm:$0xff]  ;;  %v7554_v31 = vpack.c.bf16 %v9738_v3, %v9733_v39 }
  0xea   : > { %7535 = vmatprep.subr.bf16.mxu0 %v7534_v21  ;;  %7529 = vmatpush3.bf16.msra.mxu1 %v7528_v12  ;;  %v7548_v11 = vpack.c.bf16 %v13156_v59, %v13155_v61  ;;  %v13161_v21 = vld [vmem:[#allocation14_spill] sm:$0xff]  ;;  %v452_v12 = vld [vmem:[%s9001_s14 + $0x80] sm:$0xff] }
  0xeb   : > { %7563 = vmatprep.subr.bf16.mxu1 %v9486_v47 }
  0xed   : > { %7537 = vmatpush3.bf16.msra.mxu0 %v7536_v14  ;;  %1705 = vmatmul.mubr.f32.vlgmr.msra.gmra.mrb[6].mxu1 %v9780_v58  ;;  %v7556_v14 = vpack.c.bf16 %v9776_v7, %v9765_v42 }
  0xee   : > { %7539 = vmatprep.subr.bf16.mxu0 %v7538_v37  ;;  %7565 = vmatpush3.bf16.msra.mxu1 %v9500_v41  ;;  %v453_v37 = vld [vmem:[%s9001_s14 + $0x88] sm:$0xff] }
  0xef   : > { %1947 = vmatprep.mubr.f32.mxu1 %v13149_v28  ;;  %7567 = vmatprep.subr.bf16.mxu1 %v9502_v51  ;;  %v437_v28 = vld [vmem:[%s9001_s14 + $0x8] sm:$0xff] }
  0xf0   : > { %v9945_v58 = vsub.f32 %v437_v28, %v8492_v13  ;;  %v13166_v13 = vand.u32 4294901760, %v9460_v40  ;;  %v13169_v28 = vand.u32 4294901760, %v9507_v52  ;;  %v13172_v40 = vand.u32 4294901760, %v9537_v33 }
  0xf1   : > { %7541 = vmatpush3.bf16.msra.mxu0 %v7540_v46  ;;  %v7558_v46 = vpack.c.bf16 %v9791_v16, %v9786_v57  ;;  %v13177_v33 = vand.u32 4294901760, %v9592_v32  ;;  %v13180_v32 = vand.u32 4294901760, %v13152_v20  ;;  %v13186_v20 = vand.u32 4294901760, %v9693_v29 }
  0xf2   : > { %7543 = vmatprep.subr.bf16.mxu0 %v7542_v5  ;;  %7569 = vmatpush3.bf16.msra.mxu1 %v13153_v22  ;;  %v436_v5 = vld [vmem:[%s9001_s14] sm:$0xff] }
  0xf3   : > { %7571 = vmatprep.subr.bf16.mxu1 %v13154_v10  ;;  %v9942_v56 = vsub.f32 %v436_v5, %v8491_v9  ;;  %v13165_v9 = vand.u32 4294901760, %v9453_v15  ;;  %v13171_v15 = vand.u32 4294901760, %v9535_v36 }
  0xf5   : > { %7545 = vmatpush3.bf16.msra.mxu0 %v7544_v60  ;;  %v13162_v60 = vld [vmem:[#allocation17_spill] sm:$0xff]  ;;  %v12834_v52 = vand.u32 4294901760, %v9942_v56 }
  0xf6   : > { %7547 = vmatprep.subr.bf16.mxu0 %v7546_v24  ;;  %7573 = vmatpush3.bf16.msra.mxu1 %v13159_v25  ;;  %v8489_v24 = vld [vmem:[%s8995_s26 + $0x80] sm:$0xff] }
  0xf7   : > { %7575 = vmatprep.subr.bf16.mxu1 %v13160_v44 }
  0xf9   : > { %7549 = vmatpush3.bf16.msra.mxu0 %v7548_v11  ;;  %v9933_v11 = vsub.f32 %v452_v12, %v8489_v24  ;;  %v13164_v12 = vand.u32 4294901760, %v9451_v55  ;;  %v13168_v55 = vand.u32 4294901760, %v9490_v6 }
  0xfa   : > { %7551 = vmatprep.subr.bf16.mxu0 %v7550_v45  ;;  %7577 = vmatpush3.bf16.msra.mxu1 %v9590_v54  ;;  %v8490_v45 = vld [vmem:[%s8995_s26 + $0x88] sm:$0xff] }
  0xfb   : > { %7579 = vmatprep.subr.bf16.mxu1 %v13161_v21 }
  0xfd   : > { %7553 = vmatpush3.bf16.msra.mxu0 %v7552_v0  ;;  %v9937_v0 = vsub.f32 %v453_v37, %v8490_v45  ;;  %v454_v37 = vld [vmem:[%s9001_s14 + $0x90] sm:$0xff]  ;;  %v455_v45 = vld [vmem:[%s9001_s14 + $0x98] sm:$0xff] }
  0xfe   : > { %7555 = vmatprep.subr.bf16.mxu0 %v7554_v31  ;;  %7581 = vmatpush3.bf16.msra.mxu1 %v13162_v60  ;;  %v7560_v31 = vpack.c.bf16 %v9811_v43, %v9808_v48  ;;  %v13163_v60 = vand.u32 4294901760, %v9449_v8  ;;  %v13167_v8 = vand.u32 4294901760, %v9488_v26  ;;  %v13174_v26 = vand.u32 4294901760, %v9559_v23 }
  0xff   : > { %7583 = vmatprep.subr.bf16.mxu1 %v9682_v2 }
 0x100   : > { %v7594_v24 = vpack.c.bf16 %v13164_v12, %v13163_v60  ;;  %v7598_v5 = vpack.c.bf16 %v13168_v55, %v13167_v8  ;;  %v13170_v60 = vand.u32 4294901760, %v9522_v4  ;;  %v12833_v4 = vand.u32 4294901760, %v9945_v58  ;;  %v8493_v55 = vld [vmem:[%s8995_s26 + $0x90] sm:$0xff] }
 0x101   : > { %7557 = vmatpush3.bf16.msra.mxu0 %v7556_v14  ;;  %v2344_v14 = vand.u32 4294901760, %v9937_v0  ;;  %v13175_v8 = vand.u32 4294901760, %v9563_v30  ;;  %v439_v30 = vld [vmem:[%s9001_s14 + $0x18] sm:$0xff] }
 0x102   : > { %7559 = vmatprep.subr.bf16.mxu0 %v7558_v46  ;;  %7585 = vmatpush3.bf16.msra.mxu1 %v9830_v49  ;;  %v7596_v46 = vpack.c.bf16 %v13166_v13, %v13165_v9  ;;  %v7600_v12 = vpack.c.bf16 %v13170_v60, %v13169_v28  ;;  %v13173_v9 = vand.u32 4294901760, %v9557_v62  ;;  %v438_v13 = vld [vmem:[%s9001_s14 + $0x10] sm:$0xff]  ;;  %v13178_v62 = vand.u32 4294901760, %v13150_v35  ;;  %v8494_v60 = vld [vmem:[%s8995_s26 + $0x98] sm:$0xff] }
 0x103   : > { %7587 = vmatprep.subr.bf16.mxu1 %v9836_v38  ;;  %v7602_v38 = vpack.c.bf16 %v13172_v40, %v13171_v15  ;;  %v9995_v28 = vsub.f32 %v454_v37, %v8493_v55  ;;  %v13181_v35 = vand.u32 4294901760, %v13155_v61  ;;  %v13182_v40 = vand.u32 4294901760, %v13156_v59  ;;  %v10044_v55 = vld [vmem:[%s12729_s0 + $0x8] sm:$0xff] }
 0x104   : > { %v9977_v6 = vpack.c.bf16 %v13174_v26, %v13173_v9  ;;  %v9992_v23 = vpack.c.bf16 %v13178_v62, %v13177_v33  ;;  %v13183_v37 = vand.u32 4294901760, %v13157_v19  ;;  %v13187_v61 = vand.u32 4294901760, %v9725_v17  ;;  %v456_v33 = vld [vmem:[%s9001_s14 + $0xa0] sm:$0xff]  ;;  %v457_v62 = vld [vmem:[%s9001_s14 + $0xa8] sm:$0xff]  ;;  %v13189_v17 = vld [vmem:[#allocation10_spill] sm:$0xff] }
 0x105   : > { %7561 = vmatpush3.bf16.msra.mxu0 %v7560_v31  ;;  %v13176_v31 = vand.u32 4294901760, %v9566_v18  ;;  %v13179_v18 = vand.u32 4294901760, %v13151_v63  ;;  %v10012_v9 = vpack.c.bf16 %v13182_v40, %v13181_v35  ;;  %v10036_v19 = vsub.f32 %v9937_v0, %v2344_v14  ;;  %v440_v35 = vld [vmem:[%s9001_s14 + $0x20] sm:$0xff]  ;;  %v441_v40 = vld [vmem:[%s9001_s14 + $0x28] sm:$0xff] }
 0x106   : > { %7595 = vmatprep.subr.bf16.mxu0 %v7594_v24  ;;  %v9998_v24 = vsub.f32 %v455_v45, %v8494_v60  ;;  %7589 = vmatpush3.bf16.msra.mxu1 %v9859_v1  ;;  %v13184_v45 = vand.u32 4294901760, %v13158_v27  ;;  %v10031_v59 = vpack.c.bf16 %v13187_v61, %v13186_v20  ;;  %v8495_v27 = vld [vmem:[%s8995_s26 + $0x10] sm:$0xff]  ;;  %v10047_v29 = vand.u32 4294901760, %v10044_v55 }
 0x107   : > { %v9986_v36 = vpack.c.bf16 %v13176_v31, %v13175_v8  ;;  %v10006_v15 = vpack.c.bf16 %v13180_v32, %v13179_v18  ;;  %v13185_v8 = vand.u32 4294901760, %v9933_v11  ;;  %7591 = vmatprep.subr.bf16.mxu1 %v9866_v50  ;;  %v2230_v31 = vsub.f32 %v438_v13, %v8495_v27  ;;  %v8497_v18 = vld [vmem:[%s8995_s26 + $0x18] sm:$0xff] }
 0x108   : > { %v10018_v26 = vpack.c.bf16 %v13184_v45, %v13183_v37  ;;  %1843 = vmatmul.mubr.f32.vlgmr.msra.gmra.mrb[8].mxu0 %v9814_v34  ;;  %13188 = vst [vmem:[#allocation13_spill] sm:$0xff] %v10047_v29  ;;  %v10053_v60 = vsub.f32 %v9942_v56, %v12834_v52  ;;  %v10058_v13 = vsub.f32 %v9945_v58, %v12833_v4  ;;  %v13191_v37 = vand.u32 4294901760, %v9738_v3  ;;  %v8500_v52 = vld [vmem:[%s8995_s26 + $0x20] sm:$0xff] }
 0x109   : > { %v10023_v63 = vsub.f32 %v9933_v11, %v13185_v8  ;;  %7597 = vmatpush3.bf16.msra.mxu0 %v7596_v46  ;;  %2117 = vmatprep.mubr.f32.mxu0 %v13189_v17  ;;  %v2231_v32 = vsub.f32 %v439_v30, %v8497_v18  ;;  %v13190_v46 = vand.u32 4294901760, %v9733_v39  ;;  %v13192_v8 = vand.u32 4294901760, %v9765_v42  ;;  %v8498_v18 = vld [vmem:[%s8995_s26 + $0xa0] sm:$0xff]  ;;  %v8499_v42 = vld [vmem:[%s8995_s26 + $0xa8] sm:$0xff] }
 0x10a   : > { %7599 = vmatprep.subr.bf16.mxu0 %v7598_v5  ;;  %v13193_v20 = vand.u32 4294901760, %v9776_v7  ;;  %v2347_v27 = vand.u32 4294901760, %v9995_v28  ;;  %v2350_v30 = vand.u32 4294901760, %v9998_v24  ;;  %7593 = vmatpush3.bf16.msra.mxu1 %v9880_v53  ;;  %v13194_v5 = vand.u32 4294901760, %v9786_v57 }
 0x10b   : > { %v10067_v45 = vpack.c.bf16 %v13191_v37, %v13190_v46  ;;  %v13195_v39 = vand.u32 4294901760, %v9791_v16  ;;  %v2248_v46 = vsub.f32 %v456_v33, %v8498_v18  ;;  %v2249_v37 = vsub.f32 %v457_v62, %v8499_v42  ;;  %7627 = vmatprep.subr.bf16.mxu1 %v9486_v47 }
 0x10c   : > { %v10073_v61 = vpack.c.bf16 %v13193_v20, %v13192_v8  ;;  %v12838_v7 = vand.u32 4294901760, %v10023_v63  ;;  %v13196_v8 = vand.u32 4294901760, %v9808_v48  ;;  %v13197_v20 = vand.u32 4294901760, %v9811_v43  ;;  %v10104_v48 = vld [vmem:[%s12729_s0] sm:$0xff] }
 0x10d   : > { %v10082_v3 = vpack.c.bf16 %v13195_v39, %v13194_v5  ;;  %v12837_v57 = vand.u32 4294901760, %v10036_v19  ;;  %v2232_v16 = vsub.f32 %v440_v35, %v8500_v52  ;;  %v8501_v5 = vld [vmem:[%s8995_s26 + $0x28] sm:$0xff]  ;;  %7601 = vmatpush3.bf16.msra.mxu0 %v7600_v12  ;;  %v2299_v33 = vand.u32 4294901760, %v2230_v31 }
 0x10e   : > { %v10092_v4 = vpack.c.bf16 %v13197_v20, %v13196_v8  ;;  %v10097_v39 = vsub.f32 %v441_v40, %v8501_v5  ;;  %v2302_v62 = vand.u32 4294901760, %v2231_v32  ;;  %v12836_v18 = vand.u32 4294901760, %v10053_v60  ;;  %7603 = vmatprep.subr.bf16.mxu0 %v7602_v38 }
 0x10f   : > { %v12835_v47 = vand.u32 4294901760, %v10058_v13  ;;  %v10107_v43 = vand.u32 4294901760, %v10104_v48  ;;  %v13199_v52 = vand.u32 4294901760, %v9814_v34  ;;  %v13200_v12 = vand.u32 4294901760, %v9933_v11 }
 0x110   : > { %v10118_v40 = vsub.f32 %v9995_v28, %v2347_v27  ;;  %v10121_v42 = vsub.f32 %v9998_v24, %v2350_v30  ;;  %v13201_v8 = vand.u32 4294901760, %v9942_v56  ;;  %v13202_v34 = vand.u32 4294901760, %v9945_v58 }
 0x111   : > { %13198 = vst [vmem:[#allocation15_spill] sm:$0xff] %v10107_v43  ;;  %1951 = vmatmul.mubr.f32.vlgmr.msra.gmra.mrb[8].mxu1 %v13199_v52  ;;  %v10115_v35 = vpack.c.bf16 %v2344_v14, %v13200_v12  ;;  %v2353_v38 = vand.u32 4294901760, %v2248_v46  ;;  %v2356_v11 = vand.u32 4294901760, %v2249_v37  ;;  %v2520_v0 = vsub.f32 %v10023_v63, %v12838_v7  ;;  %v458_v14 = vld [vmem:[%s9001_s14 + $0xb0] sm:$0xff]  ;;  %7605 = vmatpush3.bf16.msra.mxu0 %v9977_v6  ;;  %v460_v7 = vld [vmem:[%s9001_s14 + $0xc0] sm:$0xff] }
 0x112   : > { %7629 = vmatpush3.bf16.msra.mxu1 %v9500_v41  ;;  %v10128_v20 = vpack.c.bf16 %v13202_v34, %v13201_v8  ;;  %2221 = vmatprep.mubr.f32.mxu1 %v13189_v17  ;;  %v10136_v41 = vpack.c.bf16 %v2350_v30, %v2347_v27  ;;  %v2527_v58 = vsub.f32 %v10036_v19, %v12837_v57  ;;  %v2305_v56 = vand.u32 4294901760, %v2232_v16  ;;  %v459_v30 = vld [vmem:[%s9001_s14 + $0xb8] sm:$0xff]  ;;  %v8503_v52 = vld [vmem:[%s8995_s26 + $0xb0] sm:$0xff] }
 0x113   : > { %7631 = vmatprep.subr.bf16.mxu1 %v9502_v51  ;;  %v2308_v28 = vand.u32 4294901760, %v10097_v39  ;;  %v10143_v24 = vpack.c.bf16 %v2302_v62, %v2299_v33  ;;  %v10145_v17 = vsub.f32 %v2230_v31, %v2299_v33  ;;  %v2408_v51 = vsub.f32 %v10053_v60, %v12836_v18  ;;  %7607 = vmatprep.subr.bf16.mxu0 %v9986_v36  ;;  %v442_v12 = vld [vmem:[%s9001_s14 + $0x30] sm:$0xff]  ;;  %v443_v8 = vld [vmem:[%s9001_s14 + $0x38] sm:$0xff] }
 0x114   : > { %13203 = vst [vmem:[#allocation16_spill] sm:$0xff] %v10128_v20  ;;  %13204 = vst [vmem:[#allocation8_spill] sm:$0xff] %v10136_v41  ;;  %v2415_v27 = vsub.f32 %v10058_v13, %v12835_v47  ;;  %v10155_v5 = vsub.f32 %v2231_v32, %v2302_v62  ;;  %v2250_v6 = vsub.f32 %v458_v14, %v8503_v52  ;;  %v12843_v31 = vand.u32 4294901760, %v10118_v40  ;;  %v8504_v18 = vld [vmem:[%s8995_s26 + $0xb8] sm:$0xff] }
 0x115   : > { %v10163_v34 = vpack.c.bf16 %v2356_v11, %v2353_v38  ;;  %v10165_v47 = vsub.f32 %v2248_v46, %v2353_v38  ;;  %v10167_v36 = vsub.f32 %v2249_v37, %v2356_v11  ;;  %v2521_v32 = vand.u32 4294901760, %v2520_v0  ;;  %7609 = vmatpush3.bf16.msra.mxu0 %v9992_v23  ;;  %v8505_v37 = vld [vmem:[%s8995_s26 + $0x30] sm:$0xff]  ;;  %v8506_v0 = vld [vmem:[%s8995_s26 + $0x38] sm:$0xff] }
 0x116   : > { %7633 = vmatpush3.bf16.msra.mxu1 %v13153_v22  ;;  %v2528_v62 = vand.u32 4294901760, %v2527_v58  ;;  %v10170_v14 = vpack.c.bf16 %v2308_v28, %v2305_v56  ;;  %v10172_v52 = vsub.f32 %v2232_v16, %v2305_v56  ;;  %v2251_v57 = vsub.f32 %v459_v30, %v8504_v18  ;;  %v461_v22 = vld [vmem:[%s9001_s14 + $0xc8] sm:$0xff]  ;;  %7611 = vmatprep.subr.bf16.mxu0 %v10006_v15  ;;  %v8507_v15 = vld [vmem:[%s8995_s26 + $0xc0] sm:$0xff] }
 0x117   : > { %13205 = vst [vmem:[#allocation9_spill] sm:$0xff] %v10163_v34  ;;  %13206 = vst [vmem:[#allocation18_spill] sm:$0xff] %v10165_v47  ;;  %7635 = vmatprep.subr.bf16.mxu1 %v13154_v10  ;;  %v2409_v46 = vand.u32 4294901760, %v2408_v51  ;;  %v2416_v38 = vand.u32 4294901760, %v2415_v27  ;;  %v2234_v11 = vsub.f32 %v442_v12, %v8505_v37  ;;  %v2235_v33 = vsub.f32 %v443_v8, %v8506_v0  ;;  %v8508_v30 = vld [vmem:[%s8995_s26 + $0xc8] sm:$0xff] }
 0x118   : > { %13207 = vst [vmem:[#allocation19_spill] sm:$0xff] %v10167_v36  ;;  %13208 = vst [vmem:[#allocation20_spill] sm:$0xff] %v10170_v14  ;;  %v2359_v10 = vand.u32 4294901760, %v2250_v6  ;;  %v2534_v16 = vsub.f32 %v10118_v40, %v12843_v31  ;;  %v13209_v18 = vand.u32 4294901760, %v10121_v42  ;;  %v12842_v23 = vand.u32 4294901760, %v10145_v17 }
 0x119   : > { %v10190_v56 = vsub.f32 %v10097_v39, %v2308_v28  ;;  %v12841_v51 = vand.u32 4294901760, %v10155_v5  ;;  %v10194_v27 = vsub.f32 %v460_v7, %v8507_v15  ;;  %v10197_v12 = vsub.f32 %v461_v22, %v8508_v30  ;;  %v444_v39 = vld [vmem:[%s9001_s14 + $0x40] sm:$0xff]  ;;  %7613 = vmatpush3.bf16.msra.mxu0 %v10012_v9  ;;  %v445_v30 = vld [vmem:[%s9001_s14 + $0x48] sm:$0xff] }
 0x11a   : > { %v2541_v58 = vsub.f32 %v10121_v42, %v13209_v18  ;;  %7637 = vmatpush3.bf16.msra.mxu1 %v13159_v25  ;;  %v10200_v8 = vpack.c.bf16 %v2528_v62, %v2521_v32  ;;  %v2362_v37 = vand.u32 4294901760, %v2251_v57  ;;  %v12839_v0 = vand.u32 4294901760, %v10165_v47  ;;  %7615 = vmatprep.subr.bf16.mxu0 %v10018_v26 }
 0x11b   : > { %7639 = vmatprep.subr.bf16.mxu1 %v13160_v44  ;;  %v12840_v25 = vand.u32 4294901760, %v10167_v36  ;;  %v10206_v28 = vpack.c.bf16 %v2416_v38, %v2409_v46  ;;  %v2311_v7 = vand.u32 4294901760, %v2234_v11  ;;  %v2314_v18 = vand.u32 4294901760, %v2235_v33 }
 0x11c   : > { %v10210_v22 = vsub.f32 %v10044_v55, %v10047_v29  ;;  %v10213_v44 = vsub.f32 %v2250_v6, %v2359_v10  ;;  %v2535_v32 = vand.u32 4294901760, %v2534_v16  ;;  %v2542_v62 = vand.u32 4294901760, %v2541_v58  ;;  %v8509_v6 = vld [vmem:[%s8995_s26 + $0x40] sm:$0xff] }
 0x11d   : > { %v2422_v15 = vsub.f32 %v10145_v17, %v12842_v23  ;;  %v2429_v9 = vsub.f32 %v10155_v5, %v12841_v51  ;;  %v2365_v55 = vand.u32 4294901760, %v10194_v27  ;;  %v2368_v26 = vand.u32 4294901760, %v10197_v12  ;;  %7617 = vmatpush3.bf16.msra.mxu0 %v10031_v59  ;;  %v13214_v23 = vld [vmem:[#allocation17_spill] sm:$0xff] }
 0x11e   : > { %7641 = vmatpush3.bf16.msra.mxu1 %v9590_v54  ;;  %v10225_v46 = vsub.f32 %v444_v39, %v8509_v6  ;;  %v10228_v38 = vpack.c.bf16 %v2362_v37, %v2359_v10  ;;  %v10230_v16 = vsub.f32 %v2251_v57, %v2362_v37  ;;  %v2548_v54 = vsub.f32 %v10165_v47, %v12839_v0  ;;  %v462_v10 = vld [vmem:[%s9001_s14 + $0xd0] sm:$0xff]  ;;  %v463_v37 = vld [vmem:[%s9001_s14 + $0xd8] sm:$0xff] }
 0x11f   : > { %7643 = vmatprep.subr.bf16.mxu1 %v13161_v21  ;;  %v2555_v58 = vsub.f32 %v10167_v36, %v12840_v25  ;;  %v10240_v39 = vpack.c.bf16 %v2314_v18, %v2311_v7  ;;  %7619 = vmatprep.subr.bf16.mxu0 %v10067_v45  ;;  %v10248_v0 = vpack.c.bf16 %v2542_v62, %v2535_v32  ;;  %v2423_v51 = vand.u32 4294901760, %v2422_v15  ;;  %v8510_v21 = vld [vmem:[%s8995_s26 + $0x48] sm:$0xff]  ;;  %v446_v47 = vld [vmem:[%s9001_s14 + $0x50] sm:$0xff]  ;;  %v447_v62 = vld [vmem:[%s9001_s14 + $0x58] sm:$0xff] }
 0x120   : > { %13210 = vst [vmem:[#allocation21_spill] sm:$0xff] %v10228_v38  ;;  %v10250_v25 = vsub.f32 %v2234_v11, %v2311_v7  ;;  %v10252_v59 = vsub.f32 %v2235_v33, %v2314_v18  ;;  %v2430_v31 = vand.u32 4294901760, %v2429_v9  ;;  %v10255_v57 = vpack.c.bf16 %v2368_v26, %v2365_v55  ;;  %v8511_v7 = vld [vmem:[%s8995_s26 + $0xd0] sm:$0xff]  ;;  %v8512_v18 = vld [vmem:[%s8995_s26 + $0xd8] sm:$0xff] }
 0x121   : > { %13211 = vst [vmem:[#allocation11_spill] sm:$0xff] %v10240_v39  ;;  %v2237_v36 = vsub.f32 %v445_v30, %v8510_v21  ;;  %v2317_v6 = vand.u32 4294901760, %v10225_v46  ;;  %v2549_v45 = vand.u32 4294901760, %v2548_v54  ;;  %v2556_v11 = vand.u32 4294901760, %v2555_v58  ;;  %7621 = vmatpush3.bf16.msra.mxu0 %v10073_v61 }
 0x122   : > { %13212 = vst [vmem:[#allocation12_spill] sm:$0xff] %v10250_v25  ;;  %13213 = vst [vmem:[#allocation14_spill] sm:$0xff] %v10252_v59  ;;  %7645 = vmatpush3.bf16.msra.mxu1 %v13214_v23  ;;  %v2254_v33 = vsub.f32 %v462_v10, %v8511_v7  ;;  %v2255_v32 = vsub.f32 %v463_v37, %v8512_v18  ;;  %v13216_v23 = vand.u32 4294901760, %v10172_v52  ;;  %v13217_v9 = vand.u32 4294901760, %v10190_v56  ;;  %v8513_v37 = vld [vmem:[%s8995_s26 + $0x50] sm:$0xff] }
 0x123   : > { %13215 = vst [vmem:[#allocation10_spill] sm:$0xff] %v10255_v57  ;;  %7647 = vmatprep.subr.bf16.mxu1 %v9682_v2  ;;  %v12849_v54 = vand.u32 4294901760, %v10213_v44  ;;  %v13218_v58 = vand.u32 4294901760, %v10210_v22  ;;  %7623 = vmatprep.subr.bf16.mxu0 %v10082_v3  ;;  %v10277_v21 = vsub.f32 %v10194_v27, %v2365_v55  ;;  %v10280_v61 = vsub.f32 %v10197_v12, %v2368_v26  ;;  %v464_v55 = vld [vmem:[%s9001_s14 + $0xe0] sm:$0xff]  ;;  %v13219_v12 = vld [vmem:[#allocation23_spill] sm:$0xff] }
 0x124   : > { %v2436_v15 = vsub.f32 %v10172_v52, %v13216_v23  ;;  %v2443_v2 = vsub.f32 %v10190_v56, %v13217_v9  ;;  %v12848_v10 = vand.u32 4294901760, %v10230_v16  ;;  %v10284_v7 = vsub.f32 %v446_v47, %v8513_v37  ;;  %v8514_v9 = vld [vmem:[%s8995_s26 + $0x58] sm:$0xff] }
 0x125   : > { %v2391_v30 = vsub.f32 %v10210_v22, %v13218_v58  ;;  %v2320_v18 = vand.u32 4294901760, %v2237_v36  ;;  %v10288_v23 = vsub.f32 %v10225_v46, %v2317_v6  ;;  %v10291_v3 = vsub.f32 %v447_v62, %v8514_v9  ;;  %7625 = vmatpush3.bf16.msra.mxu0 %v10092_v4  ;;  %v465_v9 = vld [vmem:[%s9001_s14 + $0xe8] sm:$0xff] }
 0x126   : > { %7649 = vmatpush3.bf16.msra.mxu1 %v9830_v49  ;;  %v10296_v26 = vpack.c.bf16 %v2430_v31, %v2423_v51  ;;  %v10298_v47 = vpack.c.bf16 %v2556_v11, %v2549_v45  ;;  %v2371_v58 = vand.u32 4294901760, %v2254_v33  ;;  %v2374_v49 = vand.u32 4294901760, %v2255_v32  ;;  %7659 = vmatprep.subr.bf16.mxu0 %v10115_v35  ;;  %v8515_v45 = vld [vmem:[%s8995_s26 + $0xe0] sm:$0xff]  ;;  %v8518_v51 = vld [vmem:[%s8995_s26 + $0x68] sm:$0xff] }
 0x127   : > { %7651 = vmatprep.subr.bf16.mxu1 %v13219_v12  ;;  %v2437_v37 = vand.u32 4294901760, %v2436_v15  ;;  %v2444_v46 = vand.u32 4294901760, %v2443_v2  ;;  %v2562_v62 = vsub.f32 %v10213_v44, %v12849_v54  ;;  %v2392_v27 = vand.u32 4294901760, %v2391_v30  ;;  %v13223_v54 = vld [vmem:[#allocation22_spill] sm:$0xff]  ;;  %v449_v30 = vld [vmem:[%s9001_s14 + $0x68] sm:$0xff] }
 0x128   : > { %v2569_v31 = vsub.f32 %v10230_v16, %v12848_v10  ;;  %v10312_v11 = vsub.f32 %v464_v55, %v8515_v45  ;;  %v10315_v15 = vpack.c.bf16 %v2320_v18, %v2317_v6  ;;  %v10317_v2 = vsub.f32 %v2237_v36, %v2320_v18  ;;  %2119 = vmatmul.mubr.f32.vlgmr.msra.gmra.mrb[10].mxu0 %v13223_v54  ;;  %v8516_v6 = vld [vmem:[%s8995_s26 + $0xe8] sm:$0xff]  ;;  %v448_v45 = vld [vmem:[%s9001_s14 + $0x60] sm:$0xff] }
 0x129   : > { %v13222_v12 = vand.u32 4294901760, %v10250_v25  ;;  %v10327_v55 = vpack.c.bf16 %v2374_v49, %v2371_v58  ;;  %v10332_v36 = vsub.f32 %v465_v9, %v8516_v6  ;;  %7661 = vmatpush3.bf16.msra.mxu0 %v10128_v20  ;;  %v10340_v4 = vsub.f32 %v2255_v32, %v2374_v49  ;;  %2393 = vmatprep.mubr.f32.mxu0 %v2392_v27 }
 0x12a   : > { %7653 = vmatpush3.bf16.msra.mxu1 %v9859_v1  ;;  %13220 = vst [vmem:[#allocation17_spill] sm:$0xff] %v10315_v15  ;;  %13221 = vst [vmem:[#allocation23_spill] sm:$0xff] %v10317_v2  ;;  %v10329_v1 = vsub.f32 %v2254_v33, %v2371_v58  ;;  %v466_v33 = vld [vmem:[%s9001_s14 + $0xf0] sm:$0xff]  ;;  %v467_v58 = vld [vmem:[%s9001_s14 + $0xf8] sm:$0xff]  ;;  %7663 = vmatprep.subr.bf16.mxu0 %v10136_v41  ;;  %v2570_v9 = vand.u32 4294901760, %v2569_v31  ;;  %v13227_v6 = vand.u32 4294901760, %v10284_v7 }
 0x12b   : > { %v10323_v10 = vsub.f32 %v10250_v25, %v13222_v12  ;;  %7655 = vmatprep.subr.bf16.mxu1 %v9866_v50  ;;  %13224 = vst [vmem:[#allocation22_spill] sm:$0xff] %v10327_v55  ;;  %v10338_v12 = vpack.c.bf16 %v2444_v46, %v2437_v37  ;;  %13226 = vst [vmem:[#allocation25_spill] sm:$0xff] %v10340_v4  ;;  %v2563_v50 = vand.u32 4294901760, %v2562_v62  ;;  %v13228_v32 = vand.u32 4294901760, %v10252_v59  ;;  %v8517_v31 = vld [vmem:[%s8995_s26 + $0x60] sm:$0xff] }
 0x12c   : > { %13225 = vst [vmem:[#allocation24_spill] sm:$0xff] %v10329_v1  ;;  %v10349_v18 = vsub.f32 %v10284_v7, %v13227_v6  ;;  %v13229_v27 = vand.u32 4294901760, %v10291_v3  ;;  %v10363_v6 = vsub.f32 %v448_v45, %v8517_v31  ;;  %v10366_v25 = vsub.f32 %v449_v30, %v8518_v51  ;;  %v451_v45 = vld [vmem:[%s9001_s14 + $0x78] sm:$0xff] }
 0x12d   : > { %v2457_v49 = vsub.f32 %v10252_v59, %v13228_v32  ;;  %v2451_v62 = vand.u32 4294901760, %v10323_v10  ;;  %v13230_v37 = vand.u32 4294901760, %v10277_v21  ;;  %v8519_v59 = vld [vmem:[%s8995_s26 + $0xf0] sm:$0xff]  ;;  %7665 = vmatpush3.bf16.msra.mxu0 %v10143_v24  ;;  %v13231_v51 = vand.u32 4294901760, %v10280_v61 }
 0x12e   : > { %7657 = vmatpush3.bf16.msra.mxu1 %v9880_v53  ;;  %v10359_v46 = vsub.f32 %v10291_v3, %v13229_v27  ;;  %v10374_v41 = vsub.f32 %v466_v33, %v8519_v59  ;;  %v8520_v27 = vld [vmem:[%s8995_s26 + $0xf8] sm:$0xff]  ;;  %v450_v10 = vld [vmem:[%s9001_s14 + $0x70] sm:$0xff]  ;;  %7667 = vmatprep.subr.bf16.mxu0 %v10163_v34  ;;  %v7702_v33 = vpack.c.bf16 %v2570_v9, %v2563_v50  ;;  %v13232_v31 = vand.u32 4294901760, %v10312_v11 }
 0x12f   : > { %7691 = vmatprep.subr.bf16.mxu1 %v10200_v8  ;;  %v2576_v53 = vsub.f32 %v10277_v21, %v13230_v37  ;;  %v10377_v20 = vsub.f32 %v467_v58, %v8520_v27  ;;  %v2583_v8 = vsub.f32 %v10280_v61, %v13231_v51  ;;  %v2458_v58 = vand.u32 4294901760, %v2457_v49  ;;  %v8521_v59 = vld [vmem:[%s8995_s26 + $0x70] sm:$0xff] }
 0x130   : > { %v10393_v27 = vsub.f32 %v10312_v11, %v13232_v31  ;;  %v12860_v32 = vand.u32 4294901760, %v10340_v4  ;;  %v12861_v51 = vand.u32 4294901760, %v10363_v6  ;;  %v10400_v30 = vsub.f32 %v450_v10, %v8521_v59 }
 0x131   : > { %2223 = vmatmul.mubr.f32.vlgmr.msra.gmra.mrb[10].mxu1 %v13223_v54  ;;  %v8522_v54 = vld [vmem:[%s8995_s26 + $0x78] sm:$0xff]  ;;  %v13233_v50 = vand.u32 4294901760, %v10332_v36  ;;  %7669 = vmatpush3.bf16.msra.mxu0 %v10170_v14  ;;  %v2584_v10 = vand.u32 4294901760, %v2583_v8  ;;  %v13236_v37 = vand.u32 4294901760, %v10329_v1  ;;  %v7704_v31 = vpack.c.bf16 %v2458_v58, %v2451_v62 }
 0x132   : > { %7693 = vmatpush3.bf16.msra.mxu1 %v10206_v28  ;;  %v10403_v34 = vsub.f32 %v451_v45, %v8522_v54  ;;  %2629 = vmatprep.mubr.f32.mxu1 %v10047_v29  ;;  %v2577_v28 = vand.u32 4294901760, %v2576_v53  ;;  %v13234_v45 = vand.u32 4294901760, %v10288_v23  ;;  %v13235_v54 = vand.u32 4294901760, %v10317_v2 }
 0x133   : > { %7695 = vmatprep.subr.bf16.mxu1 %v10248_v0  ;;  %v10410_v9 = vsub.f32 %v10332_v36, %v13233_v50  ;;  %v2590_v50 = vsub.f32 %v10329_v1, %v13236_v37  ;;  %7671 = vmatprep.subr.bf16.mxu0 %v10228_v38  ;;  %v2597_v53 = vsub.f32 %v10340_v4, %v12860_v32  ;;  %v13237_v37 = vand.u32 4294901760, %v10366_v25 }
 0x134   : > { %v2464_v59 = vsub.f32 %v10288_v23, %v13234_v45  ;;  %v2471_v0 = vsub.f32 %v10317_v2, %v13235_v54  ;;  %v10435_v54 = vsub.f32 %v10363_v6, %v12861_v51  ;;  %v2335_v32 = vand.u32 4294901760, %v10400_v30 }
 0x135   : > { %v10440_v49 = vsub.f32 %v10366_v25, %v13237_v37  ;;  %v2338_v8 = vand.u32 4294901760, %v10403_v34  ;;  %v13238_v45 = vand.u32 4294901760, %v10374_v41  ;;  %v13239_v51 = vand.u32 4294901760, %v10377_v20  ;;  %7673 = vmatpush3.bf16.msra.mxu0 %v10240_v39 }
 0x136   : > { %7697 = vmatpush3.bf16.msra.mxu1 %v10296_v26  ;;  %v7706_v38 = vpack.c.bf16 %v2584_v10, %v2577_v28  ;;  %v2465_v14 = vand.u32 4294901760, %v2464_v59  ;;  %v2472_v4 = vand.u32 4294901760, %v2471_v0  ;;  %v2591_v1 = vand.u32 4294901760, %v2590_v50  ;;  %7675 = vmatprep.subr.bf16.mxu0 %v10255_v57 }
 0x137   : > { %7699 = vmatprep.subr.bf16.mxu1 %v10298_v47  ;;  %v10448_v26 = vsub.f32 %v10374_v41, %v13238_v45  ;;  %v10453_v29 = vsub.f32 %v10377_v20, %v13239_v51  ;;  %v2598_v47 = vand.u32 4294901760, %v2597_v53  ;;  %v13240_v62 = vand.u32 4294901760, %v10349_v18 }
 0x138   : > { %v13241_v45 = vand.u32 4294901760, %v10359_v46  ;;  %v13242_v2 = vand.u32 4294901760, %v10393_v27  ;;  %v10469_v28 = vsub.f32 %v10400_v30, %v2335_v32  ;;  %v10472_v10 = vsub.f32 %v10403_v34, %v2338_v8 }
 0x139   : > { %v2478_v58 = vsub.f32 %v10349_v18, %v13240_v62  ;;  %v13243_v50 = vand.u32 4294901760, %v10410_v9  ;;  %7677 = vmatpush3.bf16.msra.mxu0 %v10315_v15  ;;  %v13244_v34 = vand.u32 4294901760, %v10284_v7  ;;  %v13245_v62 = vand.u32 4294901760, %v10291_v3 }
 0x13a   : > { %v2485_v51 = vsub.f32 %v10359_v46, %v13241_v45  ;;  %v2604_v37 = vsub.f32 %v10393_v27, %v13242_v2  ;;  %7701 = vmatpush3.bf16.msra.mxu1 %v10338_v12  ;;  %v10481_v2 = vsub.f32 %v10104_v48, %v10107_v43  ;;  %v7708_v48 = vpack.c.bf16 %v2472_v4, %v2465_v14 }
 0x13b   : > { %7703 = vmatprep.subr.bf16.mxu1 %v7702_v33  ;;  %v2611_v53 = vsub.f32 %v10410_v9, %v13243_v50  ;;  %v10490_v45 = vpack.c.bf16 %v13245_v62, %v13244_v34  ;;  %v13246_v33 = vand.u32 4294901760, %v10312_v11  ;;  %v13247_v50 = vand.u32 4294901760, %v10332_v36  ;;  %7679 = vmatprep.subr.bf16.mxu0 %v10327_v55 }
 0x13c   : > { %v7710_v12 = vpack.c.bf16 %v2598_v47, %v2591_v1  ;;  %v2479_v59 = vand.u32 4294901760, %v2478_v58  ;;  %v2486_v30 = vand.u32 4294901760, %v2485_v51  ;;  %v2605_v57 = vand.u32 4294901760, %v2604_v37 }
 0x13d   : > { %v10496_v0 = vpack.c.bf16 %v13247_v50, %v13246_v33  ;;  %v13248_v7 = vand.u32 4294901760, %v10435_v54  ;;  %v13249_v34 = vand.u32 4294901760, %v10440_v49  ;;  %v12878_v36 = vand.u32 4294901760, %v10469_v28  ;;  %7681 = vmatpush3.bf16.msra.mxu0 %v10490_v45 }
 0x13e   : > { %7705 = vmatpush3.bf16.msra.mxu1 %v7704_v31  ;;  %v12877_v62 = vand.u32 4294901760, %v10472_v10  ;;  %v2612_v14 = vand.u32 4294901760, %v2611_v53  ;;  %v12876_v4 = vand.u32 4294901760, %v10481_v2  ;;  %v13250_v1 = vand.u32 4294901760, %v10448_v26 }
 0x13f   : > { %v2492_v3 = vsub.f32 %v10435_v54, %v13248_v7  ;;  %v2499_v11 = vsub.f32 %v10440_v49, %v13249_v34  ;;  %7707 = vmatprep.subr.bf16.mxu1 %v7706_v38  ;;  %v13251_v37 = vand.u32 4294901760, %v10453_v29  ;;  %v13252_v58 = vand.u32 4294901760, %v10363_v6  ;;  %7683 = vmatprep.subr.bf16.mxu0 %v10496_v0 }
 0x140   : > { %v2618_v31 = vsub.f32 %v10448_v26, %v13250_v1  ;;  %v13253_v51 = vand.u32 4294901760, %v10366_v25  ;;  %v13254_v38 = vand.u32 4294901760, %v10374_v41  ;;  %v13255_v53 = vand.u32 4294901760, %v10377_v20 }
 0x141   : > { %v2625_v47 = vsub.f32 %v10453_v29, %v13251_v37  ;;  %v7712_v7 = vpack.c.bf16 %v2486_v30, %v2479_v59  ;;  %v2493_v34 = vand.u32 4294901760, %v2492_v3  ;;  %v2500_v1 = vand.u32 4294901760, %v2499_v11 }
 0x142   : > { %v10519_v33 = vpack.c.bf16 %v13253_v51, %v13252_v58  ;;  %v10526_v50 = vpack.c.bf16 %v13255_v53, %v13254_v38  ;;  %7709 = vmatpush3.bf16.msra.mxu1 %v7708_v48  ;;  %v2506_v6 = vsub.f32 %v10469_v28, %v12878_v36  ;;  %v2513_v25 = vsub.f32 %v10472_v10, %v12877_v62  ;;  %v13257_v51 = vld [vmem:[#allocation19_spill] sm:$0xff]  ;;  %v8524_v36 = vld [vmem:[%s8995_s26 + $0x188] sm:$0xff] }
 0x143   : > { %7711 = vmatprep.subr.bf16.mxu1 %v7710_v12  ;;  %v7714_v37 = vpack.c.bf16 %v2612_v14, %v2605_v57  ;;  %v2397_v20 = vsub.f32 %v10481_v2, %v12876_v4  ;;  %v2619_v41 = vand.u32 4294901760, %v2618_v31  ;;  %v2626_v58 = vand.u32 4294901760, %v2625_v47  ;;  %v13256_v47 = vld [vmem:[#allocation18_spill] sm:$0xff]  ;;  %v8523_v4 = vld [vmem:[%s8995_s26 + $0x180] sm:$0xff] }
 0x144   : > { %7685 = vmatpush3.bf16.msra.mxu0 %v10519_v33  ;;  %v10538_v59 = vpack.c.bf16 %v2338_v8, %v2335_v32  ;;  %v7722_v30 = vpack.c.bf16 %v10036_v19, %v10023_v63  ;;  %v7716_v48 = vpack.c.bf16 %v2500_v1, %v2493_v34  ;;  %v2507_v3 = vand.u32 4294901760, %v2506_v6  ;;  %v13258_v34 = vld [vmem:[#allocation16_spill] sm:$0xff] }
 0x145   : > { %7687 = vmatprep.subr.bf16.mxu0 %v10526_v50  ;;  %v2514_v12 = vand.u32 4294901760, %v2513_v25  ;;  %v2398_v57 = vand.u32 4294901760, %v2397_v20  ;;  %v7718_v11 = vpack.c.bf16 %v2626_v58, %v2619_v41  ;;  %v7724_v14 = vpack.c.bf16 %v10058_v13, %v10053_v60  ;;  %v13260_v6 = vld [vmem:[#allocation8_spill] sm:$0xff]  ;;  %v13263_v58 = vld [vmem:[#allocation9_spill] sm:$0xff] }
 0x146   : > { %7713 = vmatpush3.bf16.msra.mxu1 %v7712_v7  ;;  %v7726_v32 = vpack.c.bf16 %v10121_v42, %v10118_v40  ;;  %v7728_v31 = vpack.c.bf16 %v10155_v5, %v10145_v17  ;;  %v7730_v38 = vpack.c.bf16 %v13257_v51, %v13256_v47  ;;  %v7732_v53 = vpack.c.bf16 %v10190_v56, %v10172_v52  ;;  %v13261_v25 = vld [vmem:[#allocation12_spill] sm:$0xff] }
 0x147   : > { %7715 = vmatprep.subr.bf16.mxu1 %v7714_v37  ;;  %v7720_v8 = vpack.c.bf16 %v2514_v12, %v2507_v3  ;;  %v7734_v7 = vpack.c.bf16 %v10230_v16, %v10213_v44  ;;  %v13259_v1 = vand.u32 4294901760, %v10210_v22  ;;  %v13262_v37 = vld [vmem:[#allocation14_spill] sm:$0xff]  ;;  %v7738_v41 = vpack.c.bf16 %v10280_v61, %v10277_v21  ;;  %v13266_v3 = vld [vmem:[#allocation25_spill] sm:$0xff] }
 0x148   : > { %7689 = vmatpush3.bf16.msra.mxu0 %v10538_v59  ;;  %v7736_v20 = vpack.c.bf16 %v13262_v37, %v13261_v25 }
 0x149   : > { %7723 = vmatprep.subr.bf16.mxu0 %v7722_v30 }
 0x14a   : > { %7717 = vmatpush3.bf16.msra.mxu1 %v7716_v48  ;;  %v13265_v48 = vld [vmem:[#allocation24_spill] sm:$0xff] }
 0x14b   : > { %2399 = vmatmul.mubr.f32.vlgmr.msra.gmra.mrb[12].mxu0 %v2398_v57  ;;  %7719 = vmatprep.subr.bf16.mxu1 %v7718_v11  ;;  %v7742_v12 = vpack.c.bf16 %v13266_v3, %v13265_v48  ;;  %v13267_v57 = vld [vmem:[#allocation20_spill] sm:$0xff]  ;;  %v13268_v11 = vld [vmem:[#allocation21_spill] sm:$0xff] }
 0x14c   : > { %7725 = vmatpush3.bf16.msra.mxu0 %v7724_v14  ;;  %2766 = vmatprep.mubr.f32.mxu0 %v10210_v22  ;;  %v13264_v22 = vld [vmem:[#allocation23_spill] sm:$0xff]  ;;  %v7744_v14 = vpack.c.bf16 %v10359_v46, %v10349_v18 }
 0x14d   : > { %7727 = vmatprep.subr.bf16.mxu0 %v7726_v32  ;;  %v7740_v30 = vpack.c.bf16 %v13264_v22, %v10288_v23  ;;  %v7746_v32 = vpack.c.bf16 %v10410_v9, %v10393_v27 }
 0x14e   : > { %7721 = vmatpush3.bf16.msra.mxu1 %v7720_v8 }
 0x14f   : > { %7755 = vmatprep.subr.bf16.mxu1 %v10115_v35 }
 0x150   : > { %7729 = vmatpush3.bf16.msra.mxu0 %v7728_v31  ;;  %v484_v31 = vld [vmem:[%s9001_s14 + $0x180] sm:$0xff] }
 0x151   : > { %2631 = vmatmul.mubr.f32.vlgmr.msra.gmra.mrb[12].mxu1 %v10107_v43  ;;  %7731 = vmatprep.subr.bf16.mxu0 %v7730_v38  ;;  %v485_v38 = vld [vmem:[%s9001_s14 + $0x188] sm:$0xff]  ;;  %v10590_v62 = vsub.f32 %v484_v31, %v8523_v4 }
 0x152   : > { %7757 = vmatpush3.bf16.msra.mxu1 %v13258_v34  ;;  %2873 = vmatprep.mubr.f32.mxu1 %v13259_v1  ;;  %v7748_v1 = vpack.c.bf16 %v10440_v49, %v10435_v54  ;;  %v10593_v43 = vsub.f32 %v485_v38, %v8524_v36  ;;  %v7752_v36 = vpack.c.bf16 %v10472_v10, %v10469_v28  ;;  %v13270_v38 = vand.u32 4294901760, %v10023_v63  ;;  %v8528_v63 = vld [vmem:[%s8995_s26 + $0x198] sm:$0xff] }
 0x153   : > { %7759 = vmatprep.subr.bf16.mxu1 %v13260_v6 }
 0x154   : > { %7733 = vmatpush3.bf16.msra.mxu0 %v7732_v53  ;;  %v13269_v53 = vld [vmem:[#allocation10_spill] sm:$0xff] }
 0x155   : > { %7735 = vmatprep.subr.bf16.mxu0 %v7734_v7 }
 0x156   : > { %7761 = vmatpush3.bf16.msra.mxu1 %v10143_v24 }
 0x157   : > { %7763 = vmatprep.subr.bf16.mxu1 %v13263_v58 }
 0x158   : > { %7737 = vmatpush3.bf16.msra.mxu0 %v7736_v20 }
 0x159   : > { %7739 = vmatprep.subr.bf16.mxu0 %v7738_v41  ;;  %v468_v41 = vld [vmem:[%s9001_s14 + $0x100] sm:$0xff] }
 0x15a   : > { %7765 = vmatpush3.bf16.msra.mxu1 %v13267_v57  ;;  %v8527_v57 = vld [vmem:[%s8995_s26 + $0x190] sm:$0xff] }
 0x15b   : > { %7767 = vmatprep.subr.bf16.mxu1 %v13268_v11  ;;  %v6046_v8 = vpop.f32.mrb[0].mxu0 }
 0x15c   : > { %7741 = vmatpush3.bf16.msra.mxu0 %v7740_v30  ;;  %v6047_v7 = vpop.f32.mrb[1].mxu0  ;;  %v469_v30 = vld [vmem:[%s9001_s14 + $0x108] sm:$0xff] }
 0x15d   : > { %7743 = vmatprep.subr.bf16.mxu0 %v7742_v12  ;;  %v6048_v20 = vadd.f32 %v6047_v7, %v6046_v8  ;;  %v7750_v12 = vpack.c.bf16 %v10453_v29, %v10448_v26  ;;  %v8526_v8 = vld [vmem:[%s8995_s26 + $0x108] sm:$0xff] }
 0x15e   : > { %7769 = vmatpush3.bf16.msra.mxu1 %v10240_v39  ;;  %v10601_v7 = vsub.f32 %v469_v30, %v8526_v8  ;;  %v487_v39 = vld [vmem:[%s9001_s14 + $0x198] sm:$0xff]  ;;  %v3206_v30 = vand.u32 4294901760, %v10593_v43 }
 0x15f   : > { %7771 = vmatprep.subr.bf16.mxu1 %v13269_v53  ;;  %v10622_v58 = vsub.f32 %v487_v39, %v8528_v63  ;;  %v13282_v63 = vand.u32 4294901760, %v10213_v44 }
 0x160   : > { %7745 = vmatpush3.bf16.msra.mxu0 %v7744_v14  ;;  %v8525_v14 = vld [vmem:[%s8995_s26 + $0x100] sm:$0xff]  ;;  %v6081_v4 = vpop.f32.mrb[0].mxu1 }
 0x161   : > { %7747 = vmatprep.subr.bf16.mxu0 %v7746_v32  ;;  %v10598_v53 = vsub.f32 %v468_v41, %v8525_v14  ;;  %v486_v32 = vld [vmem:[%s9001_s14 + $0x190] sm:$0xff]  ;;  %v6082_v31 = vpop.f32.mrb[1].mxu1  ;;  %v3203_v14 = vand.u32 4294901760, %v10590_v62 }
 0x162   : > { %7773 = vmatpush3.bf16.msra.mxu1 %v10315_v15  ;;  %v6083_v8 = vadd.f32 %v6082_v31, %v6081_v4  ;;  %v13273_v15 = vand.u32 4294901760, %v10058_v13  ;;  %v13276_v31 = vand.u32 4294901760, %v10145_v17  ;;  %v13280_v17 = vand.u32 4294901760, %v10172_v52 }
 0x163   : > { %7775 = vmatprep.subr.bf16.mxu1 %v10327_v55  ;;  %v13271_v55 = vand.u32 4294901760, %v10036_v19  ;;  %v13274_v19 = vand.u32 4294901760, %v10118_v40  ;;  %v13278_v40 = vand.u32 4294901760, %v13256_v47  ;;  %v13285_v47 = vand.u32 4294901760, %v13262_v37 }
 0x164   : > { %7749 = vmatpush3.bf16.msra.mxu0 %v7748_v1  ;;  %v13272_v1 = vand.u32 4294901760, %v10053_v60  ;;  %v13277_v60 = vand.u32 4294901760, %v10155_v5  ;;  %v10636_v39 = vadd.f32 %v6083_v8, %v6048_v20  ;;  %v13281_v5 = vand.u32 4294901760, %v10190_v56 }
 0x165   : > { %7751 = vmatprep.subr.bf16.mxu0 %v7750_v12  ;;  %v7786_v41 = vpack.c.bf16 %v13271_v55, %v13270_v38  ;;  %v10619_v12 = vsub.f32 %v486_v32, %v8527_v57  ;;  %v13275_v55 = vand.u32 4294901760, %v10121_v42  ;;  %v3158_v57 = vand.u32 4294901760, %v10601_v7  ;;  %v470_v32 = vld [vmem:[%s9001_s14 + $0x110] sm:$0xff] }
 0x166   : > { %7777 = vmatpush3.bf16.msra.mxu1 %v10490_v45  ;;  %v7788_v11 = vpack.c.bf16 %v13273_v15, %v13272_v1  ;;  %v7792_v13 = vpack.c.bf16 %v13277_v60, %v13276_v31  ;;  %v3155_v15 = vand.u32 4294901760, %v10598_v53  ;;  %v13279_v42 = vand.u32 4294901760, %v13257_v51  ;;  %v8529_v31 = vld [vmem:[%s8995_s26 + $0x110] sm:$0xff] }
 0x167   : > { %7779 = vmatprep.subr.bf16.mxu1 %v10496_v0  ;;  %v7790_v4 = vpack.c.bf16 %v13275_v55, %v13274_v19  ;;  %v10646_v1 = vpack.c.bf16 %v13281_v5, %v13280_v17  ;;  %v13283_v19 = vand.u32 4294901760, %v10230_v16  ;;  %v13284_v20 = vand.u32 4294901760, %v13261_v25  ;;  %v471_v25 = vld [vmem:[%s9001_s14 + $0x118] sm:$0xff] }
 0x168   : > { %7753 = vmatpush3.bf16.msra.mxu0 %v7752_v36  ;;  %v7794_v38 = vpack.c.bf16 %v13279_v42, %v13278_v40  ;;  %v13286_v36 = vand.u32 4294901760, %v10277_v21  ;;  %v13287_v52 = vand.u32 4294901760, %v10280_v61  ;;  %v10669_v44 = vsub.f32 %v10590_v62, %v3203_v14  ;;  %v488_v40 = vld [vmem:[%s9001_s14 + $0x1a0] sm:$0xff]  ;;  %v10693_v42 = vld [vmem:[%s12729_s0 + $0x18] sm:$0xff] }
 0x169   : > { %v10652_v55 = vpack.c.bf16 %v13283_v19, %v13282_v63  ;;  %7787 = vmatprep.subr.bf16.mxu0 %v7786_v41  ;;  %v10658_v51 = vpack.c.bf16 %v13285_v47, %v13284_v20  ;;  %v10674_v16 = vsub.f32 %v10593_v43, %v3206_v30  ;;  %v13288_v37 = vand.u32 4294901760, %v10288_v23  ;;  %v10719_v19 = vld [vmem:[%s12729_s0 + $0x10] sm:$0xff] }
 0x16a   : > { %v10664_v56 = vpack.c.bf16 %v13287_v52, %v13286_v36  ;;  %7781 = vmatpush3.bf16.msra.mxu1 %v10519_v33  ;;  %v13289_v21 = vand.u32 4294901760, %v13264_v22  ;;  %v3209_v41 = vand.u32 4294901760, %v10619_v12  ;;  %v3212_v8 = vand.u32 4294901760, %v10622_v58 }
 0x16b   : > { %v10687_v60 = vsub.f32 %v470_v32, %v8529_v31  ;;  %v10696_v23 = vand.u32 4294901760, %v10693_v42  ;;  %2769 = vmatmul.mubr.f32.vlgmr.msra.gmra.mrb[14].mxu0 %v10481_v2  ;;  %7783 = vmatprep.subr.bf16.mxu1 %v10526_v50  ;;  %v13291_v22 = vand.u32 4294901760, %v13265_v48  ;;  %v13292_v32 = vand.u32 4294901760, %v13266_v3  ;;  %v8532_v31 = vld [vmem:[%s8995_s26 + $0x118] sm:$0xff] }
 0x16c   : > { %v10682_v61 = vpack.c.bf16 %v13289_v21, %v13288_v37  ;;  %v10709_v5 = vsub.f32 %v10598_v53, %v3155_v15  ;;  %v10714_v63 = vsub.f32 %v10601_v7, %v3158_v57  ;;  %v10722_v48 = vand.u32 4294901760, %v10719_v19  ;;  %7789 = vmatpush3.bf16.msra.mxu0 %v7788_v11  ;;  %v13298_v21 = vld [vmem:[#allocation13_spill] sm:$0xff] }
 0x16d   : > { %13290 = vst [vmem:[#allocation18_spill] sm:$0xff] %v10696_v23  ;;  %v10704_v17 = vpack.c.bf16 %v13292_v32, %v13291_v22  ;;  %v13294_v3 = vand.u32 4294901760, %v10349_v18  ;;  %v13295_v20 = vand.u32 4294901760, %v10359_v46  ;;  %v13296_v36 = vand.u32 4294901760, %v10393_v27  ;;  %3043 = vmatprep.mubr.f32.mxu0 %v13298_v21  ;;  %7791 = vmatprep.subr.bf16.mxu0 %v7790_v4  ;;  %v489_v46 = vld [vmem:[%s9001_s14 + $0x1a8] sm:$0xff] }
 0x16e   : > { %13293 = vst [vmem:[#allocation19_spill] sm:$0xff] %v10722_v48  ;;  %v13297_v52 = vand.u32 4294901760, %v10410_v9  ;;  %v2263_v22 = vsub.f32 %v471_v25, %v8532_v31  ;;  %v13299_v32 = vand.u32 4294901760, %v10435_v54  ;;  %v13300_v11 = vand.u32 4294901760, %v10440_v49  ;;  %7785 = vmatpush3.bf16.msra.mxu1 %v10538_v59  ;;  %v8536_v9 = vld [vmem:[%s8995_s26 + $0x128] sm:$0xff] }
 0x16f   : > { %v10728_v47 = vpack.c.bf16 %v13295_v20, %v13294_v3  ;;  %v8533_v3 = vld [vmem:[%s8995_s26 + $0x1a0] sm:$0xff]  ;;  %v12888_v27 = vand.u32 4294901760, %v10669_v44  ;;  %v13301_v54 = vand.u32 4294901760, %v10448_v26  ;;  %v13302_v49 = vand.u32 4294901760, %v10453_v29  ;;  %7819 = vmatprep.subr.bf16.mxu1 %v10115_v35 }
 0x170   : > { %v10734_v37 = vpack.c.bf16 %v13297_v52, %v13296_v36  ;;  %v10742_v18 = vpack.c.bf16 %v13300_v11, %v13299_v32  ;;  %v10746_v20 = vsub.f32 %v488_v40, %v8533_v3  ;;  %v472_v36 = vld [vmem:[%s9001_s14 + $0x120] sm:$0xff]  ;;  %v473_v52 = vld [vmem:[%s9001_s14 + $0x128] sm:$0xff]  ;;  %v10760_v25 = vsub.f32 %v10619_v12, %v3209_v41  ;;  %7793 = vmatpush3.bf16.msra.mxu0 %v7792_v13 }
 0x171   : > { %v10757_v4 = vpack.c.bf16 %v13302_v49, %v13301_v54  ;;  %v10763_v40 = vsub.f32 %v10622_v58, %v3212_v8  ;;  %v3161_v31 = vand.u32 4294901760, %v10687_v60  ;;  %v13303_v32 = vand.u32 4294901760, %v10469_v28  ;;  %v8534_v54 = vld [vmem:[%s8995_s26 + $0x1a8] sm:$0xff]  ;;  %v8535_v49 = vld [vmem:[%s8995_s26 + $0x120] sm:$0xff]  ;;  %7795 = vmatprep.subr.bf16.mxu0 %v7794_v38 }
 0x172   : > { %v13304_v26 = vand.u32 4294901760, %v10472_v10  ;;  %v10777_v12 = vpack.c.bf16 %v3206_v30, %v3203_v14  ;;  %v12887_v58 = vand.u32 4294901760, %v10709_v5  ;;  %v12884_v11 = vand.u32 4294901760, %v10714_v63 }
 0x173   : > { %v3164_v3 = vand.u32 4294901760, %v2263_v22  ;;  %v2281_v35 = vsub.f32 %v489_v46, %v8534_v54  ;;  %v2264_v28 = vsub.f32 %v472_v36, %v8535_v49  ;;  %v10784_v10 = vsub.f32 %v473_v52, %v8536_v9  ;;  %v475_v9 = vld [vmem:[%s9001_s14 + $0x138] sm:$0xff] }
 0x174   : > { %v10771_v29 = vpack.c.bf16 %v13304_v26, %v13303_v32  ;;  %v490_v32 = vld [vmem:[%s9001_s14 + $0x1b0] sm:$0xff]  ;;  %v491_v26 = vld [vmem:[%s9001_s14 + $0x1b8] sm:$0xff]  ;;  %v13305_v62 = vand.u32 4294901760, %v10481_v2  ;;  %v10794_v43 = vpack.c.bf16 %v3158_v57, %v3155_v15  ;;  %v3215_v14 = vand.u32 4294901760, %v10746_v20  ;;  %7797 = vmatpush3.bf16.msra.mxu0 %v10646_v1 }
 0x175   : > { %v3382_v30 = vsub.f32 %v10669_v44, %v12888_v27  ;;  %v13306_v13 = vand.u32 4294901760, %v10674_v16  ;;  %v10804_v53 = vpack.c.bf16 %v3212_v8, %v3209_v41  ;;  %v10807_v7 = vsub.f32 %v10687_v60, %v3161_v31  ;;  %v8537_v41 = vld [vmem:[%s8995_s26 + $0x1b0] sm:$0xff]  ;;  %v8538_v60 = vld [vmem:[%s8995_s26 + $0x1b8] sm:$0xff]  ;;  %7799 = vmatprep.subr.bf16.mxu0 %v10652_v55 }
 0x176   : > { %2877 = vmatmul.mubr.f32.vlgmr.msra.gmra.mrb[14].mxu1 %v13305_v62  ;;  %v12885_v15 = vand.u32 4294901760, %v10760_v25  ;;  %v12886_v57 = vand.u32 4294901760, %v10763_v40  ;;  %v3270_v38 = vsub.f32 %v10709_v5, %v12887_v58  ;;  %v2282_v8 = vsub.f32 %v490_v32, %v8537_v41  ;;  %v8540_v55 = vld [vmem:[%s8995_s26 + $0x138] sm:$0xff] }
 0x177   : > { %v3389_v2 = vsub.f32 %v10674_v16, %v13306_v13  ;;  %7821 = vmatpush3.bf16.msra.mxu1 %v13258_v34  ;;  %13307 = vst [vmem:[#allocation16_spill] sm:$0xff] %v10807_v7  ;;  %3147 = vmatprep.mubr.f32.mxu1 %v13298_v21  ;;  %v3277_v34 = vsub.f32 %v10714_v63, %v12884_v11  ;;  %v474_v21 = vld [vmem:[%s9001_s14 + $0x130] sm:$0xff]  ;;  %v3218_v36 = vand.u32 4294901760, %v2281_v35  ;;  %v3167_v52 = vand.u32 4294901760, %v2264_v28 }
 0x178   : > { %7823 = vmatprep.subr.bf16.mxu1 %v13260_v6  ;;  %v10821_v46 = vsub.f32 %v491_v26, %v8538_v60  ;;  %v10826_v6 = vpack.c.bf16 %v3164_v3, %v3161_v31  ;;  %v3170_v54 = vand.u32 4294901760, %v10784_v10  ;;  %v10830_v49 = vsub.f32 %v2263_v22, %v3164_v3  ;;  %v8539_v13 = vld [vmem:[%s8995_s26 + $0x130] sm:$0xff]  ;;  %v492_v3 = vld [vmem:[%s9001_s14 + $0x1c0] sm:$0xff]  ;;  %v13311_v60 = vld [vmem:[#allocation9_spill] sm:$0xff]  ;;  %7801 = vmatpush3.bf16.msra.mxu0 %v10658_v51 }
 0x179   : > { %v10833_v32 = vsub.f32 %v10746_v20, %v3215_v14  ;;  %v3383_v26 = vand.u32 4294901760, %v3382_v30  ;;  %v3390_v62 = vand.u32 4294901760, %v3389_v2  ;;  %v3396_v1 = vsub.f32 %v10760_v25, %v12885_v15  ;;  %v493_v20 = vld [vmem:[%s9001_s14 + $0x1c8] sm:$0xff]  ;;  %7803 = vmatprep.subr.bf16.mxu0 %v10664_v56  ;;  %v13316_v51 = vld [vmem:[#allocation20_spill] sm:$0xff] }
 0x17a   : > { %13308 = vst [vmem:[#allocation8_spill] sm:$0xff] %v10826_v6  ;;  %13309 = vst [vmem:[#allocation12_spill] sm:$0xff] %v10830_v49  ;;  %v3403_v31 = vsub.f32 %v10763_v40, %v12886_v57  ;;  %v2266_v41 = vsub.f32 %v474_v21, %v8539_v13  ;;  %v2267_v22 = vsub.f32 %v475_v9, %v8540_v55  ;;  %v3271_v30 = vand.u32 4294901760, %v3270_v38  ;;  %v13317_v9 = vld [vmem:[#allocation21_spill] sm:$0xff] }
 0x17b   : > { %13310 = vst [vmem:[#allocation14_spill] sm:$0xff] %v10833_v32  ;;  %7825 = vmatpush3.bf16.msra.mxu1 %v10143_v24  ;;  %v3278_v24 = vand.u32 4294901760, %v3277_v34  ;;  %v3221_v2 = vand.u32 4294901760, %v2282_v8  ;;  %v3224_v11 = vand.u32 4294901760, %v10821_v46  ;;  %v10849_v15 = vpack.c.bf16 %v3218_v36, %v3215_v14  ;;  %v8541_v34 = vld [vmem:[%s8995_s26 + $0x1c0] sm:$0xff] }
 0x17c   : > { %7827 = vmatprep.subr.bf16.mxu1 %v13311_v60  ;;  %v10851_v57 = vsub.f32 %v2281_v35, %v3218_v36  ;;  %v10853_v21 = vpack.c.bf16 %v3170_v54, %v3167_v52  ;;  %v10857_v13 = vsub.f32 %v2264_v28, %v3167_v52  ;;  %v12889_v38 = vand.u32 4294901760, %v10830_v49  ;;  %v8542_v60 = vld [vmem:[%s8995_s26 + $0x1c8] sm:$0xff]  ;;  %7805 = vmatpush3.bf16.msra.mxu0 %v10682_v61 }
 0x17d   : > { %13312 = vst [vmem:[#allocation23_spill] sm:$0xff] %v10849_v15  ;;  %v2284_v55 = vsub.f32 %v492_v3, %v8541_v34  ;;  %v10862_v58 = vsub.f32 %v493_v20, %v8542_v60  ;;  %v3397_v35 = vand.u32 4294901760, %v3396_v1  ;;  %v3404_v14 = vand.u32 4294901760, %v3403_v31  ;;  %7807 = vmatprep.subr.bf16.mxu0 %v10704_v17  ;;  %v8543_v34 = vld [vmem:[%s8995_s26 + $0x140] sm:$0xff] }
 0x17e   : > { %13313 = vst [vmem:[#allocation24_spill] sm:$0xff] %v10851_v57  ;;  %13314 = vst [vmem:[#allocation25_spill] sm:$0xff] %v10853_v21  ;;  %v3173_v36 = vand.u32 4294901760, %v2266_v41  ;;  %v3176_v27 = vand.u32 4294901760, %v2267_v22  ;;  %v10866_v56 = vpack.c.bf16 %v3390_v62, %v3383_v26  ;;  %v10869_v28 = vsub.f32 %v10784_v10, %v3170_v54  ;;  %v477_v26 = vld [vmem:[%s9001_s14 + $0x148] sm:$0xff] }
 0x17f   : > { %13315 = vst [vmem:[#allocation13_spill] sm:$0xff] %v10857_v13  ;;  %7829 = vmatpush3.bf16.msra.mxu1 %v13316_v51  ;;  %v10871_v52 = vpack.c.bf16 %v3278_v24, %v3271_v30  ;;  %v10873_v3 = vpack.c.bf16 %v3224_v11, %v3221_v2  ;;  %v10876_v20 = vsub.f32 %v2282_v8, %v3221_v2  ;;  %v13319_v1 = vand.u32 4294901760, %v10807_v7  ;;  %v6116_v30 = vpop.f32.mrb[2].mxu0  ;;  %v13320_v24 = vld [vmem:[#allocation11_spill] sm:$0xff] }
 0x180   : > { %7831 = vmatprep.subr.bf16.mxu1 %v13317_v9  ;;  %v476_v9 = vld [vmem:[%s9001_s14 + $0x140] sm:$0xff]  ;;  %v10886_v10 = vsub.f32 %v10693_v42, %v10696_v23  ;;  %v3291_v61 = vsub.f32 %v10830_v49, %v12889_v38  ;;  %v3227_v8 = vand.u32 4294901760, %v2284_v55  ;;  %v3230_v54 = vand.u32 4294901760, %v10862_v58  ;;  %v6117_v51 = vpop.f32.mrb[3].mxu0  ;;  %v8544_v49 = vld [vmem:[%s8995_s26 + $0x148] sm:$0xff]  ;;  %7809 = vmatpush3.bf16.msra.mxu0 %v10728_v47 }
 0x181   : > { %13318 = vst [vmem:[#allocation9_spill] sm:$0xff] %v10873_v3  ;;  %v3284_v31 = vsub.f32 %v10807_v7, %v13319_v1  ;;  %v10896_v2 = vsub.f32 %v10821_v46, %v3224_v11  ;;  %v10898_v42 = vpack.c.bf16 %v3404_v14, %v3397_v35  ;;  %v10900_v17 = vpack.c.bf16 %v3176_v27, %v3173_v36  ;;  %v13322_v1 = vld [vmem:[#allocation10_spill] sm:$0xff] }
 0x182   : > { %v10902_v60 = vsub.f32 %v2266_v41, %v3173_v36  ;;  %v10905_v38 = vsub.f32 %v2267_v22, %v3176_v27  ;;  %v2268_v62 = vsub.f32 %v476_v9, %v8543_v34  ;;  %v12896_v11 = vand.u32 4294901760, %v10857_v13  ;;  %v494_v14 = vld [vmem:[%s9001_s14 + $0x1d0] sm:$0xff]  ;;  %7811 = vmatprep.subr.bf16.mxu0 %v10734_v37  ;;  %v495_v9 = vld [vmem:[%s9001_s14 + $0x1d8] sm:$0xff] }
 0x183   : > { %7833 = vmatpush3.bf16.msra.mxu1 %v13320_v24  ;;  %13321 = vst [vmem:[#allocation20_spill] sm:$0xff] %v10900_v17  ;;  %v2269_v24 = vsub.f32 %v477_v26, %v8544_v49  ;;  %v6118_v46 = vadd.f32 %v6117_v51, %v6116_v30  ;;  %v3285_v35 = vand.u32 4294901760, %v3284_v31  ;;  %v3292_v27 = vand.u32 4294901760, %v3291_v61  ;;  %v13326_v30 = vld [vmem:[#allocation17_spill] sm:$0xff]  ;;  %v13327_v36 = vld [vmem:[#allocation22_spill] sm:$0xff]  ;;  %v8546_v61 = vld [vmem:[%s8995_s26 + $0x1d8] sm:$0xff] }
 0x184   : > { %7835 = vmatprep.subr.bf16.mxu1 %v13322_v1  ;;  %v10915_v22 = vpack.c.bf16 %v3230_v54, %v3227_v8  ;;  %v13324_v49 = vand.u32 4294901760, %v10833_v32  ;;  %v13325_v47 = vand.u32 4294901760, %v10851_v57  ;;  %v10928_v37 = vsub.f32 %v2284_v55, %v3227_v8  ;;  %v478_v1 = vld [vmem:[%s9001_s14 + $0x150] sm:$0xff]  ;;  %7813 = vmatpush3.bf16.msra.mxu0 %v10742_v18  ;;  %v6151_v55 = vpop.f32.mrb[2].mxu1 }
 0x185   : > { %v983_v26 = vadd.f32 %v6118_v46, %v10636_v39  ;;  %v3182_v41 = vand.u32 4294901760, %v2269_v24  ;;  %v8545_v39 = vld [vmem:[%s8995_s26 + $0x1d0] sm:$0xff]  ;;  %v10941_v8 = vsub.f32 %v10862_v58, %v3230_v54  ;;  %v13328_v51 = vand.u32 4294901760, %v10869_v28  ;;  %7815 = vmatprep.subr.bf16.mxu0 %v10757_v4 }
 0x186   : > { %13323 = vst [vmem:[#allocation21_spill] sm:$0xff] %v10915_v22  ;;  %v10920_v34 = vsub.f32 %v10833_v32, %v13324_v49  ;;  %v3417_v31 = vsub.f32 %v10851_v57, %v13325_v47  ;;  %v3179_v49 = vand.u32 4294901760, %v2268_v62  ;;  %v3298_v47 = vsub.f32 %v10857_v13, %v12896_v11  ;;  %v6152_v13 = vpop.f32.mrb[3].mxu1  ;;  %v8547_v54 = vld [vmem:[%s8995_s26 + $0x150] sm:$0xff] }
 0x187   : > { %7837 = vmatpush3.bf16.msra.mxu1 %v13326_v30  ;;  %v2286_v46 = vsub.f32 %v494_v14, %v8545_v39  ;;  %v479_v30 = vld [vmem:[%s9001_s14 + $0x158] sm:$0xff]  ;;  %v2287_v57 = vsub.f32 %v495_v9, %v8546_v61  ;;  %v13329_v32 = vand.u32 4294901760, %v10886_v10  ;;  %v10951_v14 = vpack.c.bf16 %v3292_v27, %v3285_v35 }
 0x188   : > { %7839 = vmatprep.subr.bf16.mxu1 %v13327_v36  ;;  %v3305_v36 = vsub.f32 %v10869_v28, %v13328_v51  ;;  %v3411_v18 = vand.u32 4294901760, %v10920_v34  ;;  %v3418_v58 = vand.u32 4294901760, %v3417_v31  ;;  %v10955_v39 = vsub.f32 %v478_v1, %v8547_v54  ;;  %v8548_v35 = vld [vmem:[%s8995_s26 + $0x158] sm:$0xff]  ;;  %7817 = vmatpush3.bf16.msra.mxu0 %v10771_v29 }
 0x189   : > { %v3253_v11 = vsub.f32 %v10886_v10, %v13329_v32  ;;  %v6153_v7 = vadd.f32 %v6152_v13, %v6151_v55  ;;  %v13330_v9 = vand.u32 4294901760, %v10876_v20  ;;  %v13331_v61 = vand.u32 4294901760, %v10896_v2  ;;  %7851 = vmatprep.subr.bf16.mxu0 %v10777_v12 }
 0x18a   : > { %v10965_v27 = vsub.f32 %v479_v30, %v8548_v35  ;;  %v10968_v34 = vpack.c.bf16 %v3182_v41, %v3179_v49  ;;  %v10970_v31 = vsub.f32 %v2268_v62, %v3179_v49  ;;  %v3299_v13 = vand.u32 4294901760, %v3298_v47 }
 0x18b   : > { %7841 = vmatpush3.bf16.msra.mxu1 %v10490_v45  ;;  %v3424_v32 = vsub.f32 %v10876_v20, %v13330_v9  ;;  %v3431_v4 = vsub.f32 %v10896_v2, %v13331_v61  ;;  %v3233_v51 = vand.u32 4294901760, %v2286_v46  ;;  %v496_v45 = vld [vmem:[%s9001_s14 + $0x1e0] sm:$0xff]  ;;  %v10973_v1 = vadd.f32 %v6153_v7, %v983_v26  ;;  %v497_v9 = vld [vmem:[%s9001_s14 + $0x1e8] sm:$0xff] }
 0x18c   : > { %7843 = vmatprep.subr.bf16.mxu1 %v10496_v0  ;;  %13332 = vst [vmem:[#allocation11_spill] sm:$0xff] %v10968_v34  ;;  %v3306_v55 = vand.u32 4294901760, %v3305_v36  ;;  %v3236_v54 = vand.u32 4294901760, %v2287_v57  ;;  %v3254_v30 = vand.u32 4294901760, %v3253_v11  ;;  %v10978_v0 = vsub.f32 %v2269_v24, %v3182_v41  ;;  %v8549_v36 = vld [vmem:[%s8995_s26 + $0x1e0] sm:$0xff]  ;;  %v13333_v41 = vld [vmem:[#allocation15_spill] sm:$0xff] }
 0x18d   : > { %v12902_v62 = vand.u32 4294901760, %v10955_v39  ;;  %v12901_v49 = vand.u32 4294901760, %v10902_v60  ;;  %v3425_v29 = vand.u32 4294901760, %v3424_v32  ;;  %v3432_v26 = vand.u32 4294901760, %v3431_v4  ;;  %v480_v24 = vld [vmem:[%s9001_s14 + $0x160] sm:$0xff]  ;;  %3045 = vmatmul.mubr.f32.vlgmr.msra.gmra.mrb[16].mxu0 %v13333_v41  ;;  %v8550_v7 = vld [vmem:[%s8995_s26 + $0x1e8] sm:$0xff] }
 0x18e   : > { %v10986_v11 = vsub.f32 %v496_v45, %v8549_v36  ;;  %v10991_v61 = vpack.c.bf16 %v3418_v58, %v3411_v18  ;;  %v10993_v35 = vsub.f32 %v2286_v46, %v3233_v51  ;;  %v12903_v32 = vand.u32 4294901760, %v10928_v37  ;;  %v481_v4 = vld [vmem:[%s9001_s14 + $0x168] sm:$0xff]  ;;  %7853 = vmatpush3.bf16.msra.mxu0 %v10794_v43  ;;  %v498_v46 = vld [vmem:[%s9001_s14 + $0x1f0] sm:$0xff]  ;;  %v499_v18 = vld [vmem:[%s9001_s14 + $0x1f8] sm:$0xff]  ;;  %3255 = vmatprep.mubr.f32.mxu0 %v3254_v30 }
 0x18f   : > { %7845 = vmatpush3.bf16.msra.mxu1 %v10519_v33  ;;  %v10996_v33 = vsub.f32 %v497_v9, %v8550_v7  ;;  %v11001_v45 = vpack.c.bf16 %v3306_v55, %v3299_v13  ;;  %v11003_v36 = vpack.c.bf16 %v3236_v54, %v3233_v51  ;;  %v11005_v47 = vsub.f32 %v2287_v57, %v3236_v54  ;;  %v8551_v55 = vld [vmem:[%s8995_s26 + $0x160] sm:$0xff] }
 0x190   : > { %7847 = vmatprep.subr.bf16.mxu1 %v10526_v50  ;;  %13334 = vst [vmem:[#allocation10_spill] sm:$0xff] %v10993_v35  ;;  %7855 = vmatprep.subr.bf16.mxu0 %v10804_v53  ;;  %v11014_v58 = vsub.f32 %v10955_v39, %v12902_v62  ;;  %v3312_v13 = vsub.f32 %v10902_v60, %v12901_v49  ;;  %v13337_v57 = vand.u32 4294901760, %v10905_v38  ;;  %v13338_v30 = vand.u32 4294901760, %v10965_v27  ;;  %v8552_v62 = vld [vmem:[%s8995_s26 + $0x168] sm:$0xff]  ;;  %v483_v49 = vld [vmem:[%s9001_s14 + $0x178] sm:$0xff] }
 0x191   : > { %13335 = vst [vmem:[#allocation17_spill] sm:$0xff] %v11003_v36  ;;  %13336 = vst [vmem:[#allocation22_spill] sm:$0xff] %v11005_v47  ;;  %v11023_v54 = vsub.f32 %v480_v24, %v8551_v55  ;;  %v11026_v9 = vpack.c.bf16 %v3432_v26, %v3425_v29  ;;  %v11035_v50 = vsub.f32 %v481_v4, %v8552_v62  ;;  %v8553_v29 = vld [vmem:[%s8995_s26 + $0x1f0] sm:$0xff]  ;;  %v8554_v24 = vld [vmem:[%s8995_s26 + $0x1f8] sm:$0xff]  ;;  %v13339_v62 = vand.u32 4294901760, %v10941_v8 }
 0x192   : > { %v3319_v51 = vsub.f32 %v10905_v38, %v13337_v57  ;;  %v11031_v7 = vsub.f32 %v10965_v27, %v13338_v30  ;;  %v11043_v26 = vsub.f32 %v498_v46, %v8553_v29  ;;  %v11046_v55 = vsub.f32 %v499_v18, %v8554_v24  ;;  %v482_v30 = vld [vmem:[%s9001_s14 + $0x170] sm:$0xff]  ;;  %7857 = vmatpush3.bf16.msra.mxu0 %v10826_v6 }
 0x193   : > { %7849 = vmatpush3.bf16.msra.mxu1 %v10538_v59  ;;  %v3438_v59 = vsub.f32 %v10928_v37, %v12903_v32  ;;  %7859 = vmatprep.subr.bf16.mxu0 %v10849_v15  ;;  %v3313_v18 = vand.u32 4294901760, %v3312_v13  ;;  %v12912_v24 = vand.u32 4294901760, %v11023_v54  ;;  %v8555_v46 = vld [vmem:[%s8995_s26 + $0x170] sm:$0xff]  ;;  %v13341_v13 = vand.u32 4294901760, %v10996_v33 }
 0x194   : > { %7883 = vmatprep.subr.bf16.mxu1 %v10866_v56  ;;  %v3445_v56 = vsub.f32 %v10941_v8, %v13339_v62  ;;  %v3320_v29 = vand.u32 4294901760, %v3319_v51  ;;  %v13340_v62 = vand.u32 4294901760, %v10986_v11  ;;  %v11069_v6 = vsub.f32 %v482_v30, %v8555_v46 }
 0x195   : > { %v3439_v51 = vand.u32 4294901760, %v3438_v59  ;;  %v13345_v57 = vand.u32 4294901760, %v10993_v35  ;;  %v11097_v59 = vsub.f32 %v11023_v54, %v12912_v24 }
 0x196   : > { %3149 = vmatmul.mubr.f32.vlgmr.msra.gmra.mrb[16].mxu1 %v13333_v41  ;;  %v11065_v4 = vsub.f32 %v10986_v11, %v13340_v62  ;;  %v8556_v41 = vld [vmem:[%s8995_s26 + $0x178] sm:$0xff]  ;;  %7861 = vmatpush3.bf16.msra.mxu0 %v10853_v21  ;;  %v3446_v30 = vand.u32 4294901760, %v3445_v56  ;;  %v13346_v56 = vand.u32 4294901760, %v11005_v47  ;;  %v13349_v62 = vand.u32 4294901760, %v11046_v55 }
 0x197   : > { %7885 = vmatpush3.bf16.msra.mxu1 %v10871_v52  ;;  %v11072_v15 = vsub.f32 %v483_v49, %v8556_v41  ;;  %3491 = vmatprep.mubr.f32.mxu1 %v10696_v23  ;;  %v11079_v52 = vsub.f32 %v10996_v33, %v13341_v13  ;;  %v13343_v49 = vand.u32 4294901760, %v10970_v31  ;;  %v13344_v41 = vand.u32 4294901760, %v10978_v0 }
 0x198   : > { %7887 = vmatprep.subr.bf16.mxu1 %v10898_v42  ;;  %v3452_v13 = vsub.f32 %v10993_v35, %v13345_v57  ;;  %7863 = vmatprep.subr.bf16.mxu0 %v10873_v3  ;;  %v3459_v32 = vsub.f32 %v11005_v47, %v13346_v56  ;;  %v13347_v57 = vand.u32 4294901760, %v11035_v50  ;;  %v13348_v56 = vand.u32 4294901760, %v11043_v26 }
 0x199   : > { %13342 = vst [vmem:[#allocation15_spill] sm:$0xff] %v11079_v52  ;;  %v3326_v46 = vsub.f32 %v10970_v31, %v13343_v49  ;;  %v3333_v42 = vsub.f32 %v10978_v0, %v13344_v41  ;;  %v7896_v41 = vpack.c.bf16 %v3320_v29, %v3313_v18  ;;  %v12923_v29 = vand.u32 4294901760, %v11079_v52 }
 0x19a   : > { %v11108_v23 = vsub.f32 %v11035_v50, %v13347_v57  ;;  %v11116_v49 = vsub.f32 %v11043_v26, %v13348_v56  ;;  %7865 = vmatpush3.bf16.msra.mxu0 %v10900_v17  ;;  %v7898_v57 = vpack.c.bf16 %v3446_v30, %v3439_v51  ;;  %v3460_v21 = vand.u32 4294901760, %v3459_v32 }
 0x19b   : > { %7889 = vmatpush3.bf16.msra.mxu1 %v10951_v14  ;;  %v11121_v14 = vsub.f32 %v11046_v55, %v13349_v62  ;;  %v3327_v24 = vand.u32 4294901760, %v3326_v46  ;;  %v3334_v3 = vand.u32 4294901760, %v3333_v42  ;;  %7867 = vmatprep.subr.bf16.mxu0 %v10915_v22  ;;  %v13350_v56 = vand.u32 4294901760, %v11014_v58 }
 0x19c   : > { %7891 = vmatprep.subr.bf16.mxu1 %v10991_v61  ;;  %v3453_v61 = vand.u32 4294901760, %v3452_v13  ;;  %v13351_v62 = vand.u32 4294901760, %v11031_v7  ;;  %v13352_v51 = vand.u32 4294901760, %v11069_v6  ;;  %v13353_v46 = vand.u32 4294901760, %v11072_v15 }
 0x19d   : > { %v3340_v47 = vsub.f32 %v11014_v58, %v13350_v56  ;;  %v11147_v42 = vsub.f32 %v10719_v19, %v10722_v48  ;;  %v13355_v19 = vand.u32 4294901760, %v10955_v39  ;;  %v13356_v13 = vand.u32 4294901760, %v10965_v27 }
 0x19e   : > { %v3347_v35 = vsub.f32 %v11031_v7, %v13351_v62  ;;  %v11138_v30 = vsub.f32 %v11069_v6, %v13352_v51  ;;  %v11143_v32 = vsub.f32 %v11072_v15, %v13353_v46  ;;  %v3473_v62 = vsub.f32 %v11079_v52, %v12923_v29  ;;  %7869 = vmatpush3.bf16.msra.mxu0 %v10968_v34  ;;  %v6186_v52 = vpop.f32.mrb[4].mxu0 }
 0x19f   : > { %7893 = vmatpush3.bf16.msra.mxu1 %v11001_v45  ;;  %v13354_v45 = vand.u32 4294901760, %v11065_v4  ;;  %v11164_v18 = vpack.c.bf16 %v13356_v13, %v13355_v19  ;;  %v7900_v17 = vpack.c.bf16 %v3334_v3, %v3327_v24  ;;  %7871 = vmatprep.subr.bf16.mxu0 %v11003_v36  ;;  %v7902_v29 = vpack.c.bf16 %v3460_v21, %v3453_v61  ;;  %v6187_v24 = vpop.f32.mrb[5].mxu0 }
 0x1a0   : > { %7895 = vmatprep.subr.bf16.mxu1 %v11026_v9  ;;  %v13358_v9 = vand.u32 4294901760, %v10986_v11  ;;  %v3341_v51 = vand.u32 4294901760, %v3340_v47  ;;  %v3348_v46 = vand.u32 4294901760, %v3347_v35  ;;  %v13361_v34 = vand.u32 4294901760, %v11097_v59 }
 0x1a1   : > { %v3466_v56 = vsub.f32 %v11065_v4, %v13354_v45  ;;  %13357 = vst [vmem:[#allocation26_spill] sm:$0xff] %v11164_v18  ;;  %v13359_v45 = vand.u32 4294901760, %v10996_v33  ;;  %v13362_v11 = vand.u32 4294901760, %v11108_v23  ;;  %v12929_v13 = vand.u32 4294901760, %v11138_v30 }
 0x1a2   : > { %v3354_v39 = vsub.f32 %v11097_v59, %v13361_v34  ;;  %v12928_v3 = vand.u32 4294901760, %v11143_v32  ;;  %v3474_v47 = vand.u32 4294901760, %v3473_v62  ;;  %v13363_v35 = vand.u32 4294901760, %v11116_v49  ;;  %7873 = vmatpush3.bf16.msra.mxu0 %v11164_v18 }
 0x1a3   : > { %v11170_v22 = vpack.c.bf16 %v13359_v45, %v13358_v9  ;;  %7897 = vmatpush3.bf16.msra.mxu1 %v7896_v41  ;;  %v3361_v33 = vsub.f32 %v11108_v23, %v13362_v11  ;;  %v3467_v21 = vand.u32 4294901760, %v3466_v56  ;;  %v13364_v41 = vand.u32 4294901760, %v11121_v14 }
 0x1a4   : > { %7899 = vmatprep.subr.bf16.mxu1 %v7898_v57  ;;  %v3480_v34 = vsub.f32 %v11116_v49, %v13363_v35  ;;  %v6188_v19 = vadd.f32 %v6187_v24, %v6186_v52  ;;  %v13365_v9 = vand.u32 4294901760, %v11023_v54  ;;  %v13366_v45 = vand.u32 4294901760, %v11035_v50 }
 0x1a5   : > { %13360 = vst [vmem:[#allocation27_spill] sm:$0xff] %v11170_v22  ;;  %v3487_v61 = vsub.f32 %v11121_v14, %v13364_v41  ;;  %7875 = vmatprep.subr.bf16.mxu0 %v11170_v22  ;;  %v13367_v57 = vand.u32 4294901760, %v11043_v26  ;;  %v13368_v56 = vand.u32 4294901760, %v11046_v55  ;;  %v7904_v35 = vpack.c.bf16 %v3348_v46, %v3341_v51 }
 0x1a6   : > { %v11193_v11 = vpack.c.bf16 %v13366_v45, %v13365_v9  ;;  %v3355_v27 = vand.u32 4294901760, %v3354_v39  ;;  %v1259_v52 = vadd.f32 %v6188_v19, %v10973_v1  ;;  %v3362_v24 = vand.u32 4294901760, %v3361_v33 }
 0x1a7   : > { %v11200_v62 = vpack.c.bf16 %v13368_v56, %v13367_v57  ;;  %7901 = vmatpush3.bf16.msra.mxu1 %v7900_v17  ;;  %v3368_v50 = vsub.f32 %v11138_v30, %v12929_v13  ;;  %v3375_v54 = vsub.f32 %v11143_v32, %v12928_v3  ;;  %v13369_v26 = vand.u32 4294901760, %v11147_v42  ;;  %v6221_v17 = vpop.f32.mrb[4].mxu1 }
 0x1a8   : > { %7903 = vmatprep.subr.bf16.mxu1 %v7902_v29  ;;  %v7906_v41 = vpack.c.bf16 %v3474_v47, %v3467_v21  ;;  %v3481_v51 = vand.u32 4294901760, %v3480_v34  ;;  %v3488_v46 = vand.u32 4294901760, %v3487_v61  ;;  %7877 = vmatpush3.bf16.msra.mxu0 %v11193_v11  ;;  %v13370_v1 = vand.u32 4294901760, %v11069_v6  ;;  %v6222_v19 = vpop.f32.mrb[5].mxu1 }
 0x1a9   : > { %v3259_v55 = vsub.f32 %v11147_v42, %v13369_v26  ;;  %v13371_v39 = vand.u32 4294901760, %v11072_v15  ;;  %7879 = vmatprep.subr.bf16.mxu0 %v11200_v62  ;;  %v7914_v29 = vpack.c.bf16 %v10674_v16, %v10669_v44  ;;  %v6223_v9 = vadd.f32 %v6222_v19, %v6221_v17  ;;  %v13376_v26 = vld [vmem:[#allocation13_spill] sm:$0xff] }
 0x1aa   : > { %v7908_v21 = vpack.c.bf16 %v3362_v24, %v3355_v27  ;;  %v3369_v47 = vand.u32 4294901760, %v3368_v50  ;;  %v3376_v34 = vand.u32 4294901760, %v3375_v54  ;;  %v7910_v45 = vpack.c.bf16 %v3488_v46, %v3481_v51  ;;  %v13372_v27 = vld [vmem:[#allocation16_spill] sm:$0xff] }
 0x1ab   : > { %v11217_v33 = vpack.c.bf16 %v13371_v39, %v13370_v1  ;;  %7905 = vmatpush3.bf16.msra.mxu1 %v7904_v35  ;;  %v3260_v61 = vand.u32 4294901760, %v3259_v55  ;;  %v1363_v57 = vadd.f32 %v6223_v9, %v1259_v52  ;;  %v7916_v15 = vpack.c.bf16 %v10714_v63, %v10709_v5  ;;  %v13373_v35 = vld [vmem:[#allocation12_spill] sm:$0xff]  ;;  %v13374_v52 = vld [vmem:[#allocation14_spill] sm:$0xff]  ;;  %v13379_v39 = vld [vmem:[#allocation23_spill] sm:$0xff] }
 0x1ac   : > { %7907 = vmatprep.subr.bf16.mxu1 %v7906_v41  ;;  %v7918_v6 = vpack.c.bf16 %v10763_v40, %v10760_v25  ;;  %v7912_v56 = vpack.c.bf16 %v3376_v34, %v3369_v47  ;;  %v7920_v24 = vpack.c.bf16 %v13373_v35, %v13372_v27  ;;  %v13375_v50 = vld [vmem:[#allocation24_spill] sm:$0xff]  ;;  %v7924_v55 = vpack.c.bf16 %v10869_v28, %v13376_v26  ;;  %v13383_v47 = vld [vmem:[#allocation9_spill] sm:$0xff] }
 0x1ad   : > { %7881 = vmatpush3.bf16.msra.mxu0 %v11217_v33  ;;  %v7922_v54 = vpack.c.bf16 %v13375_v50, %v13374_v52  ;;  %v7926_v41 = vpack.c.bf16 %v10896_v2, %v10876_v20  ;;  %v13377_v51 = vand.u32 4294901760, %v10886_v10  ;;  %v7928_v46 = vpack.c.bf16 %v10905_v38, %v10902_v60  ;;  %v13378_v1 = vld [vmem:[#allocation8_spill] sm:$0xff] }
 0x1ae   : > { %7915 = vmatprep.subr.bf16.mxu0 %v7914_v29  ;;  %v7930_v17 = vpack.c.bf16 %v10941_v8, %v10928_v37  ;;  %v7932_v19 = vpack.c.bf16 %v10978_v0, %v10970_v31  ;;  %v13381_v29 = vld [vmem:[#allocation22_spill] sm:$0xff]  ;;  %v7936_v34 = vpack.c.bf16 %v11031_v7, %v11014_v58  ;;  %v7942_v3 = vpack.c.bf16 %v11121_v14, %v11116_v49 }
 0x1af   : > { %7909 = vmatpush3.bf16.msra.mxu1 %v7908_v21  ;;  %v13382_v21 = vld [vmem:[#allocation25_spill] sm:$0xff] }
 0x1b0   : > { %3261 = vmatmul.mubr.f32.vlgmr.msra.gmra.mrb[18].mxu0 %v3260_v61  ;;  %7911 = vmatprep.subr.bf16.mxu1 %v7910_v45  ;;  %v13384_v61 = vld [vmem:[#allocation15_spill] sm:$0xff] }
 0x1b1   : > { %7917 = vmatpush3.bf16.msra.mxu0 %v7916_v15  ;;  %3628 = vmatprep.mubr.f32.mxu0 %v10886_v10  ;;  %v13380_v10 = vld [vmem:[#allocation10_spill] sm:$0xff]  ;;  %v7938_v45 = vpack.c.bf16 %v13384_v61, %v11065_v4 }
 0x1b2   : > { %7919 = vmatprep.subr.bf16.mxu0 %v7918_v6  ;;  %v7934_v9 = vpack.c.bf16 %v13381_v29, %v13380_v10  ;;  %v13385_v6 = vld [vmem:[#allocation20_spill] sm:$0xff] }
 0x1b3   : > { %7913 = vmatpush3.bf16.msra.mxu1 %v7912_v56 }
 0x1b4   : > { %7947 = vmatprep.subr.bf16.mxu1 %v10777_v12 }
 0x1b5   : > { %7921 = vmatpush3.bf16.msra.mxu0 %v7920_v24  ;;  %v13386_v24 = vld [vmem:[#allocation21_spill] sm:$0xff] }
 0x1b6   : > { %3493 = vmatmul.mubr.f32.vlgmr.msra.gmra.mrb[18].mxu1 %v10722_v48  ;;  %7923 = vmatprep.subr.bf16.mxu0 %v7922_v54 }
 0x1b7   : > { %7949 = vmatpush3.bf16.msra.mxu1 %v10794_v43  ;;  %3735 = vmatprep.mubr.f32.mxu1 %v13377_v51  ;;  %v8558_v51 = vld [vmem:[%s9001_s14 + $0x80] sm:$0xff] }
 0x1b8   : > { %7951 = vmatprep.subr.bf16.mxu1 %v10804_v53 }
 0x1b9   : > { %7925 = vmatpush3.bf16.msra.mxu0 %v7924_v55  ;;  %v7940_v55 = vpack.c.bf16 %v11108_v23, %v11097_v59 }
 0x1ba   : > { %7927 = vmatprep.subr.bf16.mxu0 %v7926_v41  ;;  %v8557_v41 = vld [vmem:[%s8995_s26 + $0x80] sm:$0xff] }
 0x1bb   : > { %7953 = vmatpush3.bf16.msra.mxu1 %v13378_v1  ;;  %v6256_v15 = vpop.f32.mrb[6].mxu0 }
 0x1bc   : > { %7955 = vmatprep.subr.bf16.mxu1 %v13379_v39  ;;  %v6257_v56 = vpop.f32.mrb[7].mxu0 }
 0x1bd   : > { %7929 = vmatpush3.bf16.msra.mxu0 %v7928_v46  ;;  %v6258_v54 = vadd.f32 %v6257_v56, %v6256_v15  ;;  %v11264_v46 = vadd.f32 %v8558_v51, %v8557_v41  ;;  %v13387_v15 = vld [vmem:[#allocation11_spill] sm:$0xff]  ;;  %v8562_v56 = vld [vmem:[%s9001_s14] sm:$0xff]  ;;  %v8564_v41 = vld [vmem:[%s9001_s14 + $0x8] sm:$0xff] }
 0x1be   : > { %7931 = vmatprep.subr.bf16.mxu0 %v7930_v17  ;;  %v8559_v17 = vld [vmem:[%s8995_s26 + $0x88] sm:$0xff] }
 0x1bf   : > { %7957 = vmatpush3.bf16.msra.mxu1 %v13382_v21  ;;  %v1475_v13 = vadd.f32 %v6258_v54, %v1363_v57 }
 0x1c0   : > { %7959 = vmatprep.subr.bf16.mxu1 %v13383_v47 }
 0x1c1   : > { %7933 = vmatpush3.bf16.msra.mxu0 %v7932_v19  ;;  %v8560_v19 = vld [vmem:[%s9001_s14 + $0x88] sm:$0xff] }
 0x1c2   : > { %7935 = vmatprep.subr.bf16.mxu0 %v7934_v9  ;;  %v11268_v9 = vadd.f32 %v8560_v19, %v8559_v17  ;;  %v6291_v17 = vpop.f32.mrb[6].mxu1 }
 0x1c3   : > { %7961 = vmatpush3.bf16.msra.mxu1 %v13385_v6  ;;  %v6292_v19 = vpop.f32.mrb[7].mxu1  ;;  %v8573_v6 = vld [vmem:[%s9001_s14 + $0x18] sm:$0xff] }
 0x1c4   : > { %7963 = vmatprep.subr.bf16.mxu1 %v13386_v24  ;;  %v8563_v24 = vld [vmem:[%s8995_s26 + $0x8] sm:$0xff] }
 0x1c5   : > { %7937 = vmatpush3.bf16.msra.mxu0 %v7936_v34  ;;  %v8561_v34 = vld [vmem:[%s8995_s26] sm:$0xff]  ;;  %v11280_v51 = vadd.f32 %v8564_v41, %v8563_v24  ;;  %v11293_v24 = vld [vmem:[%s12730_s1 + $0x8] sm:$0xff]  ;;  %v6293_v41 = vadd.f32 %v6292_v19, %v6291_v17  ;;  %v13397_v17 = vand.u32 4294901760, %v13373_v35 }
 0x1c6   : > { %7939 = vmatprep.subr.bf16.mxu0 %v7938_v45  ;;  %v11275_v48 = vadd.f32 %v8562_v56, %v8561_v34  ;;  %v7944_v45 = vpack.c.bf16 %v11143_v32, %v11138_v30  ;;  %v13388_v34 = vand.u32 4294901760, %v10669_v44  ;;  %v13389_v56 = vand.u32 4294901760, %v10674_v16  ;;  %13390 = vst [vmem:[#allocation16_spill] sm:$0xff] %v11293_v24 }
 0x1c7   : > { %7965 = vmatpush3.bf16.msra.mxu1 %v13387_v15  ;;  %v13393_v44 = vand.u32 4294901760, %v10714_v63  ;;  %v13396_v15 = vand.u32 4294901760, %v13372_v27  ;;  %v8566_v63 = vld [vmem:[%s8995_s26 + $0x90] sm:$0xff]  ;;  %v13400_v27 = vand.u32 4294901760, %v11268_v9 }
 0x1c8   : > { %7967 = vmatprep.subr.bf16.mxu1 %v11003_v36  ;;  %v7978_v36 = vpack.c.bf16 %v13389_v56, %v13388_v34  ;;  %v4081_v16 = vand.u32 4294901760, %v11275_v48  ;;  %v13394_v34 = vand.u32 4294901760, %v10760_v25  ;;  %v13395_v56 = vand.u32 4294901760, %v10763_v40 }
 0x1c9   : > { %7941 = vmatpush3.bf16.msra.mxu0 %v7940_v55  ;;  %v11296_v55 = vand.u32 4294901760, %v11293_v24  ;;  %v7984_v19 = vpack.c.bf16 %v13397_v17, %v13396_v15  ;;  %v13399_v25 = vand.u32 4294901760, %v11264_v46  ;;  %v11328_v35 = vsub.f32 %v11268_v9, %v13400_v27  ;;  %v8568_v15 = vld [vmem:[%s8995_s26 + $0x98] sm:$0xff] }
 0x1ca   : > { %7943 = vmatprep.subr.bf16.mxu0 %v7942_v3  ;;  %v13392_v3 = vand.u32 4294901760, %v10709_v5  ;;  %v7982_v57 = vpack.c.bf16 %v13395_v56, %v13394_v34  ;;  %v4084_v5 = vand.u32 4294901760, %v11280_v51  ;;  %v8569_v34 = vld [vmem:[%s9001_s14 + $0x98] sm:$0xff]  ;;  %v13401_v17 = vand.u32 4294901760, %v13374_v52 }
 0x1cb   : > { %13391 = vst [vmem:[#allocation12_spill] sm:$0xff] %v11296_v55  ;;  %7969 = vmatpush3.bf16.msra.mxu1 %v11164_v18  ;;  %v11323_v40 = vsub.f32 %v11264_v46, %v13399_v25  ;;  %v4035_v56 = vadd.f32 %v8569_v34, %v8568_v15  ;;  %v8570_v25 = vld [vmem:[%s8995_s26 + $0x10] sm:$0xff]  ;;  %v8572_v27 = vld [vmem:[%s8995_s26 + $0x18] sm:$0xff]  ;;  %v13406_v52 = vand.u32 4294901760, %v10896_v2  ;;  %v13410_v34 = vand.u32 4294901760, %v10941_v8 }
 0x1cc   : > { %v7980_v54 = vpack.c.bf16 %v13393_v44, %v13392_v3  ;;  %7971 = vmatprep.subr.bf16.mxu1 %v11170_v22  ;;  %v8567_v3 = vld [vmem:[%s9001_s14 + $0x90] sm:$0xff]  ;;  %v11318_v22 = vadd.f32 %v6293_v41, %v1475_v13  ;;  %v13402_v13 = vand.u32 4294901760, %v13375_v50  ;;  %v11348_v24 = vadd.f32 %v8573_v6, %v8572_v27 }
 0x1cd   : > { %v11316_v44 = vadd.f32 %v8567_v3, %v8566_v63  ;;  %7945 = vmatpush3.bf16.msra.mxu0 %v7944_v45  ;;  %v13403_v45 = vand.u32 4294901760, %v13376_v26  ;;  %v13404_v63 = vand.u32 4294901760, %v10869_v28  ;;  %v8571_v18 = vld [vmem:[%s9001_s14 + $0x10] sm:$0xff]  ;;  %v13407_v28 = vand.u32 4294901760, %v10902_v60 }
 0x1ce   : > { %13398 = vst [vmem:[#allocation14_spill] sm:$0xff] %v11318_v22  ;;  %7979 = vmatprep.subr.bf16.mxu0 %v7978_v36  ;;  %v7986_v41 = vpack.c.bf16 %v13402_v13, %v13401_v17  ;;  %v11344_v22 = vadd.f32 %v8571_v18, %v8570_v25  ;;  %v13405_v36 = vand.u32 4294901760, %v10876_v20  ;;  %v13408_v26 = vand.u32 4294901760, %v10905_v38 }
 0x1cf   : > { %v11340_v3 = vpack.c.bf16 %v13404_v63, %v13403_v45  ;;  %7973 = vmatpush3.bf16.msra.mxu1 %v11193_v11  ;;  %v13409_v18 = vand.u32 4294901760, %v10928_v37  ;;  %v11370_v17 = vsub.f32 %v11275_v48, %v4081_v16  ;;  %v13411_v20 = vand.u32 4294901760, %v10970_v31 }
 0x1d0   : > { %v11355_v50 = vpack.c.bf16 %v13406_v52, %v13405_v36  ;;  %v11361_v15 = vpack.c.bf16 %v13408_v26, %v13407_v28  ;;  %3631 = vmatmul.mubr.f32.vlgmr.msra.gmra.mrb[20].mxu0 %v11147_v42  ;;  %7975 = vmatprep.subr.bf16.mxu1 %v11200_v62  ;;  %v13412_v2 = vand.u32 4294901760, %v10978_v0  ;;  %v13413_v60 = vand.u32 4294901760, %v13380_v10  ;;  %v13417_v10 = vld [vmem:[#allocation18_spill] sm:$0xff] }
 0x1d1   : > { %v11367_v6 = vpack.c.bf16 %v13410_v34, %v13409_v18  ;;  %v13414_v37 = vand.u32 4294901760, %v13381_v29  ;;  %v11387_v48 = vsub.f32 %v11280_v51, %v4084_v5  ;;  %v4135_v13 = vand.u32 4294901760, %v11316_v44  ;;  %7981 = vmatpush3.bf16.msra.mxu0 %v7980_v54  ;;  %3905 = vmatprep.mubr.f32.mxu0 %v13417_v10  ;;  %v8575_v18 = vld [vmem:[%s9001_s14 + $0xa0] sm:$0xff] }
 0x1d2   : > { %v11378_v38 = vpack.c.bf16 %v13412_v2, %v13411_v20  ;;  %v13415_v31 = vand.u32 4294901760, %v11014_v58  ;;  %v13416_v0 = vand.u32 4294901760, %v11031_v7  ;;  %v4138_v29 = vand.u32 4294901760, %v4035_v56  ;;  %7983 = vmatprep.subr.bf16.mxu0 %v7982_v57  ;;  %v8577_v20 = vld [vmem:[%s9001_s14 + $0xa8] sm:$0xff] }
 0x1d3   : > { %v11384_v8 = vpack.c.bf16 %v13414_v37, %v13413_v60  ;;  %v12945_v63 = vand.u32 4294901760, %v11323_v40  ;;  %v12943_v51 = vand.u32 4294901760, %v11328_v35  ;;  %v13418_v25 = vand.u32 4294901760, %v11065_v4  ;;  %7977 = vmatpush3.bf16.msra.mxu1 %v11217_v33 }
 0x1d4   : > { %v11394_v45 = vpack.c.bf16 %v13416_v0, %v13415_v31  ;;  %v13419_v54 = vand.u32 4294901760, %v13384_v61  ;;  %v13420_v58 = vand.u32 4294901760, %v11097_v59  ;;  %v13421_v7 = vand.u32 4294901760, %v11108_v23  ;;  %v8574_v61 = vld [vmem:[%s8995_s26 + $0xa0] sm:$0xff]  ;;  %v8576_v59 = vld [vmem:[%s8995_s26 + $0xa8] sm:$0xff]  ;;  %8011 = vmatprep.subr.bf16.mxu1 %v10777_v12 }
 0x1d5   : > { %v4087_v52 = vand.u32 4294901760, %v11344_v22  ;;  %v4090_v28 = vand.u32 4294901760, %v11348_v24  ;;  %v13422_v57 = vand.u32 4294901760, %v11116_v49  ;;  %v13423_v4 = vand.u32 4294901760, %v11121_v14  ;;  %7985 = vmatpush3.bf16.msra.mxu0 %v7984_v19 }
 0x1d6   : > { %v11403_v27 = vpack.c.bf16 %v13419_v54, %v13418_v25  ;;  %v11409_v36 = vpack.c.bf16 %v13421_v7, %v13420_v58  ;;  %v4036_v34 = vadd.f32 %v8575_v18, %v8574_v61  ;;  %v11424_v23 = vadd.f32 %v8577_v20, %v8576_v59  ;;  %7987 = vmatprep.subr.bf16.mxu0 %v7986_v41  ;;  %v8580_v58 = vld [vmem:[%s9001_s14 + $0x20] sm:$0xff]  ;;  %v8582_v41 = vld [vmem:[%s9001_s14 + $0x28] sm:$0xff]  ;;  %v8584_v18 = vld [vmem:[%s9001_s14 + $0xb0] sm:$0xff] }
 0x1d7   : > { %v11418_v26 = vpack.c.bf16 %v13423_v4, %v13422_v57  ;;  %v12941_v2 = vand.u32 4294901760, %v11370_v17  ;;  %v13424_v60 = vand.u32 4294901760, %v11138_v30  ;;  %v13425_v37 = vand.u32 4294901760, %v11143_v32 }
 0x1d8   : > { %v13426_v14 = vand.u32 4294901760, %v11264_v46  ;;  %v13427_v31 = vand.u32 4294901760, %v11268_v9  ;;  %v11441_v25 = vsub.f32 %v11316_v44, %v4135_v13  ;;  %v12940_v54 = vand.u32 4294901760, %v11387_v48  ;;  %v11457_v9 = vld [vmem:[%s12730_s1] sm:$0xff] }
 0x1d9   : > { %v11432_v49 = vpack.c.bf16 %v13425_v37, %v13424_v60  ;;  %v11444_v12 = vpack.c.bf16 %v4084_v5, %v4081_v16  ;;  %v11446_v30 = vsub.f32 %v4035_v56, %v4138_v29  ;;  %v4308_v32 = vsub.f32 %v11323_v40, %v12945_v63  ;;  %v8579_v56 = vld [vmem:[%s8995_s26 + $0x20] sm:$0xff]  ;;  %7989 = vmatpush3.bf16.msra.mxu0 %v11340_v3  ;;  %v8585_v37 = vld [vmem:[%s8995_s26 + $0xb8] sm:$0xff] }
 0x1da   : > { %v11438_v0 = vpack.c.bf16 %v13427_v31, %v13426_v14  ;;  %v4315_v46 = vsub.f32 %v11328_v35, %v12943_v51  ;;  %v11460_v16 = vand.u32 4294901760, %v11457_v9  ;;  %v13429_v19 = vand.u32 4294901760, %v11147_v42  ;;  %v8581_v42 = vld [vmem:[%s8995_s26 + $0x28] sm:$0xff]  ;;  %7991 = vmatprep.subr.bf16.mxu0 %v11355_v50  ;;  %v8602_v63 = vld [vmem:[%s9001_s14 + $0xd8] sm:$0xff] }
 0x1db   : > { %v11464_v5 = vpack.c.bf16 %v4138_v29, %v4135_v13  ;;  %v11466_v44 = vpack.c.bf16 %v4090_v28, %v4087_v52  ;;  %v4020_v7 = vadd.f32 %v8580_v58, %v8579_v56  ;;  %v4141_v57 = vand.u32 4294901760, %v4036_v34  ;;  %v8587_v56 = vld [vmem:[%s8995_s26 + $0x30] sm:$0xff] }
 0x1dc   : > { %13428 = vst [vmem:[#allocation24_spill] sm:$0xff] %v11460_v16  ;;  %3739 = vmatmul.mubr.f32.vlgmr.msra.gmra.mrb[20].mxu1 %v13429_v19  ;;  %v4144_v4 = vand.u32 4294901760, %v11424_v23  ;;  %v4021_v13 = vadd.f32 %v8582_v41, %v8581_v42  ;;  %v4196_v29 = vsub.f32 %v11370_v17, %v12941_v2  ;;  %v11480_v61 = vsub.f32 %v11344_v22, %v4087_v52  ;;  %v8586_v22 = vld [vmem:[%s9001_s14 + $0xb8] sm:$0xff]  ;;  %v8588_v58 = vld [vmem:[%s9001_s14 + $0x30] sm:$0xff] }
 0x1dd   : > { %8013 = vmatpush3.bf16.msra.mxu1 %v10794_v43  ;;  %4009 = vmatprep.mubr.f32.mxu1 %v13417_v10  ;;  %v4203_v43 = vsub.f32 %v11387_v48, %v12940_v54  ;;  %v8583_v10 = vld [vmem:[%s8995_s26 + $0xb0] sm:$0xff]  ;;  %v12937_v20 = vand.u32 4294901760, %v11441_v25  ;;  %v4309_v60 = vand.u32 4294901760, %v4308_v32  ;;  %v4039_v52 = vadd.f32 %v8586_v22, %v8585_v37  ;;  %v8589_v41 = vld [vmem:[%s8995_s26 + $0x38] sm:$0xff] }
 0x1de   : > { %8015 = vmatprep.subr.bf16.mxu1 %v10804_v53  ;;  %v4038_v59 = vadd.f32 %v8584_v18, %v8583_v10  ;;  %v4316_v53 = vand.u32 4294901760, %v4315_v46  ;;  %v12936_v14 = vand.u32 4294901760, %v11446_v30  ;;  %v11494_v31 = vsub.f32 %v11348_v24, %v4090_v28  ;;  %v8590_v10 = vld [vmem:[%s9001_s14 + $0x38] sm:$0xff]  ;;  %7993 = vmatpush3.bf16.msra.mxu0 %v11361_v15 }
 0x1df   : > { %v4093_v19 = vand.u32 4294901760, %v4020_v7  ;;  %v4022_v42 = vadd.f32 %v8588_v58, %v8587_v56  ;;  %v4023_v18 = vadd.f32 %v8590_v10, %v8589_v41  ;;  %v11501_v3 = vpack.c.bf16 %v4144_v4, %v4141_v57  ;;  %7995 = vmatprep.subr.bf16.mxu0 %v11367_v6  ;;  %v8593_v41 = vld [vmem:[%s8995_s26 + $0xc8] sm:$0xff] }
 0x1e0   : > { %v11503_v32 = vsub.f32 %v4036_v34, %v4141_v57  ;;  %v4096_v46 = vand.u32 4294901760, %v4021_v13  ;;  %v4197_v37 = vand.u32 4294901760, %v4196_v29  ;;  %v4204_v50 = vand.u32 4294901760, %v4203_v43  ;;  %v8594_v10 = vld [vmem:[%s9001_s14 + $0xc8] sm:$0xff] }
 0x1e1   : > { %8017 = vmatpush3.bf16.msra.mxu1 %v13378_v1  ;;  %v4147_v24 = vand.u32 4294901760, %v4038_v59  ;;  %v4322_v28 = vsub.f32 %v11441_v25, %v12937_v20  ;;  %v12938_v22 = vand.u32 4294901760, %v11480_v61  ;;  %v11512_v1 = vsub.f32 %v11424_v23, %v4144_v4 }
 0x1e2   : > { %13430 = vst [vmem:[#allocation13_spill] sm:$0xff] %v11503_v32  ;;  %8019 = vmatprep.subr.bf16.mxu1 %v13379_v39  ;;  %v11514_v34 = vpack.c.bf16 %v4316_v53, %v4309_v60  ;;  %v4150_v39 = vand.u32 4294901760, %v4039_v52  ;;  %v4329_v57 = vsub.f32 %v11446_v30, %v12936_v14  ;;  %v11520_v29 = vsub.f32 %v4020_v7, %v4093_v19  ;;  %v8591_v60 = vld [vmem:[%s8995_s26 + $0xc0] sm:$0xff] }
 0x1e3   : > { %13431 = vst [vmem:[#allocation8_spill] sm:$0xff] %v11512_v1  ;;  %v4099_v43 = vand.u32 4294901760, %v4022_v42  ;;  %v4102_v56 = vand.u32 4294901760, %v4023_v18  ;;  %v12939_v15 = vand.u32 4294901760, %v11494_v31  ;;  %v11524_v23 = vpack.c.bf16 %v4096_v46, %v4093_v19  ;;  %v8592_v53 = vld [vmem:[%s9001_s14 + $0xc0] sm:$0xff]  ;;  %7997 = vmatpush3.bf16.msra.mxu0 %v11378_v38 }
 0x1e4   : > { %13432 = vst [vmem:[#allocation23_spill] sm:$0xff] %v11520_v29  ;;  %v11526_v4 = vsub.f32 %v4021_v13, %v4096_v46  ;;  %v4040_v58 = vadd.f32 %v8592_v53, %v8591_v60  ;;  %v4041_v14 = vadd.f32 %v8594_v10, %v8593_v41  ;;  %v11533_v6 = vpack.c.bf16 %v4204_v50, %v4197_v37  ;;  %v13437_v60 = vld [vmem:[#allocation16_spill] sm:$0xff]  ;;  %v6326_v50 = vpop.f32.mrb[8].mxu0  ;;  %v13440_v41 = vld [vmem:[#allocation21_spill] sm:$0xff] }
 0x1e5   : > { %8021 = vmatpush3.bf16.msra.mxu1 %v13382_v21  ;;  %13433 = vst [vmem:[#allocation10_spill] sm:$0xff] %v11524_v23  ;;  %v11535_v7 = vsub.f32 %v4038_v59, %v4147_v24  ;;  %v4323_v20 = vand.u32 4294901760, %v4322_v28  ;;  %v4210_v21 = vsub.f32 %v11480_v61, %v12938_v22  ;;  %v11541_v13 = vpack.c.bf16 %v4150_v39, %v4147_v24  ;;  %v13439_v24 = vld [vmem:[#allocation20_spill] sm:$0xff]  ;;  %v6327_v53 = vpop.f32.mrb[9].mxu0  ;;  %v8597_v22 = vld [vmem:[%s8995_s26 + $0x48] sm:$0xff] }
 0x1e6   : > { %13434 = vst [vmem:[#allocation22_spill] sm:$0xff] %v11526_v4  ;;  %8023 = vmatprep.subr.bf16.mxu1 %v13383_v47  ;;  %v11543_v19 = vsub.f32 %v4039_v52, %v4150_v39  ;;  %v4330_v46 = vand.u32 4294901760, %v4329_v57  ;;  %v11547_v47 = vsub.f32 %v13437_v60, %v11296_v55  ;;  %7999 = vmatprep.subr.bf16.mxu0 %v11384_v8  ;;  %v12942_v52 = vand.u32 4294901760, %v11503_v32  ;;  %v8596_v10 = vld [vmem:[%s9001_s14 + $0x40] sm:$0xff] }
 0x1e7   : > { %13435 = vst [vmem:[#allocation25_spill] sm:$0xff] %v11535_v7  ;;  %13436 = vst [vmem:[#allocation9_spill] sm:$0xff] %v11541_v13  ;;  %v11550_v59 = vpack.c.bf16 %v4102_v56, %v4099_v43  ;;  %v11552_v37 = vsub.f32 %v4022_v42, %v4099_v43  ;;  %v4217_v38 = vsub.f32 %v11494_v31, %v12939_v15  ;;  %v4153_v39 = vand.u32 4294901760, %v4040_v58  ;;  %v8595_v43 = vld [vmem:[%s8995_s26 + $0x40] sm:$0xff]  ;;  %v8598_v15 = vld [vmem:[%s9001_s14 + $0x48] sm:$0xff] }
 0x1e8   : > { %v11559_v28 = vsub.f32 %v4023_v18, %v4102_v56  ;;  %v4156_v57 = vand.u32 4294901760, %v4041_v14  ;;  %v12944_v8 = vand.u32 4294901760, %v11512_v1  ;;  %v4211_v42 = vand.u32 4294901760, %v4210_v21  ;;  %8001 = vmatpush3.bf16.msra.mxu0 %v11394_v45 }
 0x1e9   : > { %13438 = vst [vmem:[#allocation15_spill] sm:$0xff] %v11550_v59  ;;  %8025 = vmatpush3.bf16.msra.mxu1 %v13439_v24  ;;  %v4024_v60 = vadd.f32 %v8596_v10, %v8595_v43  ;;  %v11567_v54 = vadd.f32 %v8598_v15, %v8597_v22  ;;  %v12947_v2 = vand.u32 4294901760, %v11520_v29  ;;  %v6328_v24 = vadd.f32 %v6327_v53, %v6326_v50  ;;  %v13442_v50 = vld [vmem:[#allocation11_spill] sm:$0xff] }
 0x1ea   : > { %8027 = vmatprep.subr.bf16.mxu1 %v13440_v41  ;;  %v11571_v18 = vpack.c.bf16 %v4330_v46, %v4323_v20  ;;  %v12946_v56 = vand.u32 4294901760, %v11526_v4  ;;  %v12950_v41 = vand.u32 4294901760, %v11547_v47  ;;  %8003 = vmatprep.subr.bf16.mxu0 %v11403_v27  ;;  %v4218_v21 = vand.u32 4294901760, %v4217_v38  ;;  %v13441_v20 = vld [vmem:[#allocation14_spill] sm:$0xff]  ;;  %v13444_v38 = vld [vmem:[#allocation17_spill] sm:$0xff] }
 0x1eb   : > { %v11579_v22 = vsub.f32 %v11503_v32, %v12942_v52  ;;  %v12957_v15 = vand.u32 4294901760, %v11535_v7  ;;  %v1845_v46 = vadd.f32 %v6328_v24, %v13441_v20  ;;  %v11585_v53 = vpack.c.bf16 %v4156_v57, %v4153_v39  ;;  %v8599_v20 = vld [vmem:[%s8995_s26 + $0xd0] sm:$0xff] }
 0x1ec   : > { %v11587_v43 = vsub.f32 %v4040_v58, %v4153_v39  ;;  %v4343_v27 = vsub.f32 %v11512_v1, %v12944_v8  ;;  %v4105_v10 = vand.u32 4294901760, %v4024_v60  ;;  %v4108_v52 = vand.u32 4294901760, %v11567_v54  ;;  %8005 = vmatpush3.bf16.msra.mxu0 %v11409_v36  ;;  %v6361_v58 = vpop.f32.mrb[8].mxu1  ;;  %v8601_v8 = vld [vmem:[%s8995_s26 + $0xd8] sm:$0xff] }
 0x1ed   : > { %8029 = vmatpush3.bf16.msra.mxu1 %v13442_v50  ;;  %13443 = vst [vmem:[#allocation18_spill] sm:$0xff] %v11585_v53  ;;  %v4224_v24 = vsub.f32 %v11520_v29, %v12947_v2  ;;  %v8600_v50 = vld [vmem:[%s9001_s14 + $0xd0] sm:$0xff]  ;;  %v11600_v39 = vsub.f32 %v4041_v14, %v4156_v57  ;;  %v4043_v45 = vadd.f32 %v8602_v63, %v8601_v8  ;;  %v4337_v14 = vand.u32 4294901760, %v11579_v22  ;;  %v13447_v22 = vld [vmem:[#allocation27_spill] sm:$0xff] }
 0x1ee   : > { %8031 = vmatprep.subr.bf16.mxu1 %v13444_v38  ;;  %v4042_v51 = vadd.f32 %v8600_v50, %v8599_v20  ;;  %v4231_v38 = vsub.f32 %v11526_v4, %v12946_v56  ;;  %v4179_v20 = vsub.f32 %v11547_v47, %v12950_v41  ;;  %v6362_v50 = vpop.f32.mrb[9].mxu1  ;;  %8007 = vmatprep.subr.bf16.mxu0 %v11418_v26  ;;  %v13445_v56 = vand.u32 4294901760, %v11543_v19  ;;  %v13446_v8 = vld [vmem:[#allocation26_spill] sm:$0xff]  ;;  %v8605_v26 = vld [vmem:[%s8995_s26 + $0x58] sm:$0xff] }
 0x1ef   : > { %v11611_v36 = vpack.c.bf16 %v4218_v21, %v4211_v42  ;;  %v4350_v57 = vsub.f32 %v11535_v7, %v12957_v15  ;;  %v6363_v63 = vadd.f32 %v6362_v50, %v6361_v58  ;;  %v4344_v4 = vand.u32 4294901760, %v4343_v27  ;;  %v8603_v41 = vld [vmem:[%s8995_s26 + $0x50] sm:$0xff]  ;;  %v8606_v42 = vld [vmem:[%s9001_s14 + $0x58] sm:$0xff] }
 0x1f0   : > { %v4357_v2 = vsub.f32 %v11543_v19, %v13445_v56  ;;  %v8604_v29 = vld [vmem:[%s9001_s14 + $0x50] sm:$0xff]  ;;  %v11627_v21 = vadd.f32 %v8606_v42, %v8605_v26  ;;  %v11630_v32 = vpack.c.bf16 %v4108_v52, %v4105_v10  ;;  %v11632_v15 = vsub.f32 %v4024_v60, %v4105_v10  ;;  %8009 = vmatpush3.bf16.msra.mxu0 %v11432_v49 }
 0x1f1   : > { %8033 = vmatpush3.bf16.msra.mxu1 %v13446_v8  ;;  %v11623_v1 = vadd.f32 %v8604_v29, %v8603_v41  ;;  %v4225_v7 = vand.u32 4294901760, %v4224_v24  ;;  %v4159_v56 = vand.u32 4294901760, %v4042_v51  ;;  %v11634_v58 = vadd.f32 %v6363_v63, %v1845_v46  ;;  %8043 = vmatprep.subr.bf16.mxu0 %v11438_v0 }
 0x1f2   : > { %8035 = vmatprep.subr.bf16.mxu1 %v13447_v22  ;;  %13448 = vst [vmem:[#allocation16_spill] sm:$0xff] %v11630_v32  ;;  %13449 = vst [vmem:[#allocation20_spill] sm:$0xff] %v11632_v15  ;;  %v4232_v29 = vand.u32 4294901760, %v4231_v38  ;;  %v4162_v41 = vand.u32 4294901760, %v4043_v45  ;;  %v4180_v27 = vand.u32 4294901760, %v4179_v20  ;;  %v4351_v50 = vand.u32 4294901760, %v4350_v57 }
 0x1f3   : > { %v4358_v8 = vand.u32 4294901760, %v4357_v2  ;;  %v12961_v60 = vand.u32 4294901760, %v11552_v37  ;;  %v12960_v10 = vand.u32 4294901760, %v11559_v28  ;;  %v11642_v46 = vsub.f32 %v11567_v54, %v4108_v52  ;;  %v8607_v38 = vld [vmem:[%s8995_s26 + $0xe0] sm:$0xff]  ;;  %v13451_v57 = vld [vmem:[#allocation19_spill] sm:$0xff]  ;;  %v8610_v54 = vld [vmem:[%s9001_s14 + $0xe8] sm:$0xff] }
 0x1f4   : > { %v12963_v49 = vand.u32 4294901760, %v11623_v1  ;;  %v12962_v24 = vand.u32 4294901760, %v11627_v21  ;;  %v8608_v20 = vld [vmem:[%s9001_s14 + $0xe0] sm:$0xff]  ;;  %3907 = vmatmul.mubr.f32.vlgmr.msra.gmra.mrb[22].mxu0 %v13451_v57  ;;  %v11652_v2 = vpack.c.bf16 %v4344_v4, %v4337_v14  ;;  %v11654_v26 = vsub.f32 %v4042_v51, %v4159_v56 }
 0x1f5   : > { %8037 = vmatpush3.bf16.msra.mxu1 %v11193_v11  ;;  %13450 = vst [vmem:[#allocation21_spill] sm:$0xff] %v11642_v46  ;;  %v11648_v63 = vadd.f32 %v8608_v20, %v8607_v38  ;;  %v8609_v11 = vld [vmem:[%s8995_s26 + $0xe8] sm:$0xff]  ;;  %v12965_v42 = vand.u32 4294901760, %v11587_v43  ;;  %8045 = vmatpush3.bf16.msra.mxu0 %v11444_v12  ;;  %v11662_v22 = vpack.c.bf16 %v4232_v29, %v4225_v7  ;;  %v12964_v51 = vand.u32 4294901760, %v11600_v39 }
 0x1f6   : > { %8039 = vmatprep.subr.bf16.mxu1 %v11200_v62  ;;  %13452 = vst [vmem:[#allocation14_spill] sm:$0xff] %v11654_v26  ;;  %v11658_v52 = vadd.f32 %v8610_v54, %v8609_v11  ;;  %v11664_v38 = vpack.c.bf16 %v4162_v41, %v4159_v56  ;;  %v11666_v62 = vsub.f32 %v4043_v45, %v4162_v41  ;;  %v8611_v45 = vld [vmem:[%s8995_s26 + $0x60] sm:$0xff]  ;;  %v8614_v20 = vld [vmem:[%s9001_s14 + $0x68] sm:$0xff] }
 0x1f7   : > { %4181 = vmatprep.mubr.f32.mxu0 %v4180_v27  ;;  %8047 = vmatprep.subr.bf16.mxu0 %v11464_v5  ;;  %v11670_v4 = vpack.c.bf16 %v4358_v8, %v4351_v50  ;;  %v11675_v14 = vsub.f32 %v11552_v37, %v12961_v60  ;;  %v11680_v7 = vsub.f32 %v11559_v28, %v12960_v10  ;;  %v8612_v56 = vld [vmem:[%s9001_s14 + $0x60] sm:$0xff]  ;;  %v12966_v50 = vand.u32 4294901760, %v11648_v63  ;;  %v8613_v8 = vld [vmem:[%s8995_s26 + $0x68] sm:$0xff]  ;;  %v8617_v60 = vld [vmem:[%s8995_s26 + $0xf8] sm:$0xff] }
 0x1f8   : > { %13453 = vst [vmem:[#allocation11_spill] sm:$0xff] %v11664_v38  ;;  %13454 = vst [vmem:[#allocation17_spill] sm:$0xff] %v11666_v62  ;;  %v11684_v29 = vadd.f32 %v8612_v56, %v8611_v45  ;;  %v11690_v41 = vsub.f32 %v11623_v1, %v12963_v49  ;;  %v11695_v27 = vsub.f32 %v11627_v21, %v12962_v24  ;;  %v8615_v45 = vld [vmem:[%s8995_s26 + $0xf0] sm:$0xff]  ;;  %v8618_v24 = vld [vmem:[%s9001_s14 + $0xf8] sm:$0xff] }
 0x1f9   : > { %8041 = vmatpush3.bf16.msra.mxu1 %v11217_v33  ;;  %v11700_v11 = vadd.f32 %v8614_v20, %v8613_v8  ;;  %v4364_v54 = vsub.f32 %v11587_v43, %v12965_v42  ;;  %v8616_v56 = vld [vmem:[%s9001_s14 + $0xf0] sm:$0xff]  ;;  %v11713_v49 = vadd.f32 %v8618_v24, %v8617_v60  ;;  %8049 = vmatpush3.bf16.msra.mxu0 %v11466_v44  ;;  %v4239_v60 = vand.u32 4294901760, %v11675_v14  ;;  %v8621_v14 = vld [vmem:[%s8995_s26 + $0x78] sm:$0xff] }
 0x1fa   : > { %8075 = vmatprep.subr.bf16.mxu1 %v11514_v34  ;;  %v11709_v10 = vadd.f32 %v8616_v56, %v8615_v45  ;;  %v4371_v34 = vsub.f32 %v11600_v39, %v12964_v51  ;;  %8051 = vmatprep.subr.bf16.mxu0 %v11501_v3  ;;  %v4246_v24 = vand.u32 4294901760, %v11680_v7  ;;  %v11732_v42 = vsub.f32 %v11648_v63, %v12966_v50  ;;  %v8620_v20 = vld [vmem:[%s9001_s14 + $0x70] sm:$0xff]  ;;  %v8622_v33 = vld [vmem:[%s9001_s14 + $0x78] sm:$0xff] }
 0x1fb   : > { %v11741_v7 = vadd.f32 %v8622_v33, %v8621_v14  ;;  %v4365_v50 = vand.u32 4294901760, %v4364_v54  ;;  %v13457_v33 = vand.u32 4294901760, %v11632_v15  ;;  %v13458_v14 = vand.u32 4294901760, %v11642_v46 }
 0x1fc   : > { %4011 = vmatmul.mubr.f32.vlgmr.msra.gmra.mrb[22].mxu1 %v13451_v57  ;;  %v8619_v57 = vld [vmem:[%s8995_s26 + $0x70] sm:$0xff]  ;;  %v13460_v54 = vand.u32 4294901760, %v11684_v29 }
 0x1fd   : > { %8077 = vmatpush3.bf16.msra.mxu1 %v11533_v6  ;;  %v11737_v8 = vadd.f32 %v8620_v20, %v8619_v57  ;;  %4417 = vmatprep.mubr.f32.mxu1 %v11296_v55  ;;  %v13455_v6 = vand.u32 4294901760, %v11658_v52  ;;  %v4372_v20 = vand.u32 4294901760, %v4371_v34  ;;  %v4252_v57 = vsub.f32 %v11632_v15, %v13457_v33 }
 0x1fe   : > { %8079 = vmatprep.subr.bf16.mxu1 %v11571_v18  ;;  %8053 = vmatpush3.bf16.msra.mxu0 %v11524_v23  ;;  %v4259_v18 = vsub.f32 %v11642_v46, %v13458_v14  ;;  %v13459_v55 = vand.u32 4294901760, %v11654_v26  ;;  %v11766_v56 = vsub.f32 %v11684_v29, %v13460_v54  ;;  %v13461_v34 = vand.u32 4294901760, %v11666_v62 }
 0x1ff   : > { %v11748_v51 = vsub.f32 %v11658_v52, %v13455_v6  ;;  %8055 = vmatprep.subr.bf16.mxu0 %v11541_v13  ;;  %v13462_v14 = vand.u32 4294901760, %v11700_v11  ;;  %v13463_v33 = vand.u32 4294901760, %v11709_v10  ;;  %v8090_v54 = vpack.c.bf16 %v4372_v20, %v4365_v50 }
 0x200   : > { %v4378_v6 = vsub.f32 %v11654_v26, %v13459_v55  ;;  %v4385_v45 = vsub.f32 %v11666_v62, %v13461_v34  ;;  %v8088_v34 = vpack.c.bf16 %v4246_v24, %v4239_v60  ;;  %v4253_v13 = vand.u32 4294901760, %v4252_v57 }
 0x201   : > { %13456 = vst [vmem:[#allocation26_spill] sm:$0xff] %v11748_v51  ;;  %8081 = vmatpush3.bf16.msra.mxu1 %v11611_v36  ;;  %v11777_v55 = vsub.f32 %v11700_v11, %v13462_v14  ;;  %v11786_v23 = vsub.f32 %v11709_v10, %v13463_v33  ;;  %v13464_v36 = vand.u32 4294901760, %v11713_v49  ;;  %v12981_v14 = vand.u32 4294901760, %v11748_v51 }
 0x202   : > { %8083 = vmatprep.subr.bf16.mxu1 %v11652_v2  ;;  %8057 = vmatpush3.bf16.msra.mxu0 %v11550_v59  ;;  %v4260_v26 = vand.u32 4294901760, %v4259_v18  ;;  %v4379_v46 = vand.u32 4294901760, %v4378_v6  ;;  %v4386_v2 = vand.u32 4294901760, %v4385_v45  ;;  %v13465_v60 = vand.u32 4294901760, %v11690_v41 }
 0x203   : > { %v11791_v62 = vsub.f32 %v11713_v49, %v13464_v36  ;;  %8059 = vmatprep.subr.bf16.mxu0 %v11585_v53  ;;  %v13466_v33 = vand.u32 4294901760, %v11695_v27  ;;  %v13467_v50 = vand.u32 4294901760, %v11737_v8  ;;  %v13468_v57 = vand.u32 4294901760, %v11741_v7 }
 0x204   : > { %v4266_v24 = vsub.f32 %v11690_v41, %v13465_v60  ;;  %v13469_v18 = vand.u32 4294901760, %v11732_v42  ;;  %v13471_v60 = vand.u32 4294901760, %v11627_v21 }
 0x205   : > { %v4273_v36 = vsub.f32 %v11695_v27, %v13466_v33  ;;  %8085 = vmatpush3.bf16.msra.mxu1 %v11662_v22  ;;  %v11807_v20 = vsub.f32 %v11737_v8, %v13467_v50  ;;  %v11812_v45 = vsub.f32 %v11741_v7, %v13468_v57  ;;  %v4399_v22 = vsub.f32 %v11748_v51, %v12981_v14  ;;  %v6396_v51 = vpop.f32.mrb[10].mxu0 }
 0x206   : > { %v4392_v6 = vsub.f32 %v11732_v42, %v13469_v18  ;;  %8087 = vmatprep.subr.bf16.mxu1 %v11670_v4  ;;  %v11824_v33 = vsub.f32 %v11457_v9, %v11460_v16  ;;  %8061 = vmatpush3.bf16.msra.mxu0 %v11630_v32  ;;  %v13470_v18 = vand.u32 4294901760, %v11623_v1  ;;  %v13473_v4 = vand.u32 4294901760, %v11648_v63 }
 0x207   : > { %v13474_v14 = vand.u32 4294901760, %v11658_v52  ;;  %v8092_v9 = vpack.c.bf16 %v4260_v26, %v4253_v13  ;;  %8063 = vmatprep.subr.bf16.mxu0 %v11664_v38  ;;  %v8094_v50 = vpack.c.bf16 %v4386_v2, %v4379_v46  ;;  %v4267_v59 = vand.u32 4294901760, %v4266_v24  ;;  %v6397_v26 = vpop.f32.mrb[11].mxu0 }
 0x208   : > { %v11833_v15 = vpack.c.bf16 %v13471_v60, %v13470_v18  ;;  %v4274_v57 = vand.u32 4294901760, %v4273_v36  ;;  %v13476_v32 = vand.u32 4294901760, %v11766_v56  ;;  %v4393_v21 = vand.u32 4294901760, %v4392_v6 }
 0x209   : > { %v11839_v53 = vpack.c.bf16 %v13474_v14, %v13473_v4  ;;  %8089 = vmatpush3.bf16.msra.mxu1 %v8088_v34  ;;  %v13477_v60 = vand.u32 4294901760, %v11777_v55  ;;  %v12991_v52 = vand.u32 4294901760, %v11807_v20  ;;  %v12990_v13 = vand.u32 4294901760, %v11812_v45 }
 0x20a   : > { %13472 = vst [vmem:[#allocation27_spill] sm:$0xff] %v11833_v15  ;;  %v4280_v1 = vsub.f32 %v11766_v56, %v13476_v32  ;;  %8091 = vmatprep.subr.bf16.mxu1 %v8090_v54  ;;  %v4400_v46 = vand.u32 4294901760, %v4399_v22  ;;  %v13478_v2 = vand.u32 4294901760, %v11786_v23  ;;  %v13479_v34 = vand.u32 4294901760, %v11791_v62  ;;  %8065 = vmatpush3.bf16.msra.mxu0 %v11833_v15 }
 0x20b   : > { %13475 = vst [vmem:[#allocation19_spill] sm:$0xff] %v11839_v53  ;;  %v4287_v63 = vsub.f32 %v11777_v55, %v13477_v60  ;;  %v6398_v36 = vadd.f32 %v6397_v26, %v6396_v51  ;;  %v13480_v6 = vand.u32 4294901760, %v11684_v29  ;;  %v13481_v18 = vand.u32 4294901760, %v11700_v11  ;;  %8067 = vmatprep.subr.bf16.mxu0 %v11839_v53 }
 0x20c   : > { %v4406_v32 = vsub.f32 %v11786_v23, %v13478_v2  ;;  %v4413_v24 = vsub.f32 %v11791_v62, %v13479_v34  ;;  %v13482_v54 = vand.u32 4294901760, %v11709_v10  ;;  %v13483_v22 = vand.u32 4294901760, %v11713_v49 }
 0x20d   : > { %v11862_v4 = vpack.c.bf16 %v13481_v18, %v13480_v6  ;;  %v8096_v2 = vpack.c.bf16 %v4274_v57, %v4267_v59  ;;  %v4281_v14 = vand.u32 4294901760, %v4280_v1  ;;  %v2121_v51 = vadd.f32 %v6398_v36, %v11634_v58  ;;  %8093 = vmatpush3.bf16.msra.mxu1 %v8092_v9  ;;  %v6431_v58 = vpop.f32.mrb[10].mxu1 }
 0x20e   : > { %v11869_v60 = vpack.c.bf16 %v13483_v22, %v13482_v54  ;;  %v4288_v26 = vand.u32 4294901760, %v4287_v63  ;;  %v4294_v29 = vsub.f32 %v11807_v20, %v12991_v52  ;;  %v4301_v11 = vsub.f32 %v11812_v45, %v12990_v13  ;;  %8095 = vmatprep.subr.bf16.mxu1 %v8094_v50  ;;  %v6432_v36 = vpop.f32.mrb[11].mxu1  ;;  %v13503_v52 = vld [vmem:[#allocation16_spill] sm:$0xff] }
 0x20f   : > { %v8098_v10 = vpack.c.bf16 %v4400_v46, %v4393_v21  ;;  %v13484_v49 = vand.u32 4294901760, %v11824_v33  ;;  %v4407_v59 = vand.u32 4294901760, %v4406_v32  ;;  %v4414_v57 = vand.u32 4294901760, %v4413_v24  ;;  %8069 = vmatpush3.bf16.msra.mxu0 %v11862_v4 }
 0x210   : > { %v13485_v9 = vand.u32 4294901760, %v11737_v8  ;;  %v13486_v1 = vand.u32 4294901760, %v11741_v7  ;;  %8071 = vmatprep.subr.bf16.mxu0 %v11869_v60  ;;  %v8106_v50 = vpack.c.bf16 %v11328_v35, %v11323_v40  ;;  %v6433_v21 = vadd.f32 %v6432_v36, %v6431_v58 }
 0x211   : > { %v4185_v34 = vsub.f32 %v11824_v33, %v13484_v49  ;;  %8097 = vmatpush3.bf16.msra.mxu1 %v8096_v2  ;;  %v8100_v46 = vpack.c.bf16 %v4288_v26, %v4281_v14  ;;  %v4295_v32 = vand.u32 4294901760, %v4294_v29  ;;  %v4302_v24 = vand.u32 4294901760, %v4301_v11  ;;  %v13488_v2 = vld [vmem:[#allocation13_spill] sm:$0xff]  ;;  %v13490_v29 = vld [vmem:[#allocation23_spill] sm:$0xff]  ;;  %v13491_v11 = vld [vmem:[#allocation22_spill] sm:$0xff] }
 0x212   : > { %v11886_v63 = vpack.c.bf16 %v13486_v1, %v13485_v9  ;;  %8099 = vmatprep.subr.bf16.mxu1 %v8098_v10  ;;  %v8102_v18 = vpack.c.bf16 %v4414_v57, %v4407_v59  ;;  %v11891_v54 = vadd.f32 %v6433_v21, %v2121_v51  ;;  %v8108_v8 = vpack.c.bf16 %v11387_v48, %v11370_v17  ;;  %v13489_v51 = vld [vmem:[#allocation8_spill] sm:$0xff]  ;;  %v13492_v49 = vld [vmem:[#allocation25_spill] sm:$0xff] }
 0x213   : > { %v4186_v6 = vand.u32 4294901760, %v4185_v34  ;;  %v8110_v7 = vpack.c.bf16 %v11446_v30, %v11441_v25  ;;  %v8104_v22 = vpack.c.bf16 %v4302_v24, %v4295_v32  ;;  %v8112_v14 = vpack.c.bf16 %v11494_v31, %v11480_v61  ;;  %v13494_v9 = vld [vmem:[#allocation20_spill] sm:$0xff]  ;;  %v13495_v1 = vld [vmem:[#allocation21_spill] sm:$0xff] }
 0x214   : > { %13487 = vst [vmem:[#allocation28_spill] sm:$0xff] %v11891_v54  ;;  %8073 = vmatpush3.bf16.msra.mxu0 %v11886_v63  ;;  %v8114_v26 = vpack.c.bf16 %v13489_v51, %v13488_v2  ;;  %v8116_v10 = vpack.c.bf16 %v13491_v11, %v13490_v29  ;;  %v8118_v34 = vpack.c.bf16 %v11543_v19, %v13492_v49  ;;  %v13493_v59 = vand.u32 4294901760, %v11547_v47  ;;  %v13499_v32 = vld [vmem:[#allocation9_spill] sm:$0xff]  ;;  %v8628_v54 = vld [vmem:[%s9001_s14 + $0x100] sm:$0xff] }
 0x215   : > { %8107 = vmatprep.subr.bf16.mxu0 %v8106_v50  ;;  %8101 = vmatpush3.bf16.msra.mxu1 %v8100_v46  ;;  %v8120_v57 = vpack.c.bf16 %v11559_v28, %v11552_v37  ;;  %v8122_v58 = vpack.c.bf16 %v11600_v39, %v11587_v43  ;;  %v8124_v36 = vpack.c.bf16 %v13495_v1, %v13494_v9  ;;  %v13497_v50 = vld [vmem:[#allocation17_spill] sm:$0xff]  ;;  %v13498_v46 = vld [vmem:[#allocation10_spill] sm:$0xff] }
 0x216   : > { %8103 = vmatprep.subr.bf16.mxu1 %v8102_v18  ;;  %v8128_v24 = vpack.c.bf16 %v11695_v27, %v11690_v41  ;;  %v8134_v13 = vpack.c.bf16 %v11791_v62, %v11786_v23 }
 0x217   : > { %4187 = vmatmul.mubr.f32.vlgmr.msra.gmra.mrb[24].mxu0 %v4186_v6  ;;  %v13500_v6 = vld [vmem:[#allocation26_spill] sm:$0xff] }
 0x218   : > { %8109 = vmatpush3.bf16.msra.mxu0 %v8108_v8  ;;  %4554 = vmatprep.mubr.f32.mxu0 %v11547_v47  ;;  %v13496_v47 = vld [vmem:[#allocation14_spill] sm:$0xff]  ;;  %v8130_v18 = vpack.c.bf16 %v13500_v6, %v11732_v42  ;;  %v13501_v8 = vld [vmem:[#allocation15_spill] sm:$0xff] }
 0x219   : > { %8111 = vmatprep.subr.bf16.mxu0 %v8110_v7  ;;  %8105 = vmatpush3.bf16.msra.mxu1 %v8104_v22  ;;  %v8126_v21 = vpack.c.bf16 %v13497_v50, %v13496_v47  ;;  %v13502_v22 = vld [vmem:[#allocation18_spill] sm:$0xff] }
 0x21a   : > { %8139 = vmatprep.subr.bf16.mxu1 %v11438_v0 }
 0x21c   : > { %8113 = vmatpush3.bf16.msra.mxu0 %v8112_v14  ;;  %4419 = vmatmul.mubr.f32.vlgmr.msra.gmra.mrb[24].mxu1 %v11460_v16 }
 0x21d   : > { %8115 = vmatprep.subr.bf16.mxu0 %v8114_v26  ;;  %8141 = vmatpush3.bf16.msra.mxu1 %v11444_v12  ;;  %v8132_v26 = vpack.c.bf16 %v11777_v55, %v11766_v56 }
 0x21e   : > { %4661 = vmatprep.mubr.f32.mxu1 %v13493_v59  ;;  %8143 = vmatprep.subr.bf16.mxu1 %v11464_v5  ;;  %v6466_v7 = vpop.f32.mrb[12].mxu0  ;;  %v8624_v59 = vld [vmem:[%s9001_s14 + $0x180] sm:$0xff] }
 0x21f   : > { %v6467_v14 = vpop.f32.mrb[13].mxu0 }
 0x220   : > { %8117 = vmatpush3.bf16.msra.mxu0 %v8116_v10  ;;  %v6468_v10 = vadd.f32 %v6467_v14, %v6466_v7  ;;  %v8629_v7 = vld [vmem:[%s8995_s26 + $0x108] sm:$0xff] }
 0x221   : > { %8119 = vmatprep.subr.bf16.mxu0 %v8118_v34  ;;  %8145 = vmatpush3.bf16.msra.mxu1 %v11466_v44  ;;  %v8623_v34 = vld [vmem:[%s8995_s26 + $0x180] sm:$0xff]  ;;  %v8630_v14 = vld [vmem:[%s9001_s14 + $0x108] sm:$0xff] }
 0x222   : > { %8147 = vmatprep.subr.bf16.mxu1 %v11501_v3 }
 0x224   : > { %8121 = vmatpush3.bf16.msra.mxu0 %v8120_v57  ;;  %v11935_v57 = vadd.f32 %v8624_v59, %v8623_v34  ;;  %v11951_v34 = vadd.f32 %v8630_v14, %v8629_v7  ;;  %v6501_v59 = vpop.f32.mrb[12].mxu1 }
 0x225   : > { %8123 = vmatprep.subr.bf16.mxu0 %v8122_v58  ;;  %8149 = vmatpush3.bf16.msra.mxu1 %v13498_v46  ;;  %v8625_v58 = vld [vmem:[%s8995_s26 + $0x188] sm:$0xff] }
 0x226   : > { %8151 = vmatprep.subr.bf16.mxu1 %v13499_v32 }
 0x228   : > { %8125 = vmatpush3.bf16.msra.mxu0 %v8124_v36  ;;  %v8626_v36 = vld [vmem:[%s9001_s14 + $0x188] sm:$0xff] }
 0x229   : > { %8127 = vmatprep.subr.bf16.mxu0 %v8126_v21  ;;  %8153 = vmatpush3.bf16.msra.mxu1 %v13501_v8  ;;  %v11939_v21 = vadd.f32 %v8626_v36, %v8625_v58  ;;  %v8639_v8 = vld [vmem:[%s9001_s14 + $0x118] sm:$0xff] }
 0x22a   : > { %8155 = vmatprep.subr.bf16.mxu1 %v13502_v22  ;;  %v13512_v22 = vand.u32 4294901760, %v11480_v61 }
 0x22b   : > { %v13516_v61 = vand.u32 4294901760, %v11939_v21 }
 0x22c   : > { %8129 = vmatpush3.bf16.msra.mxu0 %v8128_v24  ;;  %v8627_v24 = vld [vmem:[%s8995_s26 + $0x100] sm:$0xff] }
 0x22d   : > { %8131 = vmatprep.subr.bf16.mxu0 %v8130_v18  ;;  %8157 = vmatpush3.bf16.msra.mxu1 %v13503_v52  ;;  %v11946_v16 = vadd.f32 %v8628_v54, %v8627_v24  ;;  %v8136_v18 = vpack.c.bf16 %v11812_v45, %v11807_v20  ;;  %v6502_v52 = vpop.f32.mrb[13].mxu1  ;;  %v13504_v54 = vand.u32 4294901760, %v11323_v40  ;;  %v13505_v24 = vand.u32 4294901760, %v11328_v35 }
 0x22e   : > { %8159 = vmatprep.subr.bf16.mxu1 %v11664_v38  ;;  %v6503_v14 = vadd.f32 %v6502_v52, %v6501_v59  ;;  %v13509_v40 = vand.u32 4294901760, %v11387_v48  ;;  %v13513_v52 = vand.u32 4294901760, %v11494_v31  ;;  %v8632_v48 = vld [vmem:[%s8995_s26 + $0x190] sm:$0xff]  ;;  %v11999_v31 = vsub.f32 %v11939_v21, %v13516_v61  ;;  %v8638_v61 = vld [vmem:[%s8995_s26 + $0x118] sm:$0xff] }
 0x22f   : > { %v8170_v38 = vpack.c.bf16 %v13505_v24, %v13504_v54  ;;  %v4943_v35 = vand.u32 4294901760, %v11946_v16  ;;  %v13510_v54 = vand.u32 4294901760, %v11441_v25  ;;  %v13511_v24 = vand.u32 4294901760, %v11446_v30 }
 0x230   : > { %8133 = vmatpush3.bf16.msra.mxu0 %v8132_v26  ;;  %v11964_v26 = vld [vmem:[%s12730_s1 + $0x18] sm:$0xff]  ;;  %v8176_v59 = vpack.c.bf16 %v13513_v52, %v13512_v22  ;;  %v13515_v25 = vand.u32 4294901760, %v11935_v57  ;;  %v13517_v52 = vand.u32 4294901760, %v13488_v2  ;;  %v13522_v2 = vand.u32 4294901760, %v11543_v19 }
 0x231   : > { %8135 = vmatprep.subr.bf16.mxu0 %v8134_v13  ;;  %13506 = vst [vmem:[#allocation13_spill] sm:$0xff] %v11964_v26  ;;  %v11967_v7 = vand.u32 4294901760, %v11964_v26  ;;  %8161 = vmatpush3.bf16.msra.mxu1 %v11833_v15  ;;  %v13508_v13 = vand.u32 4294901760, %v11370_v17  ;;  %v8174_v58 = vpack.c.bf16 %v13511_v24, %v13510_v54  ;;  %v4946_v17 = vand.u32 4294901760, %v11951_v34  ;;  %v8634_v22 = vld [vmem:[%s8995_s26 + $0x198] sm:$0xff]  ;;  %v8637_v15 = vld [vmem:[%s9001_s14 + $0x110] sm:$0xff] }
 0x232   : > { %8163 = vmatprep.subr.bf16.mxu1 %v11839_v53  ;;  %v11989_v53 = vadd.f32 %v6503_v14, %v6468_v10  ;;  %v11994_v30 = vsub.f32 %v11935_v57, %v13515_v25  ;;  %v8635_v54 = vld [vmem:[%s9001_s14 + $0x198] sm:$0xff]  ;;  %v13518_v10 = vand.u32 4294901760, %v13489_v51  ;;  %v8636_v25 = vld [vmem:[%s8995_s26 + $0x110] sm:$0xff]  ;;  %v12019_v26 = vadd.f32 %v8639_v8, %v8638_v61 }
 0x233   : > { %13507 = vst [vmem:[#allocation8_spill] sm:$0xff] %v11967_v7  ;;  %v8172_v36 = vpack.c.bf16 %v13509_v40, %v13508_v13  ;;  %v8633_v13 = vld [vmem:[%s9001_s14 + $0x190] sm:$0xff]  ;;  %v4067_v24 = vadd.f32 %v8635_v54, %v8634_v22  ;;  %v13526_v54 = vand.u32 4294901760, %v11600_v39  ;;  %v13527_v19 = vand.u32 4294901760, %v13494_v9 }
 0x234   : > { %v11987_v40 = vadd.f32 %v8633_v13, %v8632_v48  ;;  %13514 = vst [vmem:[#allocation23_spill] sm:$0xff] %v11989_v53  ;;  %8137 = vmatpush3.bf16.msra.mxu0 %v8136_v18  ;;  %v8178_v14 = vpack.c.bf16 %v13518_v10, %v13517_v52  ;;  %v13519_v18 = vand.u32 4294901760, %v13490_v29  ;;  %v13520_v48 = vand.u32 4294901760, %v13491_v11 }
 0x235   : > { %8171 = vmatprep.subr.bf16.mxu0 %v8170_v38  ;;  %v12015_v53 = vadd.f32 %v8637_v15, %v8636_v25  ;;  %8165 = vmatpush3.bf16.msra.mxu1 %v11862_v4  ;;  %v13521_v38 = vand.u32 4294901760, %v13492_v49  ;;  %v13523_v29 = vand.u32 4294901760, %v11552_v37  ;;  %v13524_v11 = vand.u32 4294901760, %v11559_v28 }
 0x236   : > { %v12011_v13 = vpack.c.bf16 %v13520_v48, %v13519_v18  ;;  %v13525_v15 = vand.u32 4294901760, %v11587_v43  ;;  %v12041_v52 = vsub.f32 %v11946_v16, %v4943_v35  ;;  %8167 = vmatprep.subr.bf16.mxu1 %v11869_v60  ;;  %v13528_v37 = vand.u32 4294901760, %v13495_v1 }
 0x237   : > { %v12026_v51 = vpack.c.bf16 %v13522_v2, %v13521_v38  ;;  %v12032_v22 = vpack.c.bf16 %v13524_v11, %v13523_v29  ;;  %4557 = vmatmul.mubr.f32.vlgmr.msra.gmra.mrb[26].mxu0 %v11824_v33  ;;  %v13529_v49 = vand.u32 4294901760, %v13496_v47  ;;  %v13530_v43 = vand.u32 4294901760, %v13497_v50  ;;  %v13533_v47 = vld [vmem:[#allocation12_spill] sm:$0xff] }
 0x238   : > { %v12038_v8 = vpack.c.bf16 %v13526_v54, %v13525_v15  ;;  %v12049_v28 = vpack.c.bf16 %v13528_v37, %v13527_v19  ;;  %v12058_v16 = vsub.f32 %v11951_v34, %v4946_v17  ;;  %v4997_v10 = vand.u32 4294901760, %v11987_v40  ;;  %8173 = vmatpush3.bf16.msra.mxu0 %v8172_v36  ;;  %4831 = vmatprep.mubr.f32.mxu0 %v13533_v47  ;;  %v8641_v15 = vld [vmem:[%s9001_s14 + $0x1a0] sm:$0xff]  ;;  %v8643_v19 = vld [vmem:[%s9001_s14 + $0x1a8] sm:$0xff] }
 0x239   : > { %v12055_v39 = vpack.c.bf16 %v13530_v43, %v13529_v49  ;;  %v13531_v9 = vand.u32 4294901760, %v11690_v41  ;;  %v13532_v1 = vand.u32 4294901760, %v11695_v27  ;;  %v5000_v50 = vand.u32 4294901760, %v4067_v24  ;;  %8175 = vmatprep.subr.bf16.mxu0 %v8174_v58  ;;  %8169 = vmatpush3.bf16.msra.mxu1 %v11886_v63 }
 0x23a   : > { %v13008_v48 = vand.u32 4294901760, %v11994_v30  ;;  %v13006_v34 = vand.u32 4294901760, %v11999_v31  ;;  %v13534_v25 = vand.u32 4294901760, %v11732_v42  ;;  %v13535_v36 = vand.u32 4294901760, %v13500_v6  ;;  %v8640_v6 = vld [vmem:[%s8995_s26 + $0x1a0] sm:$0xff]  ;;  %8203 = vmatprep.subr.bf16.mxu1 %v11438_v0 }
 0x23b   : > { %v12065_v18 = vpack.c.bf16 %v13532_v1, %v13531_v9  ;;  %v13536_v41 = vand.u32 4294901760, %v11766_v56  ;;  %v13537_v27 = vand.u32 4294901760, %v11777_v55  ;;  %v4949_v2 = vand.u32 4294901760, %v12015_v53  ;;  %v8642_v56 = vld [vmem:[%s8995_s26 + $0x1a8] sm:$0xff] }
 0x23c   : > { %v12074_v61 = vpack.c.bf16 %v13535_v36, %v13534_v25  ;;  %v4952_v29 = vand.u32 4294901760, %v12019_v26  ;;  %v13538_v58 = vand.u32 4294901760, %v11786_v23  ;;  %v13539_v42 = vand.u32 4294901760, %v11791_v62  ;;  %8177 = vmatpush3.bf16.msra.mxu0 %v8176_v59 }
 0x23d   : > { %v12080_v38 = vpack.c.bf16 %v13537_v27, %v13536_v41  ;;  %v4068_v54 = vadd.f32 %v8641_v15, %v8640_v6  ;;  %v12095_v55 = vadd.f32 %v8643_v19, %v8642_v56  ;;  %v13004_v37 = vand.u32 4294901760, %v12041_v52  ;;  %8179 = vmatprep.subr.bf16.mxu0 %v8178_v14  ;;  %v8646_v41 = vld [vmem:[%s9001_s14 + $0x120] sm:$0xff]  ;;  %v8648_v14 = vld [vmem:[%s9001_s14 + $0x128] sm:$0xff]  ;;  %v8650_v15 = vld [vmem:[%s9001_s14 + $0x1b0] sm:$0xff] }
 0x23e   : > { %v12089_v11 = vpack.c.bf16 %v13539_v42, %v13538_v58  ;;  %v13540_v49 = vand.u32 4294901760, %v11807_v20  ;;  %v13541_v43 = vand.u32 4294901760, %v11812_v45  ;;  %v13542_v62 = vand.u32 4294901760, %v11935_v57 }
 0x23f   : > { %v13543_v9 = vand.u32 4294901760, %v11939_v21  ;;  %v12112_v25 = vsub.f32 %v11987_v40, %v4997_v10  ;;  %v13003_v36 = vand.u32 4294901760, %v12058_v16  ;;  %v12115_v0 = vpack.c.bf16 %v4946_v17, %v4943_v35  ;;  %v12128_v21 = vld [vmem:[%s12730_s1 + $0x10] sm:$0xff] }
 0x240   : > { %v12103_v23 = vpack.c.bf16 %v13541_v43, %v13540_v49  ;;  %v12117_v20 = vsub.f32 %v4067_v24, %v5000_v50  ;;  %v5170_v45 = vsub.f32 %v11994_v30, %v13008_v48  ;;  %v5177_v57 = vsub.f32 %v11999_v31, %v13006_v34  ;;  %v8645_v24 = vld [vmem:[%s8995_s26 + $0x120] sm:$0xff]  ;;  %8181 = vmatpush3.bf16.msra.mxu0 %v12011_v13  ;;  %v8651_v43 = vld [vmem:[%s8995_s26 + $0x1b8] sm:$0xff] }
 0x241   : > { %v12109_v1 = vpack.c.bf16 %v13543_v9, %v13542_v62  ;;  %v12131_v35 = vand.u32 4294901760, %v12128_v21  ;;  %v13544_v59 = vand.u32 4294901760, %v11824_v33  ;;  %v12135_v17 = vpack.c.bf16 %v5000_v50, %v4997_v10  ;;  %v8647_v33 = vld [vmem:[%s8995_s26 + $0x128] sm:$0xff]  ;;  %8183 = vmatprep.subr.bf16.mxu0 %v12026_v51  ;;  %v8668_v48 = vld [vmem:[%s9001_s14 + $0x1d8] sm:$0xff] }
 0x242   : > { %v12137_v40 = vpack.c.bf16 %v4952_v29, %v4949_v2  ;;  %v4052_v27 = vadd.f32 %v8646_v41, %v8645_v24  ;;  %v5003_v58 = vand.u32 4294901760, %v4068_v54  ;;  %v5006_v42 = vand.u32 4294901760, %v12095_v55  ;;  %v8653_v24 = vld [vmem:[%s8995_s26 + $0x130] sm:$0xff] }
 0x243   : > { %4665 = vmatmul.mubr.f32.vlgmr.msra.gmra.mrb[26].mxu1 %v13544_v59  ;;  %v4053_v10 = vadd.f32 %v8648_v14, %v8647_v33  ;;  %v5058_v50 = vsub.f32 %v12041_v52, %v13004_v37  ;;  %v12151_v6 = vsub.f32 %v12015_v53, %v4949_v2  ;;  %v13000_v19 = vand.u32 4294901760, %v12112_v25  ;;  %v8652_v53 = vld [vmem:[%s9001_s14 + $0x1b8] sm:$0xff]  ;;  %v8654_v41 = vld [vmem:[%s9001_s14 + $0x130] sm:$0xff] }
 0x244   : > { %8205 = vmatpush3.bf16.msra.mxu1 %v11444_v12  ;;  %4935 = vmatprep.mubr.f32.mxu1 %v13533_v47  ;;  %v5065_v12 = vsub.f32 %v12058_v16, %v13003_v36  ;;  %v8649_v47 = vld [vmem:[%s8995_s26 + $0x1b0] sm:$0xff]  ;;  %v5171_v49 = vand.u32 4294901760, %v5170_v45  ;;  %v4071_v2 = vadd.f32 %v8652_v53, %v8651_v43  ;;  %v12999_v62 = vand.u32 4294901760, %v12117_v20  ;;  %v8655_v14 = vld [vmem:[%s8995_s26 + $0x138] sm:$0xff] }
 0x245   : > { %8207 = vmatprep.subr.bf16.mxu1 %v11464_v5  ;;  %v4070_v56 = vadd.f32 %v8650_v15, %v8649_v47  ;;  %v5178_v5 = vand.u32 4294901760, %v5177_v57  ;;  %v12165_v9 = vsub.f32 %v12019_v26, %v4952_v29  ;;  %v4955_v59 = vand.u32 4294901760, %v4052_v27  ;;  %v8656_v47 = vld [vmem:[%s9001_s14 + $0x138] sm:$0xff]  ;;  %8185 = vmatpush3.bf16.msra.mxu0 %v12032_v22 }
 0x246   : > { %v4054_v33 = vadd.f32 %v8654_v41, %v8653_v24  ;;  %v4055_v15 = vadd.f32 %v8656_v47, %v8655_v14  ;;  %v12172_v13 = vpack.c.bf16 %v5006_v42, %v5003_v58  ;;  %v12174_v45 = vsub.f32 %v4068_v54, %v5003_v58  ;;  %8187 = vmatprep.subr.bf16.mxu0 %v12038_v8  ;;  %v8659_v14 = vld [vmem:[%s8995_s26 + $0x1c8] sm:$0xff] }
 0x247   : > { %v4958_v57 = vand.u32 4294901760, %v4053_v10  ;;  %v5059_v43 = vand.u32 4294901760, %v5058_v50  ;;  %v5066_v51 = vand.u32 4294901760, %v5065_v12  ;;  %v5009_v26 = vand.u32 4294901760, %v4070_v56  ;;  %v8660_v47 = vld [vmem:[%s9001_s14 + $0x1c8] sm:$0xff] }
 0x248   : > { %8209 = vmatpush3.bf16.msra.mxu1 %v11466_v44  ;;  %13545 = vst [vmem:[#allocation22_spill] sm:$0xff] %v12174_v45  ;;  %v5184_v29 = vsub.f32 %v12112_v25, %v13000_v19  ;;  %v13001_v53 = vand.u32 4294901760, %v12151_v6  ;;  %v12183_v44 = vsub.f32 %v12095_v55, %v5006_v42  ;;  %v12185_v54 = vpack.c.bf16 %v5178_v5, %v5171_v49  ;;  %v8657_v49 = vld [vmem:[%s8995_s26 + $0x1c0] sm:$0xff] }
 0x249   : > { %8211 = vmatprep.subr.bf16.mxu1 %v11501_v3  ;;  %v5012_v3 = vand.u32 4294901760, %v4071_v2  ;;  %v5191_v58 = vsub.f32 %v12117_v20, %v12999_v62  ;;  %v12191_v50 = vsub.f32 %v4052_v27, %v4955_v59  ;;  %v4961_v12 = vand.u32 4294901760, %v4054_v33  ;;  %v8658_v5 = vld [vmem:[%s9001_s14 + $0x1c0] sm:$0xff]  ;;  %8189 = vmatpush3.bf16.msra.mxu0 %v12049_v28 }
 0x24a   : > { %13546 = vst [vmem:[#allocation25_spill] sm:$0xff] %v12183_v44  ;;  %v4964_v24 = vand.u32 4294901760, %v4055_v15  ;;  %v13002_v22 = vand.u32 4294901760, %v12165_v9  ;;  %v12195_v55 = vpack.c.bf16 %v4958_v57, %v4955_v59  ;;  %v12197_v42 = vsub.f32 %v4053_v10, %v4958_v57  ;;  %8191 = vmatprep.subr.bf16.mxu0 %v12055_v39 }
 0x24b   : > { %13547 = vst [vmem:[#allocation20_spill] sm:$0xff] %v12191_v50  ;;  %v4072_v41 = vadd.f32 %v8658_v5, %v8657_v49  ;;  %v4073_v62 = vadd.f32 %v8660_v47, %v8659_v14  ;;  %v12204_v8 = vpack.c.bf16 %v5066_v51, %v5059_v43  ;;  %v12206_v27 = vsub.f32 %v4070_v56, %v5009_v26  ;;  %v13552_v49 = vld [vmem:[#allocation13_spill] sm:$0xff]  ;;  %v6536_v51 = vpop.f32.mrb[14].mxu0  ;;  %v13555_v14 = vld [vmem:[#allocation18_spill] sm:$0xff]  ;;  %v8662_v47 = vld [vmem:[%s9001_s14 + $0x140] sm:$0xff] }
 0x24c   : > { %8213 = vmatpush3.bf16.msra.mxu1 %v13498_v46  ;;  %13548 = vst [vmem:[#allocation21_spill] sm:$0xff] %v12195_v55  ;;  %13549 = vst [vmem:[#allocation14_spill] sm:$0xff] %v12197_v42  ;;  %v5185_v19 = vand.u32 4294901760, %v5184_v29  ;;  %v5072_v46 = vsub.f32 %v12151_v6, %v13001_v53  ;;  %v12212_v10 = vpack.c.bf16 %v5012_v3, %v5009_v26  ;;  %v5192_v57 = vand.u32 4294901760, %v5191_v58  ;;  %v13554_v26 = vld [vmem:[#allocation15_spill] sm:$0xff]  ;;  %v6537_v5 = vpop.f32.mrb[15].mxu0 }
 0x24d   : > { %8215 = vmatprep.subr.bf16.mxu1 %v13499_v32  ;;  %13550 = vst [vmem:[#allocation17_spill] sm:$0xff] %v12206_v27  ;;  %v12214_v59 = vsub.f32 %v4071_v2, %v5012_v3  ;;  %v12218_v32 = vsub.f32 %v13552_v49, %v11967_v7  ;;  %v12221_v56 = vpack.c.bf16 %v4964_v24, %v4961_v12  ;;  %v13005_v2 = vand.u32 4294901760, %v12174_v45  ;;  %v8663_v53 = vld [vmem:[%s8995_s26 + $0x148] sm:$0xff] }
 0x24e   : > { %13551 = vst [vmem:[#allocation10_spill] sm:$0xff] %v12212_v10  ;;  %v12223_v43 = vsub.f32 %v4054_v33, %v4961_v12  ;;  %v5079_v28 = vsub.f32 %v12165_v9, %v13002_v22  ;;  %v12230_v29 = vsub.f32 %v4055_v15, %v4964_v24  ;;  %v5015_v3 = vand.u32 4294901760, %v4072_v41  ;;  %v8661_v12 = vld [vmem:[%s8995_s26 + $0x140] sm:$0xff]  ;;  %v8664_v22 = vld [vmem:[%s9001_s14 + $0x148] sm:$0xff]  ;;  %8193 = vmatpush3.bf16.msra.mxu0 %v12065_v18 }
 0x24f   : > { %13553 = vst [vmem:[#allocation9_spill] sm:$0xff] %v12221_v56  ;;  %v5018_v58 = vand.u32 4294901760, %v4073_v62  ;;  %v13007_v39 = vand.u32 4294901760, %v12183_v44  ;;  %v5073_v33 = vand.u32 4294901760, %v5072_v46  ;;  %v4056_v49 = vadd.f32 %v8662_v47, %v8661_v12  ;;  %8195 = vmatprep.subr.bf16.mxu0 %v12074_v61 }
 0x250   : > { %8217 = vmatpush3.bf16.msra.mxu1 %v13554_v26  ;;  %v12238_v36 = vadd.f32 %v8664_v22, %v8663_v53  ;;  %v13010_v37 = vand.u32 4294901760, %v12191_v50  ;;  %v6538_v26 = vadd.f32 %v6537_v5, %v6536_v51  ;;  %v12242_v15 = vpack.c.bf16 %v5192_v57, %v5185_v19  ;;  %v13556_v19 = vld [vmem:[#allocation23_spill] sm:$0xff]  ;;  %v13557_v51 = vld [vmem:[#allocation16_spill] sm:$0xff] }
 0x251   : > { %8219 = vmatprep.subr.bf16.mxu1 %v13555_v14  ;;  %v13009_v24 = vand.u32 4294901760, %v12197_v42  ;;  %v13013_v14 = vand.u32 4294901760, %v12218_v32  ;;  %v5080_v46 = vand.u32 4294901760, %v5079_v28  ;;  %v12250_v53 = vsub.f32 %v12174_v45, %v13005_v2  ;;  %v13559_v28 = vld [vmem:[#allocation11_spill] sm:$0xff] }
 0x252   : > { %v13020_v22 = vand.u32 4294901760, %v12206_v27  ;;  %v2771_v57 = vadd.f32 %v6538_v26, %v13556_v19  ;;  %v12256_v5 = vpack.c.bf16 %v5018_v58, %v5015_v3  ;;  %v12258_v12 = vsub.f32 %v4072_v41, %v5015_v3  ;;  %v8665_v19 = vld [vmem:[%s8995_s26 + $0x1d0] sm:$0xff]  ;;  %8197 = vmatpush3.bf16.msra.mxu0 %v12080_v38  ;;  %v6571_v41 = vpop.f32.mrb[14].mxu1 }
 0x253   : > { %v5205_v61 = vsub.f32 %v12183_v44, %v13007_v39  ;;  %v4967_v47 = vand.u32 4294901760, %v4056_v49  ;;  %v4970_v2 = vand.u32 4294901760, %v12238_v36  ;;  %v5086_v26 = vsub.f32 %v12191_v50, %v13010_v37  ;;  %v8667_v39 = vld [vmem:[%s8995_s26 + $0x1d8] sm:$0xff]  ;;  %8199 = vmatprep.subr.bf16.mxu0 %v12089_v11  ;;  %v8670_v50 = vld [vmem:[%s9001_s14 + $0x150] sm:$0xff] }
 0x254   : > { %8221 = vmatpush3.bf16.msra.mxu1 %v13557_v51  ;;  %13558 = vst [vmem:[#allocation26_spill] sm:$0xff] %v12256_v5  ;;  %v8666_v51 = vld [vmem:[%s9001_s14 + $0x1d0] sm:$0xff]  ;;  %v12271_v3 = vsub.f32 %v4073_v62, %v5018_v58  ;;  %v4075_v18 = vadd.f32 %v8668_v48, %v8667_v39  ;;  %v12282_v38 = vpack.c.bf16 %v5080_v46, %v5073_v33  ;;  %v5199_v62 = vand.u32 4294901760, %v12250_v53  ;;  %v13561_v39 = vld [vmem:[#allocation27_spill] sm:$0xff] }
 0x255   : > { %8223 = vmatprep.subr.bf16.mxu1 %v13559_v28  ;;  %v4074_v34 = vadd.f32 %v8666_v51, %v8665_v19  ;;  %v5093_v28 = vsub.f32 %v12197_v42, %v13009_v24  ;;  %v5041_v19 = vsub.f32 %v12218_v32, %v13013_v14  ;;  %v6572_v51 = vpop.f32.mrb[15].mxu1  ;;  %v5212_v58 = vsub.f32 %v12206_v27, %v13020_v22  ;;  %v8669_v14 = vld [vmem:[%s8995_s26 + $0x150] sm:$0xff]  ;;  %v8671_v11 = vld [vmem:[%s8995_s26 + $0x158] sm:$0xff] }
 0x256   : > { %v13560_v24 = vand.u32 4294901760, %v12214_v59  ;;  %v6573_v48 = vadd.f32 %v6572_v51, %v6571_v41  ;;  %v5206_v42 = vand.u32 4294901760, %v5205_v61  ;;  %v12294_v44 = vadd.f32 %v8670_v50, %v8669_v14  ;;  %v8672_v33 = vld [vmem:[%s9001_s14 + $0x158] sm:$0xff]  ;;  %8201 = vmatpush3.bf16.msra.mxu0 %v12103_v23 }
 0x257   : > { %v12298_v46 = vadd.f32 %v8672_v33, %v8671_v11  ;;  %v13562_v53 = vld [vmem:[#allocation19_spill] sm:$0xff]  ;;  %v12301_v45 = vpack.c.bf16 %v4970_v2, %v4967_v47  ;;  %v12303_v22 = vsub.f32 %v4056_v49, %v4967_v47  ;;  %v5087_v27 = vand.u32 4294901760, %v5086_v26  ;;  %8235 = vmatprep.subr.bf16.mxu0 %v12109_v1 }
 0x258   : > { %v5219_v37 = vsub.f32 %v12214_v59, %v13560_v24  ;;  %8225 = vmatpush3.bf16.msra.mxu1 %v13561_v39  ;;  %v5021_v24 = vand.u32 4294901760, %v4074_v34  ;;  %v12305_v41 = vadd.f32 %v6573_v48, %v2771_v57  ;;  %v5094_v50 = vand.u32 4294901760, %v5093_v28  ;;  %v8673_v28 = vld [vmem:[%s8995_s26 + $0x1e0] sm:$0xff] }
 0x259   : > { %8227 = vmatprep.subr.bf16.mxu1 %v13562_v53  ;;  %13563 = vst [vmem:[#allocation12_spill] sm:$0xff] %v12301_v45  ;;  %13564 = vst [vmem:[#allocation13_spill] sm:$0xff] %v12303_v22  ;;  %v5024_v14 = vand.u32 4294901760, %v4075_v18  ;;  %v5042_v61 = vand.u32 4294901760, %v5041_v19  ;;  %v5213_v51 = vand.u32 4294901760, %v5212_v58  ;;  %v13024_v49 = vand.u32 4294901760, %v12223_v43 }
 0x25a   : > { %v5220_v39 = vand.u32 4294901760, %v5219_v37  ;;  %v13023_v47 = vand.u32 4294901760, %v12230_v29  ;;  %v12313_v57 = vsub.f32 %v12238_v36, %v4970_v2  ;;  %v13026_v23 = vand.u32 4294901760, %v12294_v44  ;;  %v8674_v19 = vld [vmem:[%s9001_s14 + $0x1e0] sm:$0xff]  ;;  %v8676_v36 = vld [vmem:[%s9001_s14 + $0x1e8] sm:$0xff] }
 0x25b   : > { %v13025_v26 = vand.u32 4294901760, %v12298_v46  ;;  %v12319_v48 = vadd.f32 %v8674_v19, %v8673_v28  ;;  %v13566_v58 = vld [vmem:[#allocation24_spill] sm:$0xff]  ;;  %v12323_v37 = vpack.c.bf16 %v5206_v42, %v5199_v62  ;;  %v12325_v11 = vsub.f32 %v4074_v34, %v5021_v24  ;;  %v8680_v19 = vld [vmem:[%s9001_s14 + $0x168] sm:$0xff] }
 0x25c   : > { %8229 = vmatpush3.bf16.msra.mxu1 %v11862_v4  ;;  %13565 = vst [vmem:[#allocation15_spill] sm:$0xff] %v12313_v57  ;;  %4833 = vmatmul.mubr.f32.vlgmr.msra.gmra.mrb[28].mxu0 %v13566_v58  ;;  %v8675_v4 = vld [vmem:[%s8995_s26 + $0x1e8] sm:$0xff]  ;;  %v13027_v33 = vand.u32 4294901760, %v12258_v12  ;;  %v12333_v53 = vpack.c.bf16 %v5094_v50, %v5087_v27  ;;  %v12335_v28 = vpack.c.bf16 %v5024_v14, %v5021_v24  ;;  %v13028_v34 = vand.u32 4294901760, %v12271_v3  ;;  %v8677_v24 = vld [vmem:[%s8995_s26 + $0x160] sm:$0xff] }
 0x25d   : > { %8231 = vmatprep.subr.bf16.mxu1 %v11869_v60  ;;  %13567 = vst [vmem:[#allocation18_spill] sm:$0xff] %v12325_v11  ;;  %v12329_v2 = vadd.f32 %v8676_v36, %v8675_v4  ;;  %8237 = vmatpush3.bf16.msra.mxu0 %v12115_v0  ;;  %v12337_v60 = vsub.f32 %v4075_v18, %v5024_v14  ;;  %v8678_v18 = vld [vmem:[%s9001_s14 + $0x160] sm:$0xff] }
 0x25e   : > { %5043 = vmatprep.mubr.f32.mxu0 %v5042_v61  ;;  %8239 = vmatprep.subr.bf16.mxu0 %v12135_v17  ;;  %v12341_v42 = vpack.c.bf16 %v5220_v39, %v5213_v51  ;;  %v5100_v62 = vsub.f32 %v12223_v43, %v13024_v49  ;;  %v5107_v27 = vsub.f32 %v12230_v29, %v13023_v47  ;;  %v13029_v51 = vand.u32 4294901760, %v12319_v48  ;;  %v8679_v39 = vld [vmem:[%s8995_s26 + $0x168] sm:$0xff]  ;;  %v8683_v49 = vld [vmem:[%s8995_s26 + $0x1f8] sm:$0xff] }
 0x25f   : > { %13568 = vst [vmem:[#allocation23_spill] sm:$0xff] %v12337_v60  ;;  %v12351_v50 = vadd.f32 %v8678_v18, %v8677_v24  ;;  %v12357_v14 = vsub.f32 %v12294_v44, %v13026_v23  ;;  %v12362_v61 = vsub.f32 %v12298_v46, %v13025_v26  ;;  %v12367_v4 = vadd.f32 %v8680_v19, %v8679_v39  ;;  %v8681_v24 = vld [vmem:[%s8995_s26 + $0x1f0] sm:$0xff]  ;;  %v8684_v26 = vld [vmem:[%s9001_s14 + $0x1f8] sm:$0xff] }
 0x260   : > { %8233 = vmatpush3.bf16.msra.mxu1 %v11886_v63  ;;  %v5226_v36 = vsub.f32 %v12258_v12, %v13027_v33  ;;  %v8682_v18 = vld [vmem:[%s9001_s14 + $0x1f0] sm:$0xff]  ;;  %v12380_v23 = vadd.f32 %v8684_v26, %v8683_v49  ;;  %v5101_v49 = vand.u32 4294901760, %v5100_v62  ;;  %v5108_v26 = vand.u32 4294901760, %v5107_v27  ;;  %v8687_v63 = vld [vmem:[%s8995_s26 + $0x178] sm:$0xff] }
 0x261   : > { %8267 = vmatprep.subr.bf16.mxu1 %v12185_v54  ;;  %v12376_v47 = vadd.f32 %v8682_v18, %v8681_v24  ;;  %8241 = vmatpush3.bf16.msra.mxu0 %v12137_v40  ;;  %v5233_v54 = vsub.f32 %v12271_v3, %v13028_v34  ;;  %v12397_v34 = vsub.f32 %v12319_v48, %v13029_v51  ;;  %v8685_v24 = vld [vmem:[%s8995_s26 + $0x170] sm:$0xff]  ;;  %v8688_v62 = vld [vmem:[%s9001_s14 + $0x178] sm:$0xff]  ;;  %s6010_s26 = sshll.u32 %s13658_s21, 3 }
 0x262   : > { %8243 = vmatprep.subr.bf16.mxu0 %v12172_v13  ;;  %v8686_v39 = vld [vmem:[%s9001_s14 + $0x170] sm:$0xff]  ;;  %v12406_v27 = vadd.f32 %v8688_v62, %v8687_v63  ;;  %v5227_v51 = vand.u32 4294901760, %v5226_v36  ;;  %v13571_v63 = vand.u32 4294901760, %v12303_v22  ;;  %v13572_v62 = vand.u32 4294901760, %v12313_v57  ;;  %s363_s16 = scalar_lea.vmem %s12734_s5, %s6010_s26  ;;  %s355_s27 = scalar_lea.vmem %s12733_s4, %s6010_s26 }
 0x263   : > { %4937 = vmatmul.mubr.f32.vlgmr.msra.gmra.mrb[28].mxu1 %v13566_v58  ;;  %v12402_v58 = vadd.f32 %v8686_v39, %v8685_v24  ;;  %v5234_v39 = vand.u32 4294901760, %v5233_v54  ;;  %v13574_v36 = vand.u32 4294901760, %v12351_v50  ;;  %v13575_v54 = vand.u32 4294901760, %v12337_v60 }
 0x264   : > { %8269 = vmatpush3.bf16.msra.mxu1 %v12204_v8  ;;  %5279 = vmatprep.mubr.f32.mxu1 %v11967_v7  ;;  %v13569_v8 = vand.u32 4294901760, %v12329_v2  ;;  %v5114_v24 = vsub.f32 %v12303_v22, %v13571_v63  ;;  %v13573_v7 = vand.u32 4294901760, %v12325_v11 }
 0x265   : > { %8271 = vmatprep.subr.bf16.mxu1 %v12242_v15  ;;  %8245 = vmatpush3.bf16.msra.mxu0 %v12195_v55  ;;  %v5121_v15 = vsub.f32 %v12313_v57, %v13572_v62  ;;  %v12431_v18 = vsub.f32 %v12351_v50, %v13574_v36  ;;  %v5247_v19 = vsub.f32 %v12337_v60, %v13575_v54  ;;  %v13577_v54 = vand.u32 4294901760, %v12376_v47 }
 0x266   : > { %v12413_v33 = vsub.f32 %v12329_v2, %v13569_v8  ;;  %v5240_v8 = vsub.f32 %v12325_v11, %v13573_v7  ;;  %8247 = vmatprep.subr.bf16.mxu0 %v12212_v10  ;;  %v8280_v62 = vpack.c.bf16 %v5108_v26, %v5101_v49  ;;  %v13576_v7 = vand.u32 4294901760, %v12367_v4 }
 0x267   : > { %v12450_v63 = vsub.f32 %v12376_v47, %v13577_v54  ;;  %v13578_v55 = vand.u32 4294901760, %v12380_v23  ;;  %v5115_v36 = vand.u32 4294901760, %v5114_v24  ;;  %v5122_v11 = vand.u32 4294901760, %v5121_v15 }
 0x268   : > { %13570 = vst [vmem:[#allocation16_spill] sm:$0xff] %v12413_v33  ;;  %8273 = vmatpush3.bf16.msra.mxu1 %v12282_v38  ;;  %v12442_v10 = vsub.f32 %v12367_v4, %v13576_v7  ;;  %v13048_v26 = vand.u32 4294901760, %v12413_v33  ;;  %v8282_v7 = vpack.c.bf16 %v5234_v39, %v5227_v51  ;;  %v5248_v60 = vand.u32 4294901760, %v5247_v19 }
 0x269   : > { %8275 = vmatprep.subr.bf16.mxu1 %v12323_v37  ;;  %v12455_v38 = vsub.f32 %v12380_v23, %v13578_v55  ;;  %8249 = vmatpush3.bf16.msra.mxu0 %v12221_v56  ;;  %v5241_v37 = vand.u32 4294901760, %v5240_v8  ;;  %v13579_v54 = vand.u32 4294901760, %v12357_v14  ;;  %v13580_v55 = vand.u32 4294901760, %v12362_v61 }
 0x26a   : > { %8251 = vmatprep.subr.bf16.mxu0 %v12256_v5  ;;  %v13581_v51 = vand.u32 4294901760, %v12402_v58  ;;  %v13582_v24 = vand.u32 4294901760, %v12406_v27  ;;  %v12481_v15 = vsub.f32 %v12128_v21, %v12131_v35  ;;  %v13584_v21 = vand.u32 4294901760, %v12294_v44 }
 0x26b   : > { %v5128_v57 = vsub.f32 %v12357_v14, %v13579_v54  ;;  %v5135_v22 = vsub.f32 %v12362_v61, %v13580_v55  ;;  %v5261_v55 = vsub.f32 %v12413_v33, %v13048_v26  ;;  %v13585_v8 = vand.u32 4294901760, %v12298_v46  ;;  %v6606_v33 = vpop.f32.mrb[16].mxu0 }
 0x26c   : > { %8277 = vmatpush3.bf16.msra.mxu1 %v12333_v53  ;;  %v12472_v39 = vsub.f32 %v12402_v58, %v13581_v51  ;;  %v12477_v19 = vsub.f32 %v12406_v27, %v13582_v24  ;;  %v13583_v53 = vand.u32 4294901760, %v12397_v34  ;;  %v8284_v56 = vpack.c.bf16 %v5122_v11, %v5115_v36  ;;  %v6607_v36 = vpop.f32.mrb[17].mxu0 }
 0x26d   : > { %8279 = vmatprep.subr.bf16.mxu1 %v12341_v42  ;;  %8253 = vmatpush3.bf16.msra.mxu0 %v12301_v45  ;;  %v12498_v49 = vpack.c.bf16 %v13585_v8, %v13584_v21  ;;  %v13586_v42 = vand.u32 4294901760, %v12319_v48  ;;  %v8286_v26 = vpack.c.bf16 %v5248_v60, %v5241_v37  ;;  %v5129_v51 = vand.u32 4294901760, %v5128_v57 }
 0x26e   : > { %v5254_v54 = vsub.f32 %v12397_v34, %v13583_v53  ;;  %v13587_v53 = vand.u32 4294901760, %v12329_v2  ;;  %8255 = vmatprep.subr.bf16.mxu0 %v12335_v28  ;;  %v5136_v24 = vand.u32 4294901760, %v5135_v22  ;;  %v13588_v45 = vand.u32 4294901760, %v12431_v18 }
 0x26f   : > { %v13589_v48 = vand.u32 4294901760, %v12442_v10  ;;  %v13054_v8 = vand.u32 4294901760, %v12472_v39  ;;  %v13053_v11 = vand.u32 4294901760, %v12477_v19  ;;  %v5262_v22 = vand.u32 4294901760, %v5261_v55 }
 0x270   : > { %v12504_v5 = vpack.c.bf16 %v13587_v53, %v13586_v42  ;;  %v5142_v44 = vsub.f32 %v12431_v18, %v13588_v45  ;;  %8281 = vmatpush3.bf16.msra.mxu1 %v8280_v62  ;;  %v5255_v57 = vand.u32 4294901760, %v5254_v54  ;;  %v13590_v60 = vand.u32 4294901760, %v12450_v63 }
 0x271   : > { %v5149_v2 = vsub.f32 %v12442_v10, %v13589_v48  ;;  %8283 = vmatprep.subr.bf16.mxu1 %v8282_v7  ;;  %v13591_v62 = vand.u32 4294901760, %v12455_v38  ;;  %v6608_v21 = vadd.f32 %v6607_v36, %v6606_v33  ;;  %8257 = vmatpush3.bf16.msra.mxu0 %v12498_v49  ;;  %v13592_v42 = vand.u32 4294901760, %v12351_v50 }
 0x272   : > { %v5268_v45 = vsub.f32 %v12450_v63, %v13590_v60  ;;  %v13593_v53 = vand.u32 4294901760, %v12367_v4  ;;  %8259 = vmatprep.subr.bf16.mxu0 %v12504_v5  ;;  %v13594_v7 = vand.u32 4294901760, %v12376_v47  ;;  %v13595_v54 = vand.u32 4294901760, %v12380_v23 }
 0x273   : > { %v5275_v37 = vsub.f32 %v12455_v38, %v13591_v62  ;;  %v8288_v60 = vpack.c.bf16 %v5136_v24, %v5129_v51  ;;  %v5143_v46 = vand.u32 4294901760, %v5142_v44  ;;  %v3047_v33 = vadd.f32 %v6608_v21, %v12305_v41 }
 0x274   : > { %v12527_v48 = vpack.c.bf16 %v13593_v53, %v13592_v42  ;;  %v12534_v55 = vpack.c.bf16 %v13595_v54, %v13594_v7  ;;  %8285 = vmatpush3.bf16.msra.mxu1 %v8284_v56  ;;  %v5150_v36 = vand.u32 4294901760, %v5149_v2  ;;  %v5156_v50 = vsub.f32 %v12472_v39, %v13054_v8  ;;  %v6641_v56 = vpop.f32.mrb[16].mxu1 }
 0x275   : > { %v5163_v4 = vsub.f32 %v12477_v19, %v13053_v11  ;;  %8287 = vmatprep.subr.bf16.mxu1 %v8286_v26  ;;  %v13596_v47 = vand.u32 4294901760, %v12481_v15  ;;  %v8290_v62 = vpack.c.bf16 %v5262_v22, %v5255_v57  ;;  %v5269_v51 = vand.u32 4294901760, %v5268_v45  ;;  %v6642_v21 = vpop.f32.mrb[17].mxu1 }
 0x276   : > { %v5276_v24 = vand.u32 4294901760, %v5275_v37  ;;  %8261 = vmatpush3.bf16.msra.mxu0 %v12527_v48  ;;  %v13597_v41 = vand.u32 4294901760, %v12402_v58  ;;  %v13598_v44 = vand.u32 4294901760, %v12406_v27  ;;  %v8298_v26 = vpack.c.bf16 %v11999_v31, %v11994_v30 }
 0x277   : > { %v5047_v23 = vsub.f32 %v12481_v15, %v13596_v47  ;;  %8263 = vmatprep.subr.bf16.mxu0 %v12534_v55  ;;  %v6643_v42 = vadd.f32 %v6642_v21, %v6641_v56  ;;  %v8292_v57 = vpack.c.bf16 %v5150_v36, %v5143_v46  ;;  %v5157_v22 = vand.u32 4294901760, %v5156_v50  ;;  %v13601_v50 = vld [vmem:[#allocation20_spill] sm:$0xff] }
 0x278   : > { %v12551_v2 = vpack.c.bf16 %v13598_v44, %v13597_v41  ;;  %8289 = vmatpush3.bf16.msra.mxu1 %v8288_v60  ;;  %v5164_v45 = vand.u32 4294901760, %v5163_v4  ;;  %v8294_v53 = vpack.c.bf16 %v5276_v24, %v5269_v51  ;;  %v8300_v58 = vpack.c.bf16 %v12058_v16, %v12041_v52  ;;  %v13599_v60 = vld [vmem:[#allocation22_spill] sm:$0xff]  ;;  %v13605_v41 = vld [vmem:[#allocation13_spill] sm:$0xff]  ;;  %v13606_v44 = vld [vmem:[#allocation15_spill] sm:$0xff] }
 0x279   : > { %v5048_v37 = vand.u32 4294901760, %v5047_v23  ;;  %8291 = vmatprep.subr.bf16.mxu1 %v8290_v62  ;;  %v3151_v7 = vadd.f32 %v6643_v42, %v3047_v33  ;;  %v8302_v27 = vpack.c.bf16 %v12117_v20, %v12112_v25  ;;  %v8304_v46 = vpack.c.bf16 %v12165_v9, %v12151_v6  ;;  %v13600_v33 = vld [vmem:[#allocation25_spill] sm:$0xff]  ;;  %v13602_v4 = vld [vmem:[#allocation14_spill] sm:$0xff] }
 0x27a   : > { %8265 = vmatpush3.bf16.msra.mxu0 %v12551_v2  ;;  %v8296_v54 = vpack.c.bf16 %v5164_v45, %v5157_v22  ;;  %v8306_v36 = vpack.c.bf16 %v13600_v33, %v13599_v60  ;;  %v8308_v47 = vpack.c.bf16 %v13602_v4, %v13601_v50  ;;  %v13603_v23 = vld [vmem:[#allocation17_spill] sm:$0xff]  ;;  %v13604_v51 = vand.u32 4294901760, %v12218_v32  ;;  %v13610_v22 = vld [vmem:[#allocation10_spill] sm:$0xff] }
 0x27b   : > { %8299 = vmatprep.subr.bf16.mxu0 %v8298_v26  ;;  %v8310_v62 = vpack.c.bf16 %v12214_v59, %v13603_v23  ;;  %v8312_v24 = vpack.c.bf16 %v12230_v29, %v12223_v43  ;;  %v8314_v56 = vpack.c.bf16 %v12271_v3, %v12258_v12  ;;  %v8316_v21 = vpack.c.bf16 %v13606_v44, %v13605_v41  ;;  %v13608_v26 = vld [vmem:[#allocation23_spill] sm:$0xff] }
 0x27c   : > { %8293 = vmatpush3.bf16.msra.mxu1 %v8292_v57  ;;  %v13609_v57 = vld [vmem:[#allocation21_spill] sm:$0xff]  ;;  %v8320_v45 = vpack.c.bf16 %v12362_v61, %v12357_v14 }
 0x27d   : > { %5049 = vmatmul.mubr.f32.vlgmr.msra.gmra.mrb[30].mxu0 %v5048_v37  ;;  %8295 = vmatprep.subr.bf16.mxu1 %v8294_v53  ;;  %v13611_v37 = vld [vmem:[#allocation16_spill] sm:$0xff] }
 0x27e   : > { %8301 = vmatpush3.bf16.msra.mxu0 %v8300_v58  ;;  %5416 = vmatprep.mubr.f32.mxu0 %v12218_v32  ;;  %v13607_v32 = vld [vmem:[#allocation18_spill] sm:$0xff]  ;;  %v8322_v53 = vpack.c.bf16 %v13611_v37, %v12397_v34 }
 0x27f   : > { %8303 = vmatprep.subr.bf16.mxu0 %v8302_v27  ;;  %v8318_v42 = vpack.c.bf16 %v13608_v26, %v13607_v32  ;;  %v13612_v27 = vld [vmem:[#allocation9_spill] sm:$0xff] }
 0x280   : > { %8297 = vmatpush3.bf16.msra.mxu1 %v8296_v54 }
 0x281   : > { %8331 = vmatprep.subr.bf16.mxu1 %v12109_v1 }
 0x282   : > { %8305 = vmatpush3.bf16.msra.mxu0 %v8304_v46  ;;  %v13613_v46 = vld [vmem:[#allocation26_spill] sm:$0xff] }
 0x283   : > { %5281 = vmatmul.mubr.f32.vlgmr.msra.gmra.mrb[30].mxu1 %v12131_v35  ;;  %8307 = vmatprep.subr.bf16.mxu0 %v8306_v36  ;;  %v6676_v58 = vpop.f32.mrb[18].mxu0 }
 0x284   : > { %8333 = vmatpush3.bf16.msra.mxu1 %v12115_v0  ;;  %5523 = vmatprep.mubr.f32.mxu1 %v13604_v51  ;;  %v6677_v54 = vpop.f32.mrb[19].mxu0 }
 0x285   : > { %8335 = vmatprep.subr.bf16.mxu1 %v12135_v17  ;;  %v6678_v36 = vadd.f32 %v6677_v54, %v6676_v58  ;;  %v13616_v58 = vand.u32 4294901760, %v11999_v31  ;;  %v13621_v31 = vand.u32 4294901760, %v12151_v6  ;;  %v13627_v6 = vand.u32 4294901760, %v13602_v4 }
 0x286   : > { %8309 = vmatpush3.bf16.msra.mxu0 %v8308_v47  ;;  %v8324_v47 = vpack.c.bf16 %v12442_v10, %v12431_v18 }
 0x287   : > { %8311 = vmatprep.subr.bf16.mxu0 %v8310_v62  ;;  %v8326_v62 = vpack.c.bf16 %v12455_v38, %v12450_v63  ;;  %v3263_v51 = vadd.f32 %v6678_v36, %v3151_v7  ;;  %v13617_v36 = vand.u32 4294901760, %v12041_v52  ;;  %v13622_v52 = vand.u32 4294901760, %v12165_v9 }
 0x288   : > { %8337 = vmatpush3.bf16.msra.mxu1 %v12137_v40  ;;  %v13628_v9 = vand.u32 4294901760, %v12481_v15 }
 0x289   : > { %8339 = vmatprep.subr.bf16.mxu1 %v12172_v13 }
 0x28a   : > { %8313 = vmatpush3.bf16.msra.mxu0 %v8312_v24  ;;  %v13614_v24 = vld [vmem:[#allocation12_spill] sm:$0xff] }
 0x28b   : > { %8315 = vmatprep.subr.bf16.mxu0 %v8314_v56  ;;  %v6711_v56 = vpop.f32.mrb[18].mxu1 }
 0x28c   : > { %8341 = vmatpush3.bf16.msra.mxu1 %v13609_v57 }
 0x28d   : > { %8343 = vmatprep.subr.bf16.mxu1 %v13610_v22 }
 0x28e   : > { %8317 = vmatpush3.bf16.msra.mxu0 %v8316_v21  ;;  %v8328_v21 = vpack.c.bf16 %v12477_v19, %v12472_v39 }
 0x28f   : > { %8319 = vmatprep.subr.bf16.mxu0 %v8318_v42  ;;  %v6712_v42 = vpop.f32.mrb[19].mxu1 }
 0x290   : > { %8345 = vmatpush3.bf16.msra.mxu1 %v13612_v27  ;;  %v6713_v54 = vadd.f32 %v6712_v42, %v6711_v56 }
 0x291   : > { %8347 = vmatprep.subr.bf16.mxu1 %v13613_v46 }
 0x292   : > { %8321 = vmatpush3.bf16.msra.mxu0 %v8320_v45  ;;  %v13615_v45 = vand.u32 4294901760, %v11994_v30  ;;  %v3495_v7 = vadd.f32 %v6713_v54, %v3263_v51  ;;  %v13620_v30 = vand.u32 4294901760, %v12117_v20  ;;  %v8368_v51 = vpack.c.bf16 %v13622_v52, %v13621_v31 }
 0x293   : > { %8323 = vmatprep.subr.bf16.mxu0 %v8322_v53  ;;  %v13625_v20 = vand.u32 4294901760, %v13600_v33 }
 0x294   : > { %8349 = vmatpush3.bf16.msra.mxu1 %v13614_v24  ;;  %v8362_v53 = vpack.c.bf16 %v13616_v58, %v13615_v45  ;;  %v13645_v58 = vand.u32 4294901760, %v12450_v63 }
 0x295   : > { %8351 = vmatprep.subr.bf16.mxu1 %v12335_v28 }
 0x296   : > { %8325 = vmatpush3.bf16.msra.mxu0 %v8324_v47  ;;  %v13618_v47 = vand.u32 4294901760, %v12058_v16  ;;  %v13623_v16 = vld [vmem:[#allocation8_spill] sm:$0xff] }
 0x297   : > { %8327 = vmatprep.subr.bf16.mxu0 %v8326_v62  ;;  %v13619_v62 = vand.u32 4294901760, %v12112_v25  ;;  %v13624_v25 = vand.u32 4294901760, %v13599_v60  ;;  %v13630_v60 = vand.u32 4294901760, %v12214_v59 }
 0x298   : > { %8353 = vmatpush3.bf16.msra.mxu1 %v12498_v49  ;;  %v8364_v11 = vpack.c.bf16 %v13618_v47, %v13617_v36 }
 0x299   : > { %8355 = vmatprep.subr.bf16.mxu1 %v12504_v5  ;;  %v8366_v8 = vpack.c.bf16 %v13620_v30, %v13619_v62  ;;  %v8370_v56 = vpack.c.bf16 %v13625_v20, %v13624_v25 }
 0x29a   : > { %8329 = vmatpush3.bf16.msra.mxu0 %v8328_v21 }
 0x29b   : > { %8363 = vmatprep.subr.bf16.mxu0 %v8362_v53 }
 0x29c   : > { %8357 = vmatpush3.bf16.msra.mxu1 %v12527_v48 }
 0x29d   : > { %5419 = vmatmul.mubr.f32.vlgmr.msra.gmra.mrb[32].mxu0 %v12481_v15  ;;  %8359 = vmatprep.subr.bf16.mxu1 %v12534_v55  ;;  %v13633_v15 = vand.u32 4294901760, %v12258_v12 }
 0x29e   : > { %8365 = vmatpush3.bf16.msra.mxu0 %v8364_v11  ;;  %5693 = vmatprep.mubr.f32.mxu0 %v13623_v16  ;;  %v13626_v11 = vand.u32 4294901760, %v13601_v50  ;;  %v13632_v50 = vand.u32 4294901760, %v12230_v29  ;;  %v13638_v29 = vand.u32 4294901760, %v13608_v26 }
 0x29f   : > { %8367 = vmatprep.subr.bf16.mxu0 %v8366_v8  ;;  %v13629_v8 = vand.u32 4294901760, %v13603_v23  ;;  %v13634_v23 = vand.u32 4294901760, %v12271_v3  ;;  %v13641_v3 = vand.u32 4294901760, %v12397_v34  ;;  %v13646_v34 = vand.u32 4294901760, %v12455_v38 }
 0x2a0   : > { %8361 = vmatpush3.bf16.msra.mxu1 %v12551_v2  ;;  %v8372_v21 = vpack.c.bf16 %v13627_v6, %v13626_v11 }
 0x2a1   : > { %8395 = vmatprep.subr.bf16.mxu1 %v12109_v1  ;;  %v8374_v33 = vpack.c.bf16 %v13630_v60, %v13629_v8  ;;  %v13631_v1 = vand.u32 4294901760, %v12223_v43  ;;  %v8378_v42 = vpack.c.bf16 %v13634_v23, %v13633_v15  ;;  %v13637_v43 = vand.u32 4294901760, %v13607_v32 }
 0x2a2   : > { %8369 = vmatpush3.bf16.msra.mxu0 %v8368_v51 }
 0x2a3   : > { %5527 = vmatmul.mubr.f32.vlgmr.msra.gmra.mrb[32].mxu1 %v13628_v9  ;;  %8371 = vmatprep.subr.bf16.mxu0 %v8370_v56  ;;  %v8376_v4 = vpack.c.bf16 %v13632_v50, %v13631_v1  ;;  %v8382_v45 = vpack.c.bf16 %v13638_v29, %v13637_v43  ;;  %v6746_v32 = vpop.f32.mrb[20].mxu0 }
 0x2a4   : > { %8397 = vmatpush3.bf16.msra.mxu1 %v12115_v0  ;;  %5797 = vmatprep.mubr.f32.mxu1 %v13623_v16  ;;  %v13635_v0 = vand.u32 4294901760, %v13605_v41  ;;  %v13642_v41 = vand.u32 4294901760, %v13611_v37  ;;  %v6747_v26 = vpop.f32.mrb[21].mxu0  ;;  %v8390_v37 = vpack.c.bf16 %v13646_v34, %v13645_v58 }
 0x2a5   : > { %8399 = vmatprep.subr.bf16.mxu1 %v12135_v17  ;;  %v13636_v17 = vand.u32 4294901760, %v13606_v44 }
 0x2a6   : > { %8373 = vmatpush3.bf16.msra.mxu0 %v8372_v21  ;;  %v8386_v44 = vpack.c.bf16 %v13642_v41, %v13641_v3 }
 0x2a7   : > { %8375 = vmatprep.subr.bf16.mxu0 %v8374_v33  ;;  %v8380_v59 = vpack.c.bf16 %v13636_v17, %v13635_v0 }
 0x2a8   : > { %8401 = vmatpush3.bf16.msra.mxu1 %v12137_v40  ;;  %v13639_v40 = vand.u32 4294901760, %v12357_v14  ;;  %v13644_v14 = vand.u32 4294901760, %v12442_v10 }
 0x2a9   : > { %8403 = vmatprep.subr.bf16.mxu1 %v12172_v13  ;;  %v13640_v13 = vand.u32 4294901760, %v12362_v61 }
 0x2aa   : > { %8377 = vmatpush3.bf16.msra.mxu0 %v8376_v4 }
 0x2ab   : > { %8379 = vmatprep.subr.bf16.mxu0 %v8378_v42  ;;  %v8384_v12 = vpack.c.bf16 %v13640_v13, %v13639_v40 }
 0x2ac   : > { %8405 = vmatpush3.bf16.msra.mxu1 %v13609_v57  ;;  %v6748_v57 = vadd.f32 %v6747_v26, %v6746_v32 }
 0x2ad   : > { %8407 = vmatprep.subr.bf16.mxu1 %v13610_v22  ;;  %v13643_v22 = vand.u32 4294901760, %v12431_v18  ;;  %v13648_v18 = vand.u32 4294901760, %v12477_v19 }
 0x2ae   : > { %8381 = vmatpush3.bf16.msra.mxu0 %v8380_v59  ;;  %v3633_v53 = vadd.f32 %v6748_v57, %v3495_v7 }
 0x2af   : > { %8383 = vmatprep.subr.bf16.mxu0 %v8382_v45  ;;  %v8388_v61 = vpack.c.bf16 %v13644_v14, %v13643_v22 }
 0x2b0   : > { %8409 = vmatpush3.bf16.msra.mxu1 %v13612_v27  ;;  %v6781_v27 = vpop.f32.mrb[20].mxu1 }
 0x2b1   : > { %8411 = vmatprep.subr.bf16.mxu1 %v13613_v46  ;;  %v13647_v46 = vand.u32 4294901760, %v12472_v39  ;;  %v6782_v54 = vpop.f32.mrb[21].mxu1 }
 0x2b2   : > { %8385 = vmatpush3.bf16.msra.mxu0 %v8384_v12  ;;  %v6783_v63 = vadd.f32 %v6782_v54, %v6781_v27 }
 0x2b3   : > { %8387 = vmatprep.subr.bf16.mxu0 %v8386_v44  ;;  %v8392_v10 = vpack.c.bf16 %v13648_v18, %v13647_v46 }
 0x2b4   : > { %8413 = vmatpush3.bf16.msra.mxu1 %v13614_v24  ;;  %v3741_v38 = vadd.f32 %v6783_v63, %v3633_v53 }
 0x2b5   : > { %8415 = vmatprep.subr.bf16.mxu1 %v12335_v28 }
 0x2b6   : > { %8389 = vmatpush3.bf16.msra.mxu0 %v8388_v61 }
 0x2b7   : > { %8391 = vmatprep.subr.bf16.mxu0 %v8390_v37 }
 0x2b8   : > { %8417 = vmatpush3.bf16.msra.mxu1 %v12498_v49 }
 0x2b9   : > { %8419 = vmatprep.subr.bf16.mxu1 %v12504_v5 }
 0x2ba   : > { %8393 = vmatpush3.bf16.msra.mxu0 %v8392_v10 }
 0x2bc   : > { %8421 = vmatpush3.bf16.msra.mxu1 %v12527_v48 }
 0x2bd   : > { %5695 = vmatmul.mubr.f32.vlgmr.msra.gmra.mrb[34].mxu0 %v12131_v35  ;;  %8423 = vmatprep.subr.bf16.mxu1 %v12534_v55 }
 0x2c0   : > { %8425 = vmatpush3.bf16.msra.mxu1 %v12551_v2 }
 0x2c3   : > { %5799 = vmatmul.mubr.f32.vlgmr.msra.gmra.mrb[34].mxu1 %v12131_v35  ;;  %v13649_v35 = vld [vmem:[#allocation28_spill] sm:$0xff] }
 0x2c7   : > { %v6816_v28 = vpop.f32.mrb[22].mxu0 }
 0x2c8   : > { %v6817_v39 = vpop.f32.mrb[23].mxu0 }
 0x2c9   : > { %v6818_v19 = vadd.f32 %v6817_v39, %v6816_v28 }
 0x2cb   : > { %v3909_v24 = vadd.f32 %v6818_v19, %v3741_v38 }
 0x2cf   : > { %v6851_v5 = vpop.f32.mrb[22].mxu1 }
 0x2d0   : > { %v6852_v49 = vpop.f32.mrb[23].mxu1 }
 0x2d1   : > { %v6853_v48 = vadd.f32 %v6852_v49, %v6851_v5 }
 0x2d3   : > { %v4013_v7 = vadd.f32 %v6853_v48, %v3909_v24 }
 0x2d5   : > { %v5806_v55 = vadd.f32 %v4013_v7, %v13649_v35 }
 0x2d7   : > { %5807 = vst [vmem:[%s363_s16] sm:$0xff] %v5806_v55 }
 0x2ea   : > { %v6886_v2 = vpop.f32.mrb[24].mxu0 }
 0x2eb   : > { %v6887_v36 = vpop.f32.mrb[25].mxu0 }
 0x2ec   : > { %v6888_v47 = vadd.f32 %v6887_v36, %v6886_v2 }
 0x2ef   : > { %v6921_v62 = vpop.f32.mrb[24].mxu1 }
 0x2f0   : > { %v6922_v30 = vpop.f32.mrb[25].mxu1 }
 0x2f1   : > { %v6923_v31 = vadd.f32 %v6922_v30, %v6921_v62 }
 0x2f3   : > { %v4421_v52 = vadd.f32 %v6923_v31, %v6888_v47 }
 0x30a   : > { %v6956_v51 = vpop.f32.mrb[26].mxu0 }
 0x30b   : > { %v6957_v16 = vpop.f32.mrb[27].mxu0 }
 0x30c   : > { %v6958_v25 = vadd.f32 %v6957_v16, %v6956_v51 }
 0x30e   : > { %v4559_v20 = vadd.f32 %v6958_v25, %v4421_v52 }
 0x316   : > { %v6991_v56 = vpop.f32.mrb[26].mxu1 }
 0x317   : > { %v6992_v11 = vpop.f32.mrb[27].mxu1 }
 0x318   : > { %v6993_v6 = vadd.f32 %v6992_v11, %v6991_v56 }
 0x31a   : > { %v4667_v21 = vadd.f32 %v6993_v6, %v4559_v20 }
 0x32f   : > { %v7026_v9 = vpop.f32.mrb[28].mxu0 }
 0x330   : > { %v7027_v8 = vpop.f32.mrb[29].mxu0 }
 0x331   : > { %v7028_v60 = vadd.f32 %v7027_v8, %v7026_v9 }
 0x333   : > { %v4835_v33 = vadd.f32 %v7028_v60, %v4667_v21 }
 0x336   : > { %v7061_v1 = vpop.f32.mrb[28].mxu1 }
 0x337   : > { %v7062_v50 = vpop.f32.mrb[29].mxu1 }
 0x338   : > { %v7063_v4 = vadd.f32 %v7062_v50, %v7061_v1 }
 0x33a   : > { %v4939_v15 = vadd.f32 %v7063_v4, %v4835_v33 }
 0x350   : > { %v7096_v23 = vpop.f32.mrb[30].mxu0 }
 0x351   : > { %v7097_v42 = vpop.f32.mrb[31].mxu0 }
 0x352   : > { %v7098_v0 = vadd.f32 %v7097_v42, %v7096_v23 }
 0x354   : > { %v5051_v17 = vadd.f32 %v7098_v0, %v4939_v15 }
 0x356   : > { %v7131_v59 = vpop.f32.mrb[30].mxu1 }
 0x357   : > { %v7132_v43 = vpop.f32.mrb[31].mxu1 }
 0x358   : > { %v7133_v29 = vadd.f32 %v7132_v43, %v7131_v59 }
 0x35a   : > { %v5283_v45 = vadd.f32 %v7133_v29, %v5051_v17 }
 0x370   : > { %v7166_v40 = vpop.f32.mrb[32].mxu0 }
 0x371   : > { %v7167_v13 = vpop.f32.mrb[33].mxu0 }
 0x372   : > { %v7168_v12 = vadd.f32 %v7167_v13, %v7166_v40 }
 0x374   : > { %v5421_v3 = vadd.f32 %v7168_v12, %v5283_v45 }
 0x376   : > { %v7201_v41 = vpop.f32.mrb[32].mxu1 }
 0x377   : > { %v7202_v44 = vpop.f32.mrb[33].mxu1 }
 0x378   : > { %v7203_v32 = vadd.f32 %v7202_v44, %v7201_v41 }
 0x37a   : > { %v5529_v26 = vadd.f32 %v7203_v32, %v5421_v3 }
 0x390   : > { %v7236_v57 = vpop.f32.mrb[34].mxu0 }
 0x391   : > { %v7237_v22 = vpop.f32.mrb[35].mxu0 }
 0x392   : > { %v7238_v14 = vadd.f32 %v7237_v22, %v7236_v57 }
 0x394   : > { %v5697_v61 = vadd.f32 %v7238_v14, %v5529_v26 }
 0x396   : > { %v7271_v58 = vpop.f32.mrb[34].mxu1 }
 0x397   : > { %v7272_v34 = vpop.f32.mrb[35].mxu1 }
 0x398   : > { %v7273_v37 = vadd.f32 %v7272_v34, %v7271_v58 }
 0x39a   : > { %v5801_v53 = vadd.f32 %v7273_v37, %v5697_v61 }
 0x39c   : > { %v5804_v27 = vsub.f32 %v13649_v35, %v5801_v53 }
 0x39e   : > { %5805 = vst [vmem:[%s355_s27] sm:$0xff] %v5804_v27 }
 0x39f PF: > { %s22_s23 = sadd.s32 1, %s8803_s23   ;;  %s13650_s18 = smov %s8787_s19 }
 0x3a0   : > { %p19_p12 = scmp.ge.s32.totalorder %s22_s23, 6   ;;  %s13651_s19 = smov %s8791_s20 }
 0x3a1   : > { %s13652_s20 = smov %s8889_s30  ;;  %s13653_s21 = smov %s8799_s22 }
 0x3a2   : > { %s13654_s22 = smov %s13656_s25  ;;  %21 = sbr.rel (!%p19_p12) target bundleno = 6 (0x6), region = 107 }
 0x3a9   :  { %5857 = vsyncpa [#allocation3], 1 }
 0x3aa   :  { %5859 = vsyncpa [#allocation3 + $0x1], 1 }
 0x3ab   :  { %5860 = vsyncpa [#allocation5], 1 }
 0x3ac   :  { %5862 = vsyncpa [#allocation5 + $0x1], 1 }

</bundles_post_ra>
